<compile_context>
chip_gen: v5e
topology: v5e:2x2
jax: 0.10.0
libtpu: 0.0.40
codegen_flags: <defaults>
</compile_context>

<pallas_src>
import jax
import jax.numpy as jnp
from jax.experimental import pallas as pl
from jax.experimental.pallas import tpu as pltpu


def _round_up(x, m):
    return (x + m - 1) // m * m


# ----------------------------- fused Pallas kernel -------------------------

def _net_fused_kernel(p1_ref, w1_ref, b1_ref, w2_ref, b2_ref,
                      wf1_ref, bf1_ref, wf2_ref, bf2_ref, out_ref):
    bt = out_ref.shape[0]                       # batch tile (multiple of 16)

    # ---- conv1 + ReLU -----------------------------------------------------
    # p1 rows are ordered (y*7+x, b): one (49*bt, 9) @ (9, 32) MXU matmul.
    h1 = jnp.dot(p1_ref[...], w1_ref[...], preferred_element_type=jnp.float32)
    h1 = jnp.maximum(h1 + b1_ref[...], 0.0).astype(jnp.bfloat16)   # (49*bt, 32)
    h1 = h1.reshape(7, 7, bt, 32)               # (y, x, b, c) -- tile-aligned

    # ---- conv2 + ReLU : 9 shifted matmuls, f32 accumulator in VMEM --------
    acc2 = jnp.zeros((25 * bt, 64), jnp.float32)
    for dy in range(3):
        for dx in range(3):
            sl = h1[dy:dy + 5, dx:dx + 5].reshape(25 * bt, 32)     # free reshape
            acc2 = acc2 + jnp.dot(sl, w2_ref[dy * 3 + dx],
                                  preferred_element_type=jnp.float32)
    h2 = jnp.maximum(acc2 + b2_ref[...], 0.0).astype(jnp.bfloat16)  # (25*bt, 64)
    h2 = h2.reshape(25, bt, 64)                 # (y*5+x, b, c)

    # ---- fc1 + ReLU : 25 per-position matmuls (weight pre-permuted) -------
    # out[b, j] = sum_s  h2[s, b, :] @ wf1[s, :, j]   (== torch flatten order)
    acc3 = jnp.zeros((bt, 128), jnp.float32)
    for s in range(25):
        acc3 = acc3 + jnp.dot(h2[s], wf1_ref[s],
                              preferred_element_type=jnp.float32)
    h3 = jnp.maximum(acc3 + bf1_ref[...], 0.0).astype(jnp.bfloat16)  # (bt, 128)

    # ---- fc2 + log_softmax (f32) -------------------------------------------
    z = jnp.dot(h3, wf2_ref[...], preferred_element_type=jnp.float32)
    z = z + bf2_ref[...]
    m = jnp.max(z, axis=-1, keepdims=True)
    zs = z - m
    lse = jnp.log(jnp.sum(jnp.exp(zs), axis=-1, keepdims=True))
    out_ref[...] = zs - lse                     # (bt, 10)


# ------------------------------- wrapper ------------------------------------

def net_forward(x_nchw, params):
    """x_nchw: (N, 1, 9, 9) like PyTorch.  Returns (N, 10) log-probs."""
    w1, b1, w2, b2, wf1, bf1, wf2, bf2 = params
    n = x_nchw.shape[0]
    if tuple(x_nchw.shape[1:]) != (1, 9, 9):
        raise ValueError(f"expected (N,1,9,9) input, got {x_nchw.shape}")

    # Batch tile: multiple of 16 (sublane/bf16 aligned), capped at 128.
    bt = 128 if n >= 128 else _round_up(max(n, 1), 16)
    n_pad = _round_up(n, bt)
    nt = n_pad // bt

    x = x_nchw.reshape(n, 9, 9).astype(jnp.float32)
    if n_pad != n:
        x = jnp.pad(x, ((0, n_pad - n), (0, 0), (0, 0)))

    # conv1 im2col (tiny; Cin=1). Patch order k = dy*3 + dx.
    p = jnp.stack([x[:, dy:dy + 7, dx:dx + 7]
                   for dy in range(3) for dx in range(3)], axis=-1)  # (n_pad,7,7,9)
    # Reorder rows to (tile, y*7+x, b_local) so every in-kernel reshape is a
    # tile-aligned no-op, and cast the streamed activations to bf16.
    p = (p.reshape(nt, bt, 49, 9)
          .transpose(0, 2, 1, 3)
          .reshape(nt * 49 * bt, 9)
          .astype(jnp.bfloat16))

    grid_spec = pltpu.PrefetchScalarGridSpec(
        num_scalar_prefetch=0,
        grid=(nt,),
        in_specs=[
            pl.BlockSpec((49 * bt, 9), lambda i: (i, 0)),        # im2col stream
            pl.BlockSpec((9, 32), lambda i: (0, 0)),             # w1 (resident)
            pl.BlockSpec((1, 32), lambda i: (0, 0)),             # b1
            pl.BlockSpec((9, 32, 64), lambda i: (0, 0, 0)),      # w2
            pl.BlockSpec((1, 64), lambda i: (0, 0)),             # b2
            pl.BlockSpec((25, 64, 128), lambda i: (0, 0, 0)),    # wf1 (permuted)
            pl.BlockSpec((1, 128), lambda i: (0, 0)),            # bf1
            pl.BlockSpec((128, 10), lambda i: (0, 0)),           # wf2
            pl.BlockSpec((1, 10), lambda i: (0, 0)),             # bf2
        ],
        out_specs=pl.BlockSpec((bt, 10), lambda i: (i, 0)),
    )

    out = pl.pallas_call(
        _net_fused_kernel,
        out_shape=jax.ShapeDtypeStruct((n_pad, 10), jnp.float32),
        grid_spec=grid_spec,
        compiler_params=pltpu.CompilerParams(
            dimension_semantics=("parallel",),        # 2 TCs on v7x, no-op else
            vmem_limit_bytes=32 * 1024 * 1024,        # safe on v5e/v6e/v7x
        ),
    )(p, w1, b1, w2, b2, wf1, bf1, wf2, bf2)

    return out[:n]


# ------------------------------- parameters --------------------------------

def init_params(key):
    """Deterministic synthetic parameters in the kernel-native layouts.

    Mapping from torch weights (if porting real ones):
      w1[dy*3+dx, co]      = conv1.weight[co, 0, dy, dx]
      w2[dy*3+dx, ci, co]  = conv2.weight[co, ci, dy, dx]
      wf1[y*5+x, c, j]     = fc1.weight[j, c*25 + y*5 + x]   (pre-permuted so the
                             NHWC-style flatten matches torch's NCHW view(-1,1600))
      wf2[i, j]            = fc2.weight[j, i]
    """
    ks = jax.random.split(key, 8)
    w1 = (jax.random.normal(ks[0], (9, 32), jnp.float32) * 0.20).astype(jnp.bfloat16)
    b1 = jax.random.normal(ks[1], (1, 32), jnp.float32) * 0.02
    w2 = (jax.random.normal(ks[2], (9, 32, 64), jnp.float32) * 0.05).astype(jnp.bfloat16)
    b2 = jax.random.normal(ks[3], (1, 64), jnp.float32) * 0.02
    wf1 = (jax.random.normal(ks[4], (25, 64, 128), jnp.float32) * 0.02).astype(jnp.bfloat16)
    bf1 = jax.random.normal(ks[5], (1, 128), jnp.float32) * 0.02
    wf2 = (jax.random.normal(ks[6], (128, 10), jnp.float32) * 0.05).astype(jnp.bfloat16)
    bf2 = jax.random.normal(ks[7], (1, 10), jnp.float32) * 0.02
    return (w1, b1, w2, b2, wf1, bf1, wf2, bf2)


if __name__ == "__main__":
    key = jax.random.PRNGKey(0)
    x = jax.random.normal(key, (2, 1, 9, 9), jnp.float32)   # NCHW, like PyTorch

    params = init_params(jax.random.PRNGKey(42))

    out = jax.jit(net_forward)(x, params)
    out = jax.block_until_ready(out)

    assert out.shape == (2, 10), out.shape
    # log_softmax rows must exponentiate-sum to ~1
    row_sums = jnp.exp(out).sum(axis=1)
    assert bool(jnp.all(jnp.abs(row_sums - 1.0) < 1e-3)), row_sums

    print("KERNEL_OK")
</pallas_src>

<mosaic_0001>
module attributes {stable_mosaic.version = 11 : i64} {
  func.func @_net_fused_kernel(%arg0: i32, %arg1: memref<784x9xbf16, #tpu.memory_space<vmem>>, %arg2: memref<9x32xbf16, #tpu.memory_space<vmem>>, %arg3: memref<1x32xf32, #tpu.memory_space<vmem>>, %arg4: memref<9x32x64xbf16, #tpu.memory_space<vmem>>, %arg5: memref<1x64xf32, #tpu.memory_space<vmem>>, %arg6: memref<25x64x128xbf16, #tpu.memory_space<vmem>>, %arg7: memref<1x128xf32, #tpu.memory_space<vmem>>, %arg8: memref<128x10xbf16, #tpu.memory_space<vmem>>, %arg9: memref<1x10xf32, #tpu.memory_space<vmem>>, %arg10: memref<16x10xf32, #tpu.memory_space<vmem>>) attributes {dimension_semantics = [#tpu.dimension_semantics<parallel>], iteration_bounds = array<i64: 1>, scalar_prefetch = 0 : i64, scratch_operands = 0 : i64, tpu.core_type = #tpu.core_type<tc>, window_params = [{transform_indices = @transform_0, window_bounds = array<i64: 784, 9>}, {pipeline_mode = #tpu.pipeline_mode<synchronous>, transform_indices = @transform_1, window_bounds = array<i64: 9, 32>}, {pipeline_mode = #tpu.pipeline_mode<synchronous>, transform_indices = @transform_2, window_bounds = array<i64: 1, 32>}, {pipeline_mode = #tpu.pipeline_mode<synchronous>, transform_indices = @transform_3, window_bounds = array<i64: 9, 32, 64>}, {pipeline_mode = #tpu.pipeline_mode<synchronous>, transform_indices = @transform_4, window_bounds = array<i64: 1, 64>}, {pipeline_mode = #tpu.pipeline_mode<synchronous>, transform_indices = @transform_5, window_bounds = array<i64: 25, 64, 128>}, {pipeline_mode = #tpu.pipeline_mode<synchronous>, transform_indices = @transform_6, window_bounds = array<i64: 1, 128>}, {pipeline_mode = #tpu.pipeline_mode<synchronous>, transform_indices = @transform_7, window_bounds = array<i64: 128, 10>}, {pipeline_mode = #tpu.pipeline_mode<synchronous>, transform_indices = @transform_8, window_bounds = array<i64: 1, 10>}, {transform_indices = @transform_9, window_bounds = array<i64: 16, 10>}]} {
    %c0 = arith.constant 0 : index
    %c0_0 = arith.constant 0 : index
    %0 = vector.load %arg1[%c0, %c0_0] : memref<784x9xbf16, #tpu.memory_space<vmem>>, vector<784x9xbf16>
    %c0_1 = arith.constant 0 : index
    %c0_2 = arith.constant 0 : index
    %1 = vector.load %arg2[%c0_1, %c0_2] : memref<9x32xbf16, #tpu.memory_space<vmem>>, vector<9x32xbf16>
    %cst = arith.constant dense<0.000000e+00> : vector<784x32xf32>
    %2 = tpu.matmul %0, %1, %cst {dimension_numbers = #tpu.dot_dimension_numbers<[1], [0], [0], [1], [0, 0, 1, 1], [], []>} : vector<784x9xbf16>, vector<9x32xbf16>, vector<784x32xf32> -> vector<784x32xf32>
    %c0_3 = arith.constant 0 : index
    %c0_4 = arith.constant 0 : index
    %3 = vector.load %arg3[%c0_3, %c0_4] : memref<1x32xf32, #tpu.memory_space<vmem>>, vector<1x32xf32>
    %4 = vector.broadcast %3 : vector<1x32xf32> to vector<784x32xf32>
    %5 = arith.addf %2, %4 : vector<784x32xf32>
    %cst_5 = arith.constant 0.000000e+00 : f32
    %6 = vector.broadcast %cst_5 : f32 to vector<784x32xf32>
    %7 = arith.maximumf %5, %6 : vector<784x32xf32>
    %8 = arith.truncf %7 : vector<784x32xf32> to vector<784x32xbf16>
    %9 = vector.shape_cast %8 : vector<784x32xbf16> to vector<7x7x16x32xbf16>
    %cst_6 = arith.constant 0.000000e+00 : f32
    %10 = vector.broadcast %cst_6 : f32 to vector<400x64xf32>
    %11 = vector.extract_strided_slice %9 {offsets = [0, 0, 0, 0], sizes = [5, 5, 16, 32], strides = [1, 1, 1, 1]} : vector<7x7x16x32xbf16> to vector<5x5x16x32xbf16>
    %12 = vector.shape_cast %11 : vector<5x5x16x32xbf16> to vector<400x32xbf16>
    %c0_7 = arith.constant 0 : index
    %c0_8 = arith.constant 0 : index
    %c0_9 = arith.constant 0 : index
    %13 = vector.load %arg4[%c0_7, %c0_8, %c0_9] : memref<9x32x64xbf16, #tpu.memory_space<vmem>>, vector<1x32x64xbf16>
    %14 = vector.shape_cast %13 : vector<1x32x64xbf16> to vector<32x64xbf16>
    %cst_10 = arith.constant dense<0.000000e+00> : vector<400x64xf32>
    %15 = tpu.matmul %12, %14, %cst_10 {dimension_numbers = #tpu.dot_dimension_numbers<[1], [0], [0], [1], [0, 0, 1, 1], [], []>} : vector<400x32xbf16>, vector<32x64xbf16>, vector<400x64xf32> -> vector<400x64xf32>
    %16 = arith.addf %10, %15 : vector<400x64xf32>
    %17 = vector.extract_strided_slice %9 {offsets = [0, 1, 0, 0], sizes = [5, 5, 16, 32], strides = [1, 1, 1, 1]} : vector<7x7x16x32xbf16> to vector<5x5x16x32xbf16>
    %18 = vector.shape_cast %17 : vector<5x5x16x32xbf16> to vector<400x32xbf16>
    %c1 = arith.constant 1 : index
    %c0_11 = arith.constant 0 : index
    %c0_12 = arith.constant 0 : index
    %19 = vector.load %arg4[%c1, %c0_11, %c0_12] : memref<9x32x64xbf16, #tpu.memory_space<vmem>>, vector<1x32x64xbf16>
    %20 = vector.shape_cast %19 : vector<1x32x64xbf16> to vector<32x64xbf16>
    %cst_13 = arith.constant dense<0.000000e+00> : vector<400x64xf32>
    %21 = tpu.matmul %18, %20, %cst_13 {dimension_numbers = #tpu.dot_dimension_numbers<[1], [0], [0], [1], [0, 0, 1, 1], [], []>} : vector<400x32xbf16>, vector<32x64xbf16>, vector<400x64xf32> -> vector<400x64xf32>
    %22 = arith.addf %16, %21 : vector<400x64xf32>
    %23 = vector.extract_strided_slice %9 {offsets = [0, 2, 0, 0], sizes = [5, 5, 16, 32], strides = [1, 1, 1, 1]} : vector<7x7x16x32xbf16> to vector<5x5x16x32xbf16>
    %24 = vector.shape_cast %23 : vector<5x5x16x32xbf16> to vector<400x32xbf16>
    %c2 = arith.constant 2 : index
    %c0_14 = arith.constant 0 : index
    %c0_15 = arith.constant 0 : index
    %25 = vector.load %arg4[%c2, %c0_14, %c0_15] : memref<9x32x64xbf16, #tpu.memory_space<vmem>>, vector<1x32x64xbf16>
    %26 = vector.shape_cast %25 : vector<1x32x64xbf16> to vector<32x64xbf16>
    %cst_16 = arith.constant dense<0.000000e+00> : vector<400x64xf32>
    %27 = tpu.matmul %24, %26, %cst_16 {dimension_numbers = #tpu.dot_dimension_numbers<[1], [0], [0], [1], [0, 0, 1, 1], [], []>} : vector<400x32xbf16>, vector<32x64xbf16>, vector<400x64xf32> -> vector<400x64xf32>
    %28 = arith.addf %22, %27 : vector<400x64xf32>
    %29 = vector.extract_strided_slice %9 {offsets = [1, 0, 0, 0], sizes = [5, 5, 16, 32], strides = [1, 1, 1, 1]} : vector<7x7x16x32xbf16> to vector<5x5x16x32xbf16>
    %30 = vector.shape_cast %29 : vector<5x5x16x32xbf16> to vector<400x32xbf16>
    %c3 = arith.constant 3 : index
    %c0_17 = arith.constant 0 : index
    %c0_18 = arith.constant 0 : index
    %31 = vector.load %arg4[%c3, %c0_17, %c0_18] : memref<9x32x64xbf16, #tpu.memory_space<vmem>>, vector<1x32x64xbf16>
    %32 = vector.shape_cast %31 : vector<1x32x64xbf16> to vector<32x64xbf16>
    %cst_19 = arith.constant dense<0.000000e+00> : vector<400x64xf32>
    %33 = tpu.matmul %30, %32, %cst_19 {dimension_numbers = #tpu.dot_dimension_numbers<[1], [0], [0], [1], [0, 0, 1, 1], [], []>} : vector<400x32xbf16>, vector<32x64xbf16>, vector<400x64xf32> -> vector<400x64xf32>
    %34 = arith.addf %28, %33 : vector<400x64xf32>
    %35 = vector.extract_strided_slice %9 {offsets = [1, 1, 0, 0], sizes = [5, 5, 16, 32], strides = [1, 1, 1, 1]} : vector<7x7x16x32xbf16> to vector<5x5x16x32xbf16>
    %36 = vector.shape_cast %35 : vector<5x5x16x32xbf16> to vector<400x32xbf16>
    %c4 = arith.constant 4 : index
    %c0_20 = arith.constant 0 : index
    %c0_21 = arith.constant 0 : index
    %37 = vector.load %arg4[%c4, %c0_20, %c0_21] : memref<9x32x64xbf16, #tpu.memory_space<vmem>>, vector<1x32x64xbf16>
    %38 = vector.shape_cast %37 : vector<1x32x64xbf16> to vector<32x64xbf16>
    %cst_22 = arith.constant dense<0.000000e+00> : vector<400x64xf32>
    %39 = tpu.matmul %36, %38, %cst_22 {dimension_numbers = #tpu.dot_dimension_numbers<[1], [0], [0], [1], [0, 0, 1, 1], [], []>} : vector<400x32xbf16>, vector<32x64xbf16>, vector<400x64xf32> -> vector<400x64xf32>
    %40 = arith.addf %34, %39 : vector<400x64xf32>
    %41 = vector.extract_strided_slice %9 {offsets = [1, 2, 0, 0], sizes = [5, 5, 16, 32], strides = [1, 1, 1, 1]} : vector<7x7x16x32xbf16> to vector<5x5x16x32xbf16>
    %42 = vector.shape_cast %41 : vector<5x5x16x32xbf16> to vector<400x32xbf16>
    %c5 = arith.constant 5 : index
    %c0_23 = arith.constant 0 : index
    %c0_24 = arith.constant 0 : index
    %43 = vector.load %arg4[%c5, %c0_23, %c0_24] : memref<9x32x64xbf16, #tpu.memory_space<vmem>>, vector<1x32x64xbf16>
    %44 = vector.shape_cast %43 : vector<1x32x64xbf16> to vector<32x64xbf16>
    %cst_25 = arith.constant dense<0.000000e+00> : vector<400x64xf32>
    %45 = tpu.matmul %42, %44, %cst_25 {dimension_numbers = #tpu.dot_dimension_numbers<[1], [0], [0], [1], [0, 0, 1, 1], [], []>} : vector<400x32xbf16>, vector<32x64xbf16>, vector<400x64xf32> -> vector<400x64xf32>
    %46 = arith.addf %40, %45 : vector<400x64xf32>
    %47 = vector.extract_strided_slice %9 {offsets = [2, 0, 0, 0], sizes = [5, 5, 16, 32], strides = [1, 1, 1, 1]} : vector<7x7x16x32xbf16> to vector<5x5x16x32xbf16>
    %48 = vector.shape_cast %47 : vector<5x5x16x32xbf16> to vector<400x32xbf16>
    %c6 = arith.constant 6 : index
    %c0_26 = arith.constant 0 : index
    %c0_27 = arith.constant 0 : index
    %49 = vector.load %arg4[%c6, %c0_26, %c0_27] : memref<9x32x64xbf16, #tpu.memory_space<vmem>>, vector<1x32x64xbf16>
    %50 = vector.shape_cast %49 : vector<1x32x64xbf16> to vector<32x64xbf16>
    %cst_28 = arith.constant dense<0.000000e+00> : vector<400x64xf32>
    %51 = tpu.matmul %48, %50, %cst_28 {dimension_numbers = #tpu.dot_dimension_numbers<[1], [0], [0], [1], [0, 0, 1, 1], [], []>} : vector<400x32xbf16>, vector<32x64xbf16>, vector<400x64xf32> -> vector<400x64xf32>
    %52 = arith.addf %46, %51 : vector<400x64xf32>
    %53 = vector.extract_strided_slice %9 {offsets = [2, 1, 0, 0], sizes = [5, 5, 16, 32], strides = [1, 1, 1, 1]} : vector<7x7x16x32xbf16> to vector<5x5x16x32xbf16>
    %54 = vector.shape_cast %53 : vector<5x5x16x32xbf16> to vector<400x32xbf16>
    %c7 = arith.constant 7 : index
    %c0_29 = arith.constant 0 : index
    %c0_30 = arith.constant 0 : index
    %55 = vector.load %arg4[%c7, %c0_29, %c0_30] : memref<9x32x64xbf16, #tpu.memory_space<vmem>>, vector<1x32x64xbf16>
    %56 = vector.shape_cast %55 : vector<1x32x64xbf16> to vector<32x64xbf16>
    %cst_31 = arith.constant dense<0.000000e+00> : vector<400x64xf32>
    %57 = tpu.matmul %54, %56, %cst_31 {dimension_numbers = #tpu.dot_dimension_numbers<[1], [0], [0], [1], [0, 0, 1, 1], [], []>} : vector<400x32xbf16>, vector<32x64xbf16>, vector<400x64xf32> -> vector<400x64xf32>
    %58 = arith.addf %52, %57 : vector<400x64xf32>
    %59 = vector.extract_strided_slice %9 {offsets = [2, 2, 0, 0], sizes = [5, 5, 16, 32], strides = [1, 1, 1, 1]} : vector<7x7x16x32xbf16> to vector<5x5x16x32xbf16>
    %60 = vector.shape_cast %59 : vector<5x5x16x32xbf16> to vector<400x32xbf16>
    %c8 = arith.constant 8 : index
    %c0_32 = arith.constant 0 : index
    %c0_33 = arith.constant 0 : index
    %61 = vector.load %arg4[%c8, %c0_32, %c0_33] : memref<9x32x64xbf16, #tpu.memory_space<vmem>>, vector<1x32x64xbf16>
    %62 = vector.shape_cast %61 : vector<1x32x64xbf16> to vector<32x64xbf16>
    %cst_34 = arith.constant dense<0.000000e+00> : vector<400x64xf32>
    %63 = tpu.matmul %60, %62, %cst_34 {dimension_numbers = #tpu.dot_dimension_numbers<[1], [0], [0], [1], [0, 0, 1, 1], [], []>} : vector<400x32xbf16>, vector<32x64xbf16>, vector<400x64xf32> -> vector<400x64xf32>
    %64 = arith.addf %58, %63 : vector<400x64xf32>
    %c0_35 = arith.constant 0 : index
    %c0_36 = arith.constant 0 : index
    %65 = vector.load %arg5[%c0_35, %c0_36] : memref<1x64xf32, #tpu.memory_space<vmem>>, vector<1x64xf32>
    %66 = vector.broadcast %65 : vector<1x64xf32> to vector<400x64xf32>
    %67 = arith.addf %64, %66 : vector<400x64xf32>
    %cst_37 = arith.constant 0.000000e+00 : f32
    %68 = vector.broadcast %cst_37 : f32 to vector<400x64xf32>
    %69 = arith.maximumf %67, %68 : vector<400x64xf32>
    %70 = arith.truncf %69 : vector<400x64xf32> to vector<400x64xbf16>
    %71 = vector.shape_cast %70 : vector<400x64xbf16> to vector<25x16x64xbf16>
    %cst_38 = arith.constant 0.000000e+00 : f32
    %72 = vector.broadcast %cst_38 : f32 to vector<16x128xf32>
    %73 = vector.extract_strided_slice %71 {offsets = [0, 0, 0], sizes = [1, 16, 64], strides = [1, 1, 1]} : vector<25x16x64xbf16> to vector<1x16x64xbf16>
    %74 = vector.shape_cast %73 : vector<1x16x64xbf16> to vector<16x64xbf16>
    %c0_39 = arith.constant 0 : index
    %c0_40 = arith.constant 0 : index
    %c0_41 = arith.constant 0 : index
    %75 = vector.load %arg6[%c0_39, %c0_40, %c0_41] : memref<25x64x128xbf16, #tpu.memory_space<vmem>>, vector<1x64x128xbf16>
    %76 = vector.shape_cast %75 : vector<1x64x128xbf16> to vector<64x128xbf16>
    %cst_42 = arith.constant dense<0.000000e+00> : vector<16x128xf32>
    %77 = tpu.matmul %74, %76, %cst_42 {dimension_numbers = #tpu.dot_dimension_numbers<[1], [0], [0], [1], [0, 0, 1, 1], [], []>} : vector<16x64xbf16>, vector<64x128xbf16>, vector<16x128xf32> -> vector<16x128xf32>
    %78 = arith.addf %72, %77 : vector<16x128xf32>
    %79 = vector.extract_strided_slice %71 {offsets = [1, 0, 0], sizes = [1, 16, 64], strides = [1, 1, 1]} : vector<25x16x64xbf16> to vector<1x16x64xbf16>
    %80 = vector.shape_cast %79 : vector<1x16x64xbf16> to vector<16x64xbf16>
    %c1_43 = arith.constant 1 : index
    %c0_44 = arith.constant 0 : index
    %c0_45 = arith.constant 0 : index
    %81 = vector.load %arg6[%c1_43, %c0_44, %c0_45] : memref<25x64x128xbf16, #tpu.memory_space<vmem>>, vector<1x64x128xbf16>
    %82 = vector.shape_cast %81 : vector<1x64x128xbf16> to vector<64x128xbf16>
    %cst_46 = arith.constant dense<0.000000e+00> : vector<16x128xf32>
    %83 = tpu.matmul %80, %82, %cst_46 {dimension_numbers = #tpu.dot_dimension_numbers<[1], [0], [0], [1], [0, 0, 1, 1], [], []>} : vector<16x64xbf16>, vector<64x128xbf16>, vector<16x128xf32> -> vector<16x128xf32>
    %84 = arith.addf %78, %83 : vector<16x128xf32>
    %85 = vector.extract_strided_slice %71 {offsets = [2, 0, 0], sizes = [1, 16, 64], strides = [1, 1, 1]} : vector<25x16x64xbf16> to vector<1x16x64xbf16>
    %86 = vector.shape_cast %85 : vector<1x16x64xbf16> to vector<16x64xbf16>
    %c2_47 = arith.constant 2 : index
    %c0_48 = arith.constant 0 : index
    %c0_49 = arith.constant 0 : index
    %87 = vector.load %arg6[%c2_47, %c0_48, %c0_49] : memref<25x64x128xbf16, #tpu.memory_space<vmem>>, vector<1x64x128xbf16>
    %88 = vector.shape_cast %87 : vector<1x64x128xbf16> to vector<64x128xbf16>
    %cst_50 = arith.constant dense<0.000000e+00> : vector<16x128xf32>
    %89 = tpu.matmul %86, %88, %cst_50 {dimension_numbers = #tpu.dot_dimension_numbers<[1], [0], [0], [1], [0, 0, 1, 1], [], []>} : vector<16x64xbf16>, vector<64x128xbf16>, vector<16x128xf32> -> vector<16x128xf32>
    %90 = arith.addf %84, %89 : vector<16x128xf32>
    %91 = vector.extract_strided_slice %71 {offsets = [3, 0, 0], sizes = [1, 16, 64], strides = [1, 1, 1]} : vector<25x16x64xbf16> to vector<1x16x64xbf16>
    %92 = vector.shape_cast %91 : vector<1x16x64xbf16> to vector<16x64xbf16>
    %c3_51 = arith.constant 3 : index
    %c0_52 = arith.constant 0 : index
    %c0_53 = arith.constant 0 : index
    %93 = vector.load %arg6[%c3_51, %c0_52, %c0_53] : memref<25x64x128xbf16, #tpu.memory_space<vmem>>, vector<1x64x128xbf16>
    %94 = vector.shape_cast %93 : vector<1x64x128xbf16> to vector<64x128xbf16>
    %cst_54 = arith.constant dense<0.000000e+00> : vector<16x128xf32>
    %95 = tpu.matmul %92, %94, %cst_54 {dimension_numbers = #tpu.dot_dimension_numbers<[1], [0], [0], [1], [0, 0, 1, 1], [], []>} : vector<16x64xbf16>, vector<64x128xbf16>, vector<16x128xf32> -> vector<16x128xf32>
    %96 = arith.addf %90, %95 : vector<16x128xf32>
    %97 = vector.extract_strided_slice %71 {offsets = [4, 0, 0], sizes = [1, 16, 64], strides = [1, 1, 1]} : vector<25x16x64xbf16> to vector<1x16x64xbf16>
    %98 = vector.shape_cast %97 : vector<1x16x64xbf16> to vector<16x64xbf16>
    %c4_55 = arith.constant 4 : index
    %c0_56 = arith.constant 0 : index
    %c0_57 = arith.constant 0 : index
    %99 = vector.load %arg6[%c4_55, %c0_56, %c0_57] : memref<25x64x128xbf16, #tpu.memory_space<vmem>>, vector<1x64x128xbf16>
    %100 = vector.shape_cast %99 : vector<1x64x128xbf16> to vector<64x128xbf16>
    %cst_58 = arith.constant dense<0.000000e+00> : vector<16x128xf32>
    %101 = tpu.matmul %98, %100, %cst_58 {dimension_numbers = #tpu.dot_dimension_numbers<[1], [0], [0], [1], [0, 0, 1, 1], [], []>} : vector<16x64xbf16>, vector<64x128xbf16>, vector<16x128xf32> -> vector<16x128xf32>
    %102 = arith.addf %96, %101 : vector<16x128xf32>
    %103 = vector.extract_strided_slice %71 {offsets = [5, 0, 0], sizes = [1, 16, 64], strides = [1, 1, 1]} : vector<25x16x64xbf16> to vector<1x16x64xbf16>
    %104 = vector.shape_cast %103 : vector<1x16x64xbf16> to vector<16x64xbf16>
    %c5_59 = arith.constant 5 : index
    %c0_60 = arith.constant 0 : index
    %c0_61 = arith.constant 0 : index
    %105 = vector.load %arg6[%c5_59, %c0_60, %c0_61] : memref<25x64x128xbf16, #tpu.memory_space<vmem>>, vector<1x64x128xbf16>
    %106 = vector.shape_cast %105 : vector<1x64x128xbf16> to vector<64x128xbf16>
    %cst_62 = arith.constant dense<0.000000e+00> : vector<16x128xf32>
    %107 = tpu.matmul %104, %106, %cst_62 {dimension_numbers = #tpu.dot_dimension_numbers<[1], [0], [0], [1], [0, 0, 1, 1], [], []>} : vector<16x64xbf16>, vector<64x128xbf16>, vector<16x128xf32> -> vector<16x128xf32>
    %108 = arith.addf %102, %107 : vector<16x128xf32>
    %109 = vector.extract_strided_slice %71 {offsets = [6, 0, 0], sizes = [1, 16, 64], strides = [1, 1, 1]} : vector<25x16x64xbf16> to vector<1x16x64xbf16>
    %110 = vector.shape_cast %109 : vector<1x16x64xbf16> to vector<16x64xbf16>
    %c6_63 = arith.constant 6 : index
    %c0_64 = arith.constant 0 : index
    %c0_65 = arith.constant 0 : index
    %111 = vector.load %arg6[%c6_63, %c0_64, %c0_65] : memref<25x64x128xbf16, #tpu.memory_space<vmem>>, vector<1x64x128xbf16>
    %112 = vector.shape_cast %111 : vector<1x64x128xbf16> to vector<64x128xbf16>
    %cst_66 = arith.constant dense<0.000000e+00> : vector<16x128xf32>
    %113 = tpu.matmul %110, %112, %cst_66 {dimension_numbers = #tpu.dot_dimension_numbers<[1], [0], [0], [1], [0, 0, 1, 1], [], []>} : vector<16x64xbf16>, vector<64x128xbf16>, vector<16x128xf32> -> vector<16x128xf32>
    %114 = arith.addf %108, %113 : vector<16x128xf32>
    %115 = vector.extract_strided_slice %71 {offsets = [7, 0, 0], sizes = [1, 16, 64], strides = [1, 1, 1]} : vector<25x16x64xbf16> to vector<1x16x64xbf16>
    %116 = vector.shape_cast %115 : vector<1x16x64xbf16> to vector<16x64xbf16>
    %c7_67 = arith.constant 7 : index
    %c0_68 = arith.constant 0 : index
    %c0_69 = arith.constant 0 : index
    %117 = vector.load %arg6[%c7_67, %c0_68, %c0_69] : memref<25x64x128xbf16, #tpu.memory_space<vmem>>, vector<1x64x128xbf16>
    %118 = vector.shape_cast %117 : vector<1x64x128xbf16> to vector<64x128xbf16>
    %cst_70 = arith.constant dense<0.000000e+00> : vector<16x128xf32>
    %119 = tpu.matmul %116, %118, %cst_70 {dimension_numbers = #tpu.dot_dimension_numbers<[1], [0], [0], [1], [0, 0, 1, 1], [], []>} : vector<16x64xbf16>, vector<64x128xbf16>, vector<16x128xf32> -> vector<16x128xf32>
    %120 = arith.addf %114, %119 : vector<16x128xf32>
    %121 = vector.extract_strided_slice %71 {offsets = [8, 0, 0], sizes = [1, 16, 64], strides = [1, 1, 1]} : vector<25x16x64xbf16> to vector<1x16x64xbf16>
    %122 = vector.shape_cast %121 : vector<1x16x64xbf16> to vector<16x64xbf16>
    %c8_71 = arith.constant 8 : index
    %c0_72 = arith.constant 0 : index
    %c0_73 = arith.constant 0 : index
    %123 = vector.load %arg6[%c8_71, %c0_72, %c0_73] : memref<25x64x128xbf16, #tpu.memory_space<vmem>>, vector<1x64x128xbf16>
    %124 = vector.shape_cast %123 : vector<1x64x128xbf16> to vector<64x128xbf16>
    %cst_74 = arith.constant dense<0.000000e+00> : vector<16x128xf32>
    %125 = tpu.matmul %122, %124, %cst_74 {dimension_numbers = #tpu.dot_dimension_numbers<[1], [0], [0], [1], [0, 0, 1, 1], [], []>} : vector<16x64xbf16>, vector<64x128xbf16>, vector<16x128xf32> -> vector<16x128xf32>
    %126 = arith.addf %120, %125 : vector<16x128xf32>
    %127 = vector.extract_strided_slice %71 {offsets = [9, 0, 0], sizes = [1, 16, 64], strides = [1, 1, 1]} : vector<25x16x64xbf16> to vector<1x16x64xbf16>
    %128 = vector.shape_cast %127 : vector<1x16x64xbf16> to vector<16x64xbf16>
    %c9 = arith.constant 9 : index
    %c0_75 = arith.constant 0 : index
    %c0_76 = arith.constant 0 : index
    %129 = vector.load %arg6[%c9, %c0_75, %c0_76] : memref<25x64x128xbf16, #tpu.memory_space<vmem>>, vector<1x64x128xbf16>
    %130 = vector.shape_cast %129 : vector<1x64x128xbf16> to vector<64x128xbf16>
    %cst_77 = arith.constant dense<0.000000e+00> : vector<16x128xf32>
    %131 = tpu.matmul %128, %130, %cst_77 {dimension_numbers = #tpu.dot_dimension_numbers<[1], [0], [0], [1], [0, 0, 1, 1], [], []>} : vector<16x64xbf16>, vector<64x128xbf16>, vector<16x128xf32> -> vector<16x128xf32>
    %132 = arith.addf %126, %131 : vector<16x128xf32>
    %133 = vector.extract_strided_slice %71 {offsets = [10, 0, 0], sizes = [1, 16, 64], strides = [1, 1, 1]} : vector<25x16x64xbf16> to vector<1x16x64xbf16>
    %134 = vector.shape_cast %133 : vector<1x16x64xbf16> to vector<16x64xbf16>
    %c10 = arith.constant 10 : index
    %c0_78 = arith.constant 0 : index
    %c0_79 = arith.constant 0 : index
    %135 = vector.load %arg6[%c10, %c0_78, %c0_79] : memref<25x64x128xbf16, #tpu.memory_space<vmem>>, vector<1x64x128xbf16>
    %136 = vector.shape_cast %135 : vector<1x64x128xbf16> to vector<64x128xbf16>
    %cst_80 = arith.constant dense<0.000000e+00> : vector<16x128xf32>
    %137 = tpu.matmul %134, %136, %cst_80 {dimension_numbers = #tpu.dot_dimension_numbers<[1], [0], [0], [1], [0, 0, 1, 1], [], []>} : vector<16x64xbf16>, vector<64x128xbf16>, vector<16x128xf32> -> vector<16x128xf32>
    %138 = arith.addf %132, %137 : vector<16x128xf32>
    %139 = vector.extract_strided_slice %71 {offsets = [11, 0, 0], sizes = [1, 16, 64], strides = [1, 1, 1]} : vector<25x16x64xbf16> to vector<1x16x64xbf16>
    %140 = vector.shape_cast %139 : vector<1x16x64xbf16> to vector<16x64xbf16>
    %c11 = arith.constant 11 : index
    %c0_81 = arith.constant 0 : index
    %c0_82 = arith.constant 0 : index
    %141 = vector.load %arg6[%c11, %c0_81, %c0_82] : memref<25x64x128xbf16, #tpu.memory_space<vmem>>, vector<1x64x128xbf16>
    %142 = vector.shape_cast %141 : vector<1x64x128xbf16> to vector<64x128xbf16>
    %cst_83 = arith.constant dense<0.000000e+00> : vector<16x128xf32>
    %143 = tpu.matmul %140, %142, %cst_83 {dimension_numbers = #tpu.dot_dimension_numbers<[1], [0], [0], [1], [0, 0, 1, 1], [], []>} : vector<16x64xbf16>, vector<64x128xbf16>, vector<16x128xf32> -> vector<16x128xf32>
    %144 = arith.addf %138, %143 : vector<16x128xf32>
    %145 = vector.extract_strided_slice %71 {offsets = [12, 0, 0], sizes = [1, 16, 64], strides = [1, 1, 1]} : vector<25x16x64xbf16> to vector<1x16x64xbf16>
    %146 = vector.shape_cast %145 : vector<1x16x64xbf16> to vector<16x64xbf16>
    %c12 = arith.constant 12 : index
    %c0_84 = arith.constant 0 : index
    %c0_85 = arith.constant 0 : index
    %147 = vector.load %arg6[%c12, %c0_84, %c0_85] : memref<25x64x128xbf16, #tpu.memory_space<vmem>>, vector<1x64x128xbf16>
    %148 = vector.shape_cast %147 : vector<1x64x128xbf16> to vector<64x128xbf16>
    %cst_86 = arith.constant dense<0.000000e+00> : vector<16x128xf32>
    %149 = tpu.matmul %146, %148, %cst_86 {dimension_numbers = #tpu.dot_dimension_numbers<[1], [0], [0], [1], [0, 0, 1, 1], [], []>} : vector<16x64xbf16>, vector<64x128xbf16>, vector<16x128xf32> -> vector<16x128xf32>
    %150 = arith.addf %144, %149 : vector<16x128xf32>
    %151 = vector.extract_strided_slice %71 {offsets = [13, 0, 0], sizes = [1, 16, 64], strides = [1, 1, 1]} : vector<25x16x64xbf16> to vector<1x16x64xbf16>
    %152 = vector.shape_cast %151 : vector<1x16x64xbf16> to vector<16x64xbf16>
    %c13 = arith.constant 13 : index
    %c0_87 = arith.constant 0 : index
    %c0_88 = arith.constant 0 : index
    %153 = vector.load %arg6[%c13, %c0_87, %c0_88] : memref<25x64x128xbf16, #tpu.memory_space<vmem>>, vector<1x64x128xbf16>
    %154 = vector.shape_cast %153 : vector<1x64x128xbf16> to vector<64x128xbf16>
    %cst_89 = arith.constant dense<0.000000e+00> : vector<16x128xf32>
    %155 = tpu.matmul %152, %154, %cst_89 {dimension_numbers = #tpu.dot_dimension_numbers<[1], [0], [0], [1], [0, 0, 1, 1], [], []>} : vector<16x64xbf16>, vector<64x128xbf16>, vector<16x128xf32> -> vector<16x128xf32>
    %156 = arith.addf %150, %155 : vector<16x128xf32>
    %157 = vector.extract_strided_slice %71 {offsets = [14, 0, 0], sizes = [1, 16, 64], strides = [1, 1, 1]} : vector<25x16x64xbf16> to vector<1x16x64xbf16>
    %158 = vector.shape_cast %157 : vector<1x16x64xbf16> to vector<16x64xbf16>
    %c14 = arith.constant 14 : index
    %c0_90 = arith.constant 0 : index
    %c0_91 = arith.constant 0 : index
    %159 = vector.load %arg6[%c14, %c0_90, %c0_91] : memref<25x64x128xbf16, #tpu.memory_space<vmem>>, vector<1x64x128xbf16>
    %160 = vector.shape_cast %159 : vector<1x64x128xbf16> to vector<64x128xbf16>
    %cst_92 = arith.constant dense<0.000000e+00> : vector<16x128xf32>
    %161 = tpu.matmul %158, %160, %cst_92 {dimension_numbers = #tpu.dot_dimension_numbers<[1], [0], [0], [1], [0, 0, 1, 1], [], []>} : vector<16x64xbf16>, vector<64x128xbf16>, vector<16x128xf32> -> vector<16x128xf32>
    %162 = arith.addf %156, %161 : vector<16x128xf32>
    %163 = vector.extract_strided_slice %71 {offsets = [15, 0, 0], sizes = [1, 16, 64], strides = [1, 1, 1]} : vector<25x16x64xbf16> to vector<1x16x64xbf16>
    %164 = vector.shape_cast %163 : vector<1x16x64xbf16> to vector<16x64xbf16>
    %c15 = arith.constant 15 : index
    %c0_93 = arith.constant 0 : index
    %c0_94 = arith.constant 0 : index
    %165 = vector.load %arg6[%c15, %c0_93, %c0_94] : memref<25x64x128xbf16, #tpu.memory_space<vmem>>, vector<1x64x128xbf16>
    %166 = vector.shape_cast %165 : vector<1x64x128xbf16> to vector<64x128xbf16>
    %cst_95 = arith.constant dense<0.000000e+00> : vector<16x128xf32>
    %167 = tpu.matmul %164, %166, %cst_95 {dimension_numbers = #tpu.dot_dimension_numbers<[1], [0], [0], [1], [0, 0, 1, 1], [], []>} : vector<16x64xbf16>, vector<64x128xbf16>, vector<16x128xf32> -> vector<16x128xf32>
    %168 = arith.addf %162, %167 : vector<16x128xf32>
    %169 = vector.extract_strided_slice %71 {offsets = [16, 0, 0], sizes = [1, 16, 64], strides = [1, 1, 1]} : vector<25x16x64xbf16> to vector<1x16x64xbf16>
    %170 = vector.shape_cast %169 : vector<1x16x64xbf16> to vector<16x64xbf16>
    %c16 = arith.constant 16 : index
    %c0_96 = arith.constant 0 : index
    %c0_97 = arith.constant 0 : index
    %171 = vector.load %arg6[%c16, %c0_96, %c0_97] : memref<25x64x128xbf16, #tpu.memory_space<vmem>>, vector<1x64x128xbf16>
    %172 = vector.shape_cast %171 : vector<1x64x128xbf16> to vector<64x128xbf16>
    %cst_98 = arith.constant dense<0.000000e+00> : vector<16x128xf32>
    %173 = tpu.matmul %170, %172, %cst_98 {dimension_numbers = #tpu.dot_dimension_numbers<[1], [0], [0], [1], [0, 0, 1, 1], [], []>} : vector<16x64xbf16>, vector<64x128xbf16>, vector<16x128xf32> -> vector<16x128xf32>
    %174 = arith.addf %168, %173 : vector<16x128xf32>
    %175 = vector.extract_strided_slice %71 {offsets = [17, 0, 0], sizes = [1, 16, 64], strides = [1, 1, 1]} : vector<25x16x64xbf16> to vector<1x16x64xbf16>
    %176 = vector.shape_cast %175 : vector<1x16x64xbf16> to vector<16x64xbf16>
    %c17 = arith.constant 17 : index
    %c0_99 = arith.constant 0 : index
    %c0_100 = arith.constant 0 : index
    %177 = vector.load %arg6[%c17, %c0_99, %c0_100] : memref<25x64x128xbf16, #tpu.memory_space<vmem>>, vector<1x64x128xbf16>
    %178 = vector.shape_cast %177 : vector<1x64x128xbf16> to vector<64x128xbf16>
    %cst_101 = arith.constant dense<0.000000e+00> : vector<16x128xf32>
    %179 = tpu.matmul %176, %178, %cst_101 {dimension_numbers = #tpu.dot_dimension_numbers<[1], [0], [0], [1], [0, 0, 1, 1], [], []>} : vector<16x64xbf16>, vector<64x128xbf16>, vector<16x128xf32> -> vector<16x128xf32>
    %180 = arith.addf %174, %179 : vector<16x128xf32>
    %181 = vector.extract_strided_slice %71 {offsets = [18, 0, 0], sizes = [1, 16, 64], strides = [1, 1, 1]} : vector<25x16x64xbf16> to vector<1x16x64xbf16>
    %182 = vector.shape_cast %181 : vector<1x16x64xbf16> to vector<16x64xbf16>
    %c18 = arith.constant 18 : index
    %c0_102 = arith.constant 0 : index
    %c0_103 = arith.constant 0 : index
    %183 = vector.load %arg6[%c18, %c0_102, %c0_103] : memref<25x64x128xbf16, #tpu.memory_space<vmem>>, vector<1x64x128xbf16>
    %184 = vector.shape_cast %183 : vector<1x64x128xbf16> to vector<64x128xbf16>
    %cst_104 = arith.constant dense<0.000000e+00> : vector<16x128xf32>
    %185 = tpu.matmul %182, %184, %cst_104 {dimension_numbers = #tpu.dot_dimension_numbers<[1], [0], [0], [1], [0, 0, 1, 1], [], []>} : vector<16x64xbf16>, vector<64x128xbf16>, vector<16x128xf32> -> vector<16x128xf32>
    %186 = arith.addf %180, %185 : vector<16x128xf32>
    %187 = vector.extract_strided_slice %71 {offsets = [19, 0, 0], sizes = [1, 16, 64], strides = [1, 1, 1]} : vector<25x16x64xbf16> to vector<1x16x64xbf16>
    %188 = vector.shape_cast %187 : vector<1x16x64xbf16> to vector<16x64xbf16>
    %c19 = arith.constant 19 : index
    %c0_105 = arith.constant 0 : index
    %c0_106 = arith.constant 0 : index
    %189 = vector.load %arg6[%c19, %c0_105, %c0_106] : memref<25x64x128xbf16, #tpu.memory_space<vmem>>, vector<1x64x128xbf16>
    %190 = vector.shape_cast %189 : vector<1x64x128xbf16> to vector<64x128xbf16>
    %cst_107 = arith.constant dense<0.000000e+00> : vector<16x128xf32>
    %191 = tpu.matmul %188, %190, %cst_107 {dimension_numbers = #tpu.dot_dimension_numbers<[1], [0], [0], [1], [0, 0, 1, 1], [], []>} : vector<16x64xbf16>, vector<64x128xbf16>, vector<16x128xf32> -> vector<16x128xf32>
    %192 = arith.addf %186, %191 : vector<16x128xf32>
    %193 = vector.extract_strided_slice %71 {offsets = [20, 0, 0], sizes = [1, 16, 64], strides = [1, 1, 1]} : vector<25x16x64xbf16> to vector<1x16x64xbf16>
    %194 = vector.shape_cast %193 : vector<1x16x64xbf16> to vector<16x64xbf16>
    %c20 = arith.constant 20 : index
    %c0_108 = arith.constant 0 : index
    %c0_109 = arith.constant 0 : index
    %195 = vector.load %arg6[%c20, %c0_108, %c0_109] : memref<25x64x128xbf16, #tpu.memory_space<vmem>>, vector<1x64x128xbf16>
    %196 = vector.shape_cast %195 : vector<1x64x128xbf16> to vector<64x128xbf16>
    %cst_110 = arith.constant dense<0.000000e+00> : vector<16x128xf32>
    %197 = tpu.matmul %194, %196, %cst_110 {dimension_numbers = #tpu.dot_dimension_numbers<[1], [0], [0], [1], [0, 0, 1, 1], [], []>} : vector<16x64xbf16>, vector<64x128xbf16>, vector<16x128xf32> -> vector<16x128xf32>
    %198 = arith.addf %192, %197 : vector<16x128xf32>
    %199 = vector.extract_strided_slice %71 {offsets = [21, 0, 0], sizes = [1, 16, 64], strides = [1, 1, 1]} : vector<25x16x64xbf16> to vector<1x16x64xbf16>
    %200 = vector.shape_cast %199 : vector<1x16x64xbf16> to vector<16x64xbf16>
    %c21 = arith.constant 21 : index
    %c0_111 = arith.constant 0 : index
    %c0_112 = arith.constant 0 : index
    %201 = vector.load %arg6[%c21, %c0_111, %c0_112] : memref<25x64x128xbf16, #tpu.memory_space<vmem>>, vector<1x64x128xbf16>
    %202 = vector.shape_cast %201 : vector<1x64x128xbf16> to vector<64x128xbf16>
    %cst_113 = arith.constant dense<0.000000e+00> : vector<16x128xf32>
    %203 = tpu.matmul %200, %202, %cst_113 {dimension_numbers = #tpu.dot_dimension_numbers<[1], [0], [0], [1], [0, 0, 1, 1], [], []>} : vector<16x64xbf16>, vector<64x128xbf16>, vector<16x128xf32> -> vector<16x128xf32>
    %204 = arith.addf %198, %203 : vector<16x128xf32>
    %205 = vector.extract_strided_slice %71 {offsets = [22, 0, 0], sizes = [1, 16, 64], strides = [1, 1, 1]} : vector<25x16x64xbf16> to vector<1x16x64xbf16>
    %206 = vector.shape_cast %205 : vector<1x16x64xbf16> to vector<16x64xbf16>
    %c22 = arith.constant 22 : index
    %c0_114 = arith.constant 0 : index
    %c0_115 = arith.constant 0 : index
    %207 = vector.load %arg6[%c22, %c0_114, %c0_115] : memref<25x64x128xbf16, #tpu.memory_space<vmem>>, vector<1x64x128xbf16>
    %208 = vector.shape_cast %207 : vector<1x64x128xbf16> to vector<64x128xbf16>
    %cst_116 = arith.constant dense<0.000000e+00> : vector<16x128xf32>
    %209 = tpu.matmul %206, %208, %cst_116 {dimension_numbers = #tpu.dot_dimension_numbers<[1], [0], [0], [1], [0, 0, 1, 1], [], []>} : vector<16x64xbf16>, vector<64x128xbf16>, vector<16x128xf32> -> vector<16x128xf32>
    %210 = arith.addf %204, %209 : vector<16x128xf32>
    %211 = vector.extract_strided_slice %71 {offsets = [23, 0, 0], sizes = [1, 16, 64], strides = [1, 1, 1]} : vector<25x16x64xbf16> to vector<1x16x64xbf16>
    %212 = vector.shape_cast %211 : vector<1x16x64xbf16> to vector<16x64xbf16>
    %c23 = arith.constant 23 : index
    %c0_117 = arith.constant 0 : index
    %c0_118 = arith.constant 0 : index
    %213 = vector.load %arg6[%c23, %c0_117, %c0_118] : memref<25x64x128xbf16, #tpu.memory_space<vmem>>, vector<1x64x128xbf16>
    %214 = vector.shape_cast %213 : vector<1x64x128xbf16> to vector<64x128xbf16>
    %cst_119 = arith.constant dense<0.000000e+00> : vector<16x128xf32>
    %215 = tpu.matmul %212, %214, %cst_119 {dimension_numbers = #tpu.dot_dimension_numbers<[1], [0], [0], [1], [0, 0, 1, 1], [], []>} : vector<16x64xbf16>, vector<64x128xbf16>, vector<16x128xf32> -> vector<16x128xf32>
    %216 = arith.addf %210, %215 : vector<16x128xf32>
    %217 = vector.extract_strided_slice %71 {offsets = [24, 0, 0], sizes = [1, 16, 64], strides = [1, 1, 1]} : vector<25x16x64xbf16> to vector<1x16x64xbf16>
    %218 = vector.shape_cast %217 : vector<1x16x64xbf16> to vector<16x64xbf16>
    %c24 = arith.constant 24 : index
    %c0_120 = arith.constant 0 : index
    %c0_121 = arith.constant 0 : index
    %219 = vector.load %arg6[%c24, %c0_120, %c0_121] : memref<25x64x128xbf16, #tpu.memory_space<vmem>>, vector<1x64x128xbf16>
    %220 = vector.shape_cast %219 : vector<1x64x128xbf16> to vector<64x128xbf16>
    %cst_122 = arith.constant dense<0.000000e+00> : vector<16x128xf32>
    %221 = tpu.matmul %218, %220, %cst_122 {dimension_numbers = #tpu.dot_dimension_numbers<[1], [0], [0], [1], [0, 0, 1, 1], [], []>} : vector<16x64xbf16>, vector<64x128xbf16>, vector<16x128xf32> -> vector<16x128xf32>
    %222 = arith.addf %216, %221 : vector<16x128xf32>
    %c0_123 = arith.constant 0 : index
    %c0_124 = arith.constant 0 : index
    %223 = vector.load %arg7[%c0_123, %c0_124] : memref<1x128xf32, #tpu.memory_space<vmem>>, vector<1x128xf32>
    %224 = vector.broadcast %223 : vector<1x128xf32> to vector<16x128xf32>
    %225 = arith.addf %222, %224 : vector<16x128xf32>
    %cst_125 = arith.constant 0.000000e+00 : f32
    %226 = vector.broadcast %cst_125 : f32 to vector<16x128xf32>
    %227 = arith.maximumf %225, %226 : vector<16x128xf32>
    %228 = arith.truncf %227 : vector<16x128xf32> to vector<16x128xbf16>
    %c0_126 = arith.constant 0 : index
    %c0_127 = arith.constant 0 : index
    %229 = vector.load %arg8[%c0_126, %c0_127] : memref<128x10xbf16, #tpu.memory_space<vmem>>, vector<128x10xbf16>
    %cst_128 = arith.constant dense<0.000000e+00> : vector<16x10xf32>
    %230 = tpu.matmul %228, %229, %cst_128 {dimension_numbers = #tpu.dot_dimension_numbers<[1], [0], [0], [1], [0, 0, 1, 1], [], []>} : vector<16x128xbf16>, vector<128x10xbf16>, vector<16x10xf32> -> vector<16x10xf32>
    %c0_129 = arith.constant 0 : index
    %c0_130 = arith.constant 0 : index
    %231 = vector.load %arg9[%c0_129, %c0_130] : memref<1x10xf32, #tpu.memory_space<vmem>>, vector<1x10xf32>
    %232 = vector.broadcast %231 : vector<1x10xf32> to vector<16x10xf32>
    %233 = arith.addf %230, %232 : vector<16x10xf32>
    %cst_131 = arith.constant dense<0xFF800000> : vector<16xf32>
    %234 = vector.multi_reduction <maximumf>, %233, %cst_131 [1] : vector<16x10xf32> to vector<16xf32>
    %235 = vector.shape_cast %234 : vector<16xf32> to vector<16x1xf32>
    %236 = vector.broadcast %235 : vector<16x1xf32> to vector<16x10xf32>
    %237 = arith.subf %233, %236 : vector<16x10xf32>
    %238 = math.exp %237 : vector<16x10xf32>
    %cst_132 = arith.constant dense<0.000000e+00> : vector<16xf32>
    %239 = vector.multi_reduction <add>, %238, %cst_132 [1] : vector<16x10xf32> to vector<16xf32>
    %240 = vector.shape_cast %239 : vector<16xf32> to vector<16x1xf32>
    %241 = math.log %240 : vector<16x1xf32>
    %242 = vector.broadcast %241 : vector<16x1xf32> to vector<16x10xf32>
    %243 = arith.subf %237, %242 : vector<16x10xf32>
    %c0_133 = arith.constant 0 : index
    %c0_134 = arith.constant 0 : index
    %244 = vector.load %arg10[%c0_133, %c0_134] : memref<16x10xf32, #tpu.memory_space<vmem>>, vector<16x10xf32>
    tpu.vector_store %arg10[%c0_133, %c0_134], %243 {strides = array<i32>} : memref<16x10xf32, #tpu.memory_space<vmem>>, vector<16x10xf32>,
    return
  }
  func.func @transform_0(%arg0: i32) -> (i32, i32) {
    %c0_i32 = arith.constant 0 : i32
    %c0_i32_0 = arith.constant 0 : i32
    return %arg0, %c0_i32 : i32, i32
  }
  func.func @transform_1(%arg0: i32) -> (i32, i32) {
    %c0_i32 = arith.constant 0 : i32
    %c0_i32_0 = arith.constant 0 : i32
    %c0_i32_1 = arith.constant 0 : i32
    return %c0_i32, %c0_i32_0 : i32, i32
  }
  func.func @transform_2(%arg0: i32) -> (i32, i32) {
    %c0_i32 = arith.constant 0 : i32
    %c0_i32_0 = arith.constant 0 : i32
    %c0_i32_1 = arith.constant 0 : i32
    return %c0_i32, %c0_i32_0 : i32, i32
  }
  func.func @transform_3(%arg0: i32) -> (i32, i32, i32) {
    %c0_i32 = arith.constant 0 : i32
    %c0_i32_0 = arith.constant 0 : i32
    %c0_i32_1 = arith.constant 0 : i32
    %c0_i32_2 = arith.constant 0 : i32
    return %c0_i32, %c0_i32_0, %c0_i32_1 : i32, i32, i32
  }
  func.func @transform_4(%arg0: i32) -> (i32, i32) {
    %c0_i32 = arith.constant 0 : i32
    %c0_i32_0 = arith.constant 0 : i32
    %c0_i32_1 = arith.constant 0 : i32
    return %c0_i32, %c0_i32_0 : i32, i32
  }
  func.func @transform_5(%arg0: i32) -> (i32, i32, i32) {
    %c0_i32 = arith.constant 0 : i32
    %c0_i32_0 = arith.constant 0 : i32
    %c0_i32_1 = arith.constant 0 : i32
    %c0_i32_2 = arith.constant 0 : i32
    return %c0_i32, %c0_i32_0, %c0_i32_1 : i32, i32, i32
  }
  func.func @transform_6(%arg0: i32) -> (i32, i32) {
    %c0_i32 = arith.constant 0 : i32
    %c0_i32_0 = arith.constant 0 : i32
    %c0_i32_1 = arith.constant 0 : i32
    return %c0_i32, %c0_i32_0 : i32, i32
  }
  func.func @transform_7(%arg0: i32) -> (i32, i32) {
    %c0_i32 = arith.constant 0 : i32
    %c0_i32_0 = arith.constant 0 : i32
    %c0_i32_1 = arith.constant 0 : i32
    return %c0_i32, %c0_i32_0 : i32, i32
  }
  func.func @transform_8(%arg0: i32) -> (i32, i32) {
    %c0_i32 = arith.constant 0 : i32
    %c0_i32_0 = arith.constant 0 : i32
    %c0_i32_1 = arith.constant 0 : i32
    return %c0_i32, %c0_i32_0 : i32, i32
  }
  func.func @transform_9(%arg0: i32) -> (i32, i32) {
    %c0_i32 = arith.constant 0 : i32
    %c0_i32_0 = arith.constant 0 : i32
    return %arg0, %c0_i32 : i32, i32
  }
}

</mosaic_0001>

<bundles_post_ra>
// kernel: net_forward.1
= control target key start
LH: loop header
LB: loop body
LE: loop exit
PB: predicated region body
PF: predicated region fallthrough
CT: control target
= control target key end

     0   :  { %vm535_vm0 = vcmask 1043456   ;;  %vm536_vm1 = vcmask 1044480   ;;  %v6210_v2 = vmov 65535   ;;  %vm387_vm2 = vcmask 72704   ;;  %s8127_s1 = inlined_call_operand.vmem [shape: bf16[9,32], index: 1, kind: input, shape index: {}]   ;;  %s8128_s2 = inlined_call_operand.vmem [shape: f32[1,32], index: 2, kind: input, shape index: {}]   ;;  %s8129_s0 = inlined_call_operand.vmem [shape: bf16[784,9], index: 0, kind: input, shape index: {}]   ;;  %s8130_s3 = inlined_call_operand.vmem [shape: bf16[9,32,64], index: 3, kind: input, shape index: {}]   ;;  %s8131_s5 = inlined_call_operand.vmem [shape: bf16[25,64,128], index: 5, kind: input, shape index: {}]   ;;  %s8132_s4 = inlined_call_operand.vmem [shape: f32[1,64], index: 4, kind: input, shape index: {}]   ;;  %s8133_s7 = inlined_call_operand.vmem [shape: bf16[128,10], index: 7, kind: input, shape index: {}]   ;;  %s8134_s6 = inlined_call_operand.vmem [shape: f32[1,128], index: 6, kind: input, shape index: {}]   ;;  %s8135_s8 = inlined_call_operand.vmem [shape: f32[1,10], index: 8, kind: input, shape index: {}]   ;;  %s8136_s9 = inlined_call_operand.vmem [shape: f32[16,10], index: 9, kind: output, shape index: {}]  }
   0x1   :  { %v4988_v0 = vld [vmem:[%s8127_s1] sm:$0xf]  ;;  %v6066_v1 = vld [vmem:[%s8127_s1] sm:$0x10]  ;;  %v537_v3 = vsel %vm535_vm0, 4294967295, %v6210_v2  ;;  %v6018_v8 = vld [vmem:[%s8129_s0 + $0x8] sm:$0xff] }
   0x2   :  { %v4989_v4 = vor.u32 %v6066_v1, %v4988_v0  ;;  %v538_v5 = vsel %vm536_vm1, %v537_v3, 0  ;;  %v6017_v7 = vld [vmem:[%s8129_s0] sm:$0xff]  ;;  %v6019_v9 = vld [vmem:[%s8129_s0 + $0x10] sm:$0xff]  ;;  %v6020_v10 = vld [vmem:[%s8129_s0 + $0x18] sm:$0xff]  ;;  %vm1138_vm3 = vcmask 261120   ;;  %vm3293_vm4 = vcmask 523264  }
   0x3   :  { %v6021_v11 = vld [vmem:[%s8129_s0 + $0x20] sm:$0xff]  ;;  %v6022_v12 = vld [vmem:[%s8129_s0 + $0x28] sm:$0xff]  ;;  %v6023_v13 = vld [vmem:[%s8129_s0 + $0x30] sm:$0xff]  ;;  %vm4759_vm5 = vcmask 80896  }
   0x4   :  { %v540_v6 = vand.u32 %v4989_v4, %v538_v5  ;;  %v6068_v14 = vld [vmem:[%s8130_s3 + $0x8] sm:$0xff]  ;;  %v6067_v15 = vld [vmem:[%s8130_s3] sm:$0xff]  ;;  %v6024_v16 = vld [vmem:[%s8129_s0 + $0x38] sm:$0xff] }
   0x5   :  { %1406 = vmatpush.bf16.msra.mxu2 %v6068_v14  ;;  %v6070_v17 = vld [vmem:[%s8130_s3 + $0x18] sm:$0xff]  ;;  %v6069_v18 = vld [vmem:[%s8130_s3 + $0x10] sm:$0xff]  ;;  %v6314_v19 = vld [vmem:[%s8128_s2] ss:$0 sm:$0xff] }
   0x6   :  { %549 = vmatpush.bf16.msra.mxu0 %v540_v6  ;;  %1220 = vmatpush.bf16.msra.mxu1 %v6070_v17  ;;  %v6025_v20 = vld [vmem:[%s8129_s0 + $0x40] sm:$0xff]  ;;  %v6026_v31 = vld [vmem:[%s8129_s0 + $0x48] sm:$0xff]  ;;  %v6027_v43 = vld [vmem:[%s8129_s0 + $0x50] sm:$0xff] }
   0x7   :  { %6193 = vmatpush.bf16.msra.mxu3 %v6070_v17  ;;  %v6028_v55 = vld [vmem:[%s8129_s0 + $0x58] sm:$0xff]  ;;  %v6029_v3 = vld [vmem:[%s8129_s0 + $0x60] sm:$0xff] }
   0x9   :  { %4990 = vmatmul.msk.bf16.vlgmr.msra.gmra.mxu0 %vm387_vm2, %v6017_v7  ;;  %1407 = vmatpush.bf16.msra.mxu2 %v6067_v15  ;;  %v6030_v15 = vld [vmem:[%s8129_s0 + $0x68] sm:$0xff] }
   0xa   :  { %1221 = vmatpush.bf16.msra.mxu1 %v6069_v18 }
   0xb   :  { %6194 = vmatpush.bf16.msra.mxu3 %v6069_v18 }
  0x19   :  { %4991 = vmatmul.msk.bf16.gmra.mxu0 %vm387_vm2, %v6018_v8 }
  0x29   :  { %4992 = vmatmul.msk.bf16.gmra.mxu0 %vm387_vm2, %v6019_v9 }
  0x39   :  { %4993 = vmatmul.msk.bf16.gmra.mxu0 %vm387_vm2, %v6020_v10 }
  0x49   :  { %4994 = vmatmul.msk.bf16.gmra.mxu0 %vm387_vm2, %v6021_v11 }
  0x59   :  { %4995 = vmatmul.msk.bf16.gmra.mxu0 %vm387_vm2, %v6022_v12 }
  0x69   :  { %4996 = vmatmul.msk.bf16.gmra.mxu0 %vm387_vm2, %v6023_v13 }
  0x79   :  { %4997 = vmatmul.msk.bf16.gmra.mxu0 %vm387_vm2, %v6024_v16 }
  0x86   :  { %v551_v21 = vpop.f32.mrf.mxu0 }
  0x87   :  { %v552_v22 = vadd.f32 %v6314_v19, %v551_v21 }
  0x89   :  { %4998 = vmatmul.msk.bf16.gmra.mxu0 %vm387_vm2, %v6025_v20  ;;  %v796_v23 = vmax.f32 %v552_v22, 0.0 }
  0x8b   :  { %v894_v26 = vpack.c.bf16 %v796_v23, %v796_v23 }
  0x8d   :  { %v1358_v29 = vunpack.c.l.b16 %v894_v26 }
  0x8e   :  { %v553_v24 = vpop.f32.mrf.mxu0 }
  0x8f   :  { %v554_v25 = vadd.f32 %v6314_v19, %v553_v24 }
  0x91   :  { %v797_v27 = vmax.f32 %v554_v25, 0.0 }
  0x93   :  { %v895_v28 = vpack.c.bf16 %v797_v27, %v797_v27 }
  0x95   :  { %v1359_v30 = vunpack.c.l.b16 %v895_v28  ;;  %v6031_v28 = vld [vmem:[%s8129_s0 + $0x70] sm:$0xff] }
  0x96   :  { %v556_v32 = vpop.f32.mrf.mxu0 }
  0x97   :  { %v1368_v33 = vpack.c.b16 %v1359_v30, %v1358_v29  ;;  %v557_v34 = vadd.f32 %v6314_v19, %v556_v32 }
  0x99   :  { %4999 = vmatmul.msk.bf16.gmra.mxu0 %vm387_vm2, %v6026_v31  ;;  %5084 = vmatmul.msk.bf16.vlgmr.msra.gmra.mxu2 %vm1138_vm3, %v1368_v33  ;;  %v798_v35 = vmax.f32 %v557_v34, 0.0 }
  0x9b   :  { %v896_v38 = vpack.c.bf16 %v798_v35, %v798_v35 }
  0x9d   :  { %v1051_v41 = vunpack.c.l.b16 %v896_v38 }
  0x9e   :  { %v558_v36 = vpop.f32.mrf.mxu0 }
  0x9f   :  { %v559_v37 = vadd.f32 %v6314_v19, %v558_v36 }
  0xa1   :  { %v799_v39 = vmax.f32 %v559_v37, 0.0 }
  0xa3   :  { %v897_v40 = vpack.c.bf16 %v799_v39, %v799_v39 }
  0xa5   :  { %v1052_v42 = vunpack.c.l.b16 %v897_v40  ;;  %v6032_v40 = vld [vmem:[%s8129_s0 + $0x78] sm:$0xff] }
  0xa6   :  { %v561_v44 = vpop.f32.mrf.mxu0 }
  0xa7   :  { %v1101_v45 = vpack.c.b16 %v1052_v42, %v1051_v41  ;;  %v562_v46 = vadd.f32 %v6314_v19, %v561_v44 }
  0xa9   :  { %5000 = vmatmul.msk.bf16.gmra.mxu0 %vm387_vm2, %v6027_v43  ;;  %5051 = vmatmul.msk.bf16.vlgmr.msra.gmra.mxu1 %vm1138_vm3, %v1101_v45  ;;  %v800_v47 = vmax.f32 %v562_v46, 0.0 }
  0xaa   :  { %5085 = vmatmul.msk.bf16.gmra.mxu2 %vm1138_vm3, %v1101_v45 }
  0xab   :  { %v898_v50 = vpack.c.bf16 %v800_v47, %v800_v47 }
  0xad   :  { %v1053_v53 = vunpack.c.l.b16 %v898_v50 }
  0xae   :  { %v563_v48 = vpop.f32.mrf.mxu0 }
  0xaf   :  { %v564_v49 = vadd.f32 %v6314_v19, %v563_v48 }
  0xb1   :  { %v801_v51 = vmax.f32 %v564_v49, 0.0 }
  0xb3   :  { %v899_v52 = vpack.c.bf16 %v801_v51, %v801_v51 }
  0xb5   :  { %v1054_v54 = vunpack.c.l.b16 %v899_v52  ;;  %v6033_v52 = vld [vmem:[%s8129_s0 + $0x80] sm:$0xff] }
  0xb6   :  { %v566_v56 = vpop.f32.mrf.mxu0 }
  0xb7   :  { %v6340_v57 = vpack.c.b16 %v1054_v54, %v1053_v53  ;;  %v567_v58 = vadd.f32 %v6314_v19, %v566_v56 }
  0xb9   :  { %5001 = vmatmul.msk.bf16.gmra.mxu0 %vm387_vm2, %v6028_v55  ;;  %5052 = vmatmul.msk.bf16.gmra.mxu1 %vm1138_vm3, %v6340_v57  ;;  %v802_v59 = vmax.f32 %v567_v58, 0.0 }
  0xba   :  { %5086 = vmatmul.msk.bf16.gmra.mxu2 %vm1138_vm3, %v6340_v57 }
  0xbb   :  { %v900_v62 = vpack.c.bf16 %v802_v59, %v802_v59 }
  0xbd   :  { %v1055_v1 = vunpack.c.l.b16 %v900_v62 }
  0xbe   :  { %v568_v60 = vpop.f32.mrf.mxu0 }
  0xbf   :  { %v569_v61 = vadd.f32 %v6314_v19, %v568_v60 }
  0xc1   :  { %v803_v63 = vmax.f32 %v569_v61, 0.0 }
  0xc3   :  { %v901_v0 = vpack.c.bf16 %v803_v63, %v803_v63 }
  0xc5   :  { %v1056_v2 = vunpack.c.l.b16 %v901_v0 }
  0xc6   :  { %v571_v4 = vpop.f32.mrf.mxu0 }
  0xc7   :  { %v6352_v5 = vpack.c.b16 %v1056_v2, %v1055_v1  ;;  %v572_v6 = vadd.f32 %v6314_v19, %v571_v4  ;;  %v6034_v1 = vld [vmem:[%s8129_s0 + $0x88] sm:$0xff] }
  0xc9   :  { %5002 = vmatmul.msk.bf16.gmra.mxu0 %vm387_vm2, %v6029_v3  ;;  %5053 = vmatmul.msk.bf16.gmra.mxu1 %vm1138_vm3, %v6352_v5  ;;  %v804_v7 = vmax.f32 %v572_v6, 0.0 }
  0xca   :  { %5087 = vmatmul.msk.bf16.gmra.mxu2 %vm1138_vm3, %v6352_v5 }
  0xcb   :  { %v902_v10 = vpack.c.bf16 %v804_v7, %v804_v7 }
  0xcd   :  { %v1057_v13 = vunpack.c.l.b16 %v902_v10 }
  0xce   :  { %v573_v8 = vpop.f32.mrf.mxu0 }
  0xcf   :  { %v574_v9 = vadd.f32 %v6314_v19, %v573_v8 }
  0xd1   :  { %v805_v11 = vmax.f32 %v574_v9, 0.0 }
  0xd3   :  { %v903_v12 = vpack.c.bf16 %v805_v11, %v805_v11 }
  0xd5   :  { %v1058_v14 = vunpack.c.l.b16 %v903_v12 }
  0xd6   :  { %v576_v16 = vpop.f32.mrf.mxu0 }
  0xd7   :  { %v6364_v17 = vpack.c.b16 %v1058_v14, %v1057_v13  ;;  %v577_v18 = vadd.f32 %v6314_v19, %v576_v16  ;;  %v6035_v16 = vld [vmem:[%s8129_s0 + $0x90] sm:$0xff] }
  0xd9   :  { %5003 = vmatmul.msk.bf16.gmra.mxu0 %vm387_vm2, %v6030_v15  ;;  %5054 = vmatmul.msk.bf16.gmra.mxu1 %vm1138_vm3, %v6364_v17  ;;  %v806_v20 = vmax.f32 %v577_v18, 0.0 }
  0xda   :  { %5088 = vmatmul.msk.bf16.gmra.mxu2 %vm1138_vm3, %v6364_v17 }
  0xdb   :  { %v904_v23 = vpack.c.bf16 %v806_v20, %v806_v20 }
  0xdd   :  { %v1059_v26 = vunpack.c.l.b16 %v904_v23 }
  0xde   :  { %v578_v21 = vpop.f32.mrf.mxu0 }
  0xdf   :  { %v579_v22 = vadd.f32 %v6314_v19, %v578_v21 }
  0xe1   :  { %v807_v24 = vmax.f32 %v579_v22, 0.0 }
  0xe3   :  { %v905_v25 = vpack.c.bf16 %v807_v24, %v807_v24 }
  0xe5   :  { %v1060_v27 = vunpack.c.l.b16 %v905_v25 }
  0xe6   :  { %v581_v29 = vpop.f32.mrf.mxu0 }
  0xe7   :  { %v6376_v30 = vpack.c.b16 %v1060_v27, %v1059_v26  ;;  %v582_v31 = vadd.f32 %v6314_v19, %v581_v29 }
  0xe9   :  { %5004 = vmatmul.msk.bf16.gmra.mxu0 %vm387_vm2, %v6031_v28  ;;  %5055 = vmatmul.msk.bf16.gmra.mxu1 %vm1138_vm3, %v6376_v30  ;;  %v808_v32 = vmax.f32 %v582_v31, 0.0 }
  0xeb   :  { %v906_v35 = vpack.c.bf16 %v808_v32, %v808_v32 }
  0xed   :  { %v1549_v38 = vunpack.c.l.b16 %v906_v35 }
  0xee   :  { %v583_v33 = vpop.f32.mrf.mxu0 }
  0xef   :  { %v584_v34 = vadd.f32 %v6314_v19, %v583_v33 }
  0xf1   :  { %v809_v36 = vmax.f32 %v584_v34, 0.0 }
  0xf3   :  { %v907_v37 = vpack.c.bf16 %v809_v36, %v809_v36  ;;  %v6036_v36 = vld [vmem:[%s8129_s0 + $0x98] sm:$0xff] }
  0xf5   :  { %v1550_v39 = vunpack.c.l.b16 %v907_v37 }
  0xf6   :  { %v586_v41 = vpop.f32.mrf.mxu0 }
  0xf7   :  { %v6386_v42 = vpack.c.b16 %v1550_v39, %v1549_v38  ;;  %v587_v43 = vadd.f32 %v6314_v19, %v586_v41 }
  0xf9   :  { %5005 = vmatmul.msk.bf16.gmra.mxu0 %vm387_vm2, %v6032_v40  ;;  %v810_v44 = vmax.f32 %v587_v43, 0.0 }
  0xfb   :  { %v908_v47 = vpack.c.bf16 %v810_v44, %v810_v44 }
  0xfd   :  { %v1360_v50 = vunpack.c.l.b16 %v908_v47 }
  0xfe   :  { %v588_v45 = vpop.f32.mrf.mxu0 }
  0xff   :  { %v589_v46 = vadd.f32 %v6314_v19, %v588_v45 }
 0x101   :  { %v811_v48 = vmax.f32 %v589_v46, 0.0 }
 0x103   :  { %v909_v49 = vpack.c.bf16 %v811_v48, %v811_v48 }
 0x105   :  { %v1361_v51 = vunpack.c.l.b16 %v909_v49 }
 0x106   :  { %v591_v53 = vpop.f32.mrf.mxu0 }
 0x107   :  { %v6394_v54 = vpack.c.b16 %v1361_v51, %v1360_v50  ;;  %v592_v55 = vadd.f32 %v6314_v19, %v591_v53  ;;  %v6037_v53 = vld [vmem:[%s8129_s0 + $0xa0] sm:$0xff] }
 0x109   :  { %5006 = vmatmul.msk.bf16.gmra.mxu0 %vm387_vm2, %v6033_v52  ;;  %5089 = vmatmul.msk.bf16.gmra.mxu2 %vm1138_vm3, %v6394_v54  ;;  %v812_v56 = vmax.f32 %v592_v55, 0.0 }
 0x10b   :  { %v910_v60 = vpack.c.bf16 %v812_v56, %v812_v56 }
 0x10d   :  { %v1061_v63 = vunpack.c.l.b16 %v910_v60 }
 0x10e   :  { %v593_v58 = vpop.f32.mrf.mxu0 }
 0x10f   :  { %v594_v59 = vadd.f32 %v6314_v19, %v593_v58 }
 0x111   :  { %v813_v61 = vmax.f32 %v594_v59, 0.0 }
 0x113   :  { %v911_v62 = vpack.c.bf16 %v813_v61, %v813_v61 }
 0x115   :  { %v1062_v0 = vunpack.c.l.b16 %v911_v62 }
 0x116   :  { %v596_v2 = vpop.f32.mrf.mxu0 }
 0x117   :  { %v6404_v3 = vpack.c.b16 %v1062_v0, %v1061_v63  ;;  %v597_v4 = vadd.f32 %v6314_v19, %v596_v2 }
 0x119   :  { %5007 = vmatmul.msk.bf16.gmra.mxu0 %vm387_vm2, %v6034_v1  ;;  %5056 = vmatmul.msk.bf16.gmra.mxu1 %vm1138_vm3, %v6404_v3  ;;  %v814_v7 = vmax.f32 %v597_v4, 0.0 }
 0x11a   :  { %5090 = vmatmul.msk.bf16.gmra.mxu2 %vm1138_vm3, %v6404_v3 }
 0x11b   :  { %v912_v10 = vpack.c.bf16 %v814_v7, %v814_v7 }
 0x11c   :  { %v1409_v6 = vpop.f32.mrf.mxu2 }
 0x11d   :  { %v1063_v14 = vunpack.c.l.b16 %v912_v10  ;;  %v6038_v10 = vld [vmem:[%s8129_s0 + $0xa8] sm:$0xff] }
 0x11e   :  { %v598_v8 = vpop.f32.mrf.mxu0 }
 0x11f   :  { %v599_v9 = vadd.f32 %v6314_v19, %v598_v8 }
 0x121   :  { %v815_v11 = vmax.f32 %v599_v9, 0.0 }
 0x123   :  { %v913_v12 = vpack.c.bf16 %v815_v11, %v815_v11 }
 0x124   :  { %v6413_v13 = vpop.f32.mrf.mxu2 }
 0x125   :  { %v1064_v15 = vunpack.c.l.b16 %v913_v12 }
 0x126   :  { %v601_v18 = vpop.f32.mrf.mxu0  ;;  %v1223_v20 = vpop.f32.mrf.mxu1 }
 0x127   :  { %v6418_v21 = vpack.c.b16 %v1064_v15, %v1063_v14  ;;  %v6420_v22 = vadd.f32 %v1409_v6, %v1223_v20  ;;  %v602_v23 = vadd.f32 %v6314_v19, %v601_v18 }
 0x129   :  { %8159 = vst [vmem:[#allocation2_spill] sm:$0xff] %v6418_v21  ;;  %5008 = vmatmul.msk.bf16.gmra.mxu0 %vm387_vm2, %v6035_v16  ;;  %5057 = vmatmul.msk.bf16.gmra.mxu1 %vm1138_vm3, %v6418_v21  ;;  %v816_v24 = vmax.f32 %v602_v23, 0.0 }
 0x12a   :  { %5091 = vmatmul.msk.bf16.gmra.mxu2 %vm1138_vm3, %v6418_v21 }
 0x12b   :  { %v914_v29 = vpack.c.bf16 %v816_v24, %v816_v24 }
 0x12d   :  { %v1414_v25 = vpop.f32.mrf.mxu2  ;;  %v1065_v33 = vunpack.c.l.b16 %v914_v29 }
 0x12e   :  { %v603_v26 = vpop.f32.mrf.mxu0  ;;  %v6428_v27 = vpop.f32.mrf.mxu1 }
 0x12f   :  { %v604_v28 = vadd.f32 %v6314_v19, %v603_v26 }
 0x131   :  { %v817_v31 = vmax.f32 %v604_v28, 0.0 }
 0x133   :  { %v915_v32 = vpack.c.bf16 %v817_v31, %v817_v31 }
 0x135   :  { %v1066_v34 = vunpack.c.l.b16 %v915_v32  ;;  %v6431_v35 = vpop.f32.mrf.mxu2 }
 0x136   :  { %v606_v37 = vpop.f32.mrf.mxu0  ;;  %v1228_v38 = vpop.f32.mrf.mxu1 }
 0x137   :  { %v6436_v39 = vpack.c.b16 %v1066_v34, %v1065_v33  ;;  %v6438_v40 = vadd.f32 %v1414_v25, %v1228_v38  ;;  %v607_v41 = vadd.f32 %v6314_v19, %v606_v37  ;;  %v6039_v34 = vld [vmem:[%s8129_s0 + $0xb0] sm:$0xff] }
 0x139   :  { %8160 = vst [vmem:[#allocation3_spill] sm:$0xff] %v6436_v39  ;;  %5009 = vmatmul.msk.bf16.gmra.mxu0 %vm387_vm2, %v6036_v36  ;;  %5058 = vmatmul.msk.bf16.gmra.mxu1 %vm1138_vm3, %v6436_v39  ;;  %v818_v43 = vmax.f32 %v607_v41, 0.0 }
 0x13a   :  { %5092 = vmatmul.msk.bf16.gmra.mxu2 %vm1138_vm3, %v6436_v39 }
 0x13b   :  { %v916_v48 = vpack.c.bf16 %v818_v43, %v818_v43 }
 0x13d   :  { %v1419_v44 = vpop.f32.mrf.mxu2  ;;  %v1067_v51 = vunpack.c.l.b16 %v916_v48 }
 0x13e   :  { %v608_v45 = vpop.f32.mrf.mxu0  ;;  %v6446_v46 = vpop.f32.mrf.mxu1 }
 0x13f   :  { %v609_v47 = vadd.f32 %v6314_v19, %v608_v45 }
 0x141   :  { %v819_v49 = vmax.f32 %v609_v47, 0.0 }
 0x143   :  { %v917_v50 = vpack.c.bf16 %v819_v49, %v819_v49 }
 0x145   :  { %v1068_v52 = vunpack.c.l.b16 %v917_v50  ;;  %v6454_v59 = vpop.f32.mrf.mxu2 }
 0x146   :  { %v611_v55 = vpop.f32.mrf.mxu0  ;;  %v1233_v56 = vpop.f32.mrf.mxu1 }
 0x147   :  { %v6452_v58 = vpack.c.b16 %v1068_v52, %v1067_v51  ;;  %v6456_v60 = vadd.f32 %v1419_v44, %v1233_v56  ;;  %v612_v61 = vadd.f32 %v6314_v19, %v611_v55 }
 0x149   :  { %8161 = vst [vmem:[#allocation4_spill] sm:$0xff] %v6452_v58  ;;  %5010 = vmatmul.msk.bf16.gmra.mxu0 %vm387_vm2, %v6037_v53  ;;  %5059 = vmatmul.msk.bf16.gmra.mxu1 %vm1138_vm3, %v6452_v58  ;;  %v820_v62 = vmax.f32 %v612_v61, 0.0  ;;  %v6040_v53 = vld [vmem:[%s8129_s0 + $0xb8] sm:$0xff] }
 0x14a   :  { %5093 = vmatmul.msk.bf16.gmra.mxu2 %vm1138_vm3, %v6452_v58 }
 0x14b   :  { %v918_v2 = vpack.c.bf16 %v820_v62, %v820_v62 }
 0x14d   :  { %v1424_v4 = vpop.f32.mrf.mxu2  ;;  %v1069_v8 = vunpack.c.l.b16 %v918_v2 }
 0x14e   :  { %v613_v63 = vpop.f32.mrf.mxu0  ;;  %v6464_v0 = vpop.f32.mrf.mxu1 }
 0x14f   :  { %v614_v1 = vadd.f32 %v6314_v19, %v613_v63 }
 0x151   :  { %v821_v6 = vmax.f32 %v614_v1, 0.0 }
 0x153   :  { %v919_v7 = vpack.c.bf16 %v821_v6, %v821_v6 }
 0x155   :  { %v1070_v9 = vunpack.c.l.b16 %v919_v7  ;;  %v6478_v18 = vpop.f32.mrf.mxu2 }
 0x156   :  { %v616_v11 = vpop.f32.mrf.mxu0  ;;  %v1238_v12 = vpop.f32.mrf.mxu1 }
 0x157   :  { %v6470_v14 = vpack.c.b16 %v1070_v9, %v1069_v8  ;;  %v6472_v15 = vadd.f32 %v1424_v4, %v1238_v12  ;;  %v617_v16 = vadd.f32 %v6314_v19, %v616_v11 }
 0x159   :  { %8162 = vst [vmem:[#allocation5_spill] sm:$0xff] %v6470_v14  ;;  %5011 = vmatmul.msk.bf16.gmra.mxu0 %vm387_vm2, %v6038_v10  ;;  %5060 = vmatmul.msk.bf16.gmra.mxu1 %vm1138_vm3, %v6470_v14  ;;  %v822_v20 = vmax.f32 %v617_v16, 0.0  ;;  %v6041_v10 = vld [vmem:[%s8129_s0 + $0xc0] sm:$0xff] }
 0x15b   :  { %v920_v26 = vpack.c.bf16 %v822_v20, %v822_v20 }
 0x15d   :  { %v1551_v31 = vunpack.c.l.b16 %v920_v26  ;;  %v1429_v32 = vpop.f32.mrf.mxu2 }
 0x15e   :  { %v618_v23 = vpop.f32.mrf.mxu0  ;;  %v6480_v24 = vpop.f32.mrf.mxu1 }
 0x15f   :  { %v619_v25 = vadd.f32 %v6314_v19, %v618_v23 }
 0x161   :  { %v823_v28 = vmax.f32 %v619_v25, 0.0 }
 0x163   :  { %v921_v29 = vpack.c.bf16 %v823_v28, %v823_v28 }
 0x165   :  { %v1552_v33 = vunpack.c.l.b16 %v921_v29  ;;  %v6503_v7 = vpop.f32.mrf.mxu2 }
 0x166   :  { %v621_v36 = vpop.f32.mrf.mxu0  ;;  %v1243_v37 = vpop.f32.mrf.mxu1 }
 0x167   :  { %v6486_v38 = vadd.f32 %v1429_v32, %v1243_v37  ;;  %v6488_v41 = vpack.c.b16 %v1552_v33, %v1551_v31  ;;  %v622_v43 = vadd.f32 %v6314_v19, %v621_v36  ;;  %v6042_v37 = vld [vmem:[%s8129_s0 + $0xc8] sm:$0xff] }
 0x169   :  { %5012 = vmatmul.msk.bf16.gmra.mxu0 %vm387_vm2, %v6039_v34  ;;  %v824_v44 = vmax.f32 %v622_v43, 0.0 }
 0x16b   :  { %v922_v48 = vpack.c.bf16 %v824_v44, %v824_v44 }
 0x16d   :  { %v1362_v51 = vunpack.c.l.b16 %v922_v48 }
 0x16e   :  { %v623_v45 = vpop.f32.mrf.mxu0  ;;  %v6516_v25 = vpop.f32.mrf.mxu1 }
 0x16f   :  { %v624_v47 = vadd.f32 %v6314_v19, %v623_v45 }
 0x171   :  { %v825_v49 = vmax.f32 %v624_v47, 0.0 }
 0x173   :  { %v923_v50 = vpack.c.bf16 %v825_v49, %v825_v49 }
 0x175   :  { %v1363_v52 = vunpack.c.l.b16 %v923_v50 }
 0x176   :  { %v626_v55 = vpop.f32.mrf.mxu0 }
 0x177   :  { %v6496_v56 = vpack.c.b16 %v1363_v52, %v1362_v51  ;;  %v627_v61 = vadd.f32 %v6314_v19, %v626_v55 }
 0x179   :  { %5013 = vmatmul.msk.bf16.gmra.mxu0 %vm387_vm2, %v6040_v53  ;;  %5094 = vmatmul.msk.bf16.gmra.mxu2 %vm1138_vm3, %v6496_v56  ;;  %v826_v62 = vmax.f32 %v627_v61, 0.0 }
 0x17b   :  { %v924_v2 = vpack.c.bf16 %v826_v62, %v826_v62 }
 0x17d   :  { %v1071_v8 = vunpack.c.l.b16 %v924_v2 }
 0x17e   :  { %v628_v63 = vpop.f32.mrf.mxu0 }
 0x17f   :  { %v629_v1 = vadd.f32 %v6314_v19, %v628_v63 }
 0x181   :  { %v827_v4 = vmax.f32 %v629_v1, 0.0 }
 0x183   :  { %v925_v6 = vpack.c.bf16 %v827_v4, %v827_v4  ;;  %v6043_v4 = vld [vmem:[%s8129_s0 + $0xd0] sm:$0xff] }
 0x185   :  { %v1072_v9 = vunpack.c.l.b16 %v925_v6 }
 0x186   :  { %v631_v11 = vpop.f32.mrf.mxu0 }
 0x187   :  { %v6508_v12 = vpack.c.b16 %v1072_v9, %v1071_v8  ;;  %v632_v16 = vadd.f32 %v6314_v19, %v631_v11 }
 0x189   :  { %8163 = vst [vmem:[#allocation6_spill] sm:$0xff] %v6508_v12  ;;  %5014 = vmatmul.msk.bf16.gmra.mxu0 %vm387_vm2, %v6041_v10  ;;  %5061 = vmatmul.msk.bf16.gmra.mxu1 %vm1138_vm3, %v6508_v12  ;;  %v828_v23 = vmax.f32 %v632_v16, 0.0 }
 0x18a   :  { %5095 = vmatmul.msk.bf16.gmra.mxu2 %vm1138_vm3, %v6508_v12 }
 0x18b   :  { %v926_v29 = vpack.c.bf16 %v828_v23, %v828_v23 }
 0x18c   :  { %v1434_v20 = vpop.f32.mrf.mxu2 }
 0x18d   :  { %v1073_v34 = vunpack.c.l.b16 %v926_v29 }
 0x18e   :  { %v633_v26 = vpop.f32.mrf.mxu0 }
 0x18f   :  { %v634_v28 = vadd.f32 %v6314_v19, %v633_v26 }
 0x191   :  { %v829_v31 = vmax.f32 %v634_v28, 0.0 }
 0x193   :  { %v927_v32 = vpack.c.bf16 %v829_v31, %v829_v31 }
 0x194   :  { %v6519_v33 = vpop.f32.mrf.mxu2 }
 0x195   :  { %v1074_v36 = vunpack.c.l.b16 %v927_v32 }
 0x196   :  { %v636_v43 = vpop.f32.mrf.mxu0  ;;  %v1248_v44 = vpop.f32.mrf.mxu1 }
 0x197   :  { %v6524_v45 = vpack.c.b16 %v1074_v36, %v1073_v34  ;;  %v6526_v47 = vadd.f32 %v1434_v20, %v1248_v44  ;;  %v637_v48 = vadd.f32 %v6314_v19, %v636_v43 }
 0x199   :  { %5015 = vmatmul.msk.bf16.gmra.mxu0 %vm387_vm2, %v6042_v37  ;;  %5062 = vmatmul.msk.bf16.gmra.mxu1 %vm1138_vm3, %v6524_v45  ;;  %v830_v49 = vmax.f32 %v637_v48, 0.0  ;;  %v6044_v37 = vld [vmem:[%s8129_s0 + $0xd8] sm:$0xff] }
 0x19a   :  { %5096 = vmatmul.msk.bf16.gmra.mxu2 %vm1138_vm3, %v6524_v45 }
 0x19b   :  { %v928_v55 = vpack.c.bf16 %v830_v49, %v830_v49 }
 0x19d   :  { %v1439_v50 = vpop.f32.mrf.mxu2  ;;  %v1075_v63 = vunpack.c.l.b16 %v928_v55 }
 0x19e   :  { %v638_v51 = vpop.f32.mrf.mxu0  ;;  %v6534_v52 = vpop.f32.mrf.mxu1 }
 0x19f   :  { %v639_v53 = vadd.f32 %v6314_v19, %v638_v51 }
 0x1a1   :  { %v831_v61 = vmax.f32 %v639_v53, 0.0 }
 0x1a3   :  { %v929_v62 = vpack.c.bf16 %v831_v61, %v831_v61 }
 0x1a5   :  { %v1076_v1 = vunpack.c.l.b16 %v929_v62  ;;  %v6537_v2 = vpop.f32.mrf.mxu2 }
 0x1a6   :  { %8164 = vst [vmem:[#allocation7_spill] sm:$0xff] %v6537_v2  ;;  %v641_v6 = vpop.f32.mrf.mxu0  ;;  %v1253_v8 = vpop.f32.mrf.mxu1 }
 0x1a7   :  { %v6542_v9 = vpack.c.b16 %v1076_v1, %v1075_v63  ;;  %v6544_v10 = vadd.f32 %v1439_v50, %v1253_v8  ;;  %v642_v11 = vadd.f32 %v6314_v19, %v641_v6 }
 0x1a9   :  { %5016 = vmatmul.msk.bf16.gmra.mxu0 %vm387_vm2, %v6043_v4  ;;  %5063 = vmatmul.msk.bf16.gmra.mxu1 %vm1138_vm3, %v6542_v9  ;;  %v832_v16 = vmax.f32 %v642_v11, 0.0 }
 0x1aa   :  { %5097 = vmatmul.msk.bf16.gmra.mxu2 %vm1138_vm3, %v6542_v9 }
 0x1ab   :  { %v930_v29 = vpack.c.bf16 %v832_v16, %v832_v16  ;;  %v6045_v16 = vld [vmem:[%s8129_s0 + $0xe0] sm:$0xff] }
 0x1ad   :  { %v1444_v20 = vpop.f32.mrf.mxu2  ;;  %v1077_v34 = vunpack.c.l.b16 %v930_v29 }
 0x1ae   :  { %v643_v23 = vpop.f32.mrf.mxu0  ;;  %v6552_v26 = vpop.f32.mrf.mxu1 }
 0x1af   :  { %v644_v28 = vadd.f32 %v6314_v19, %v643_v23 }
 0x1b1   :  { %v833_v31 = vmax.f32 %v644_v28, 0.0 }
 0x1b3   :  { %v931_v32 = vpack.c.bf16 %v833_v31, %v833_v31 }
 0x1b5   :  { %v1078_v36 = vunpack.c.l.b16 %v931_v32  ;;  %v6560_v49 = vpop.f32.mrf.mxu2 }
 0x1b6   :  { %v646_v43 = vpop.f32.mrf.mxu0  ;;  %v1258_v44 = vpop.f32.mrf.mxu1  ;;  %8165 = vst [vmem:[#allocation8_spill] sm:$0xff] %v6560_v49 }
 0x1b7   :  { %v6558_v48 = vpack.c.b16 %v1078_v36, %v1077_v34  ;;  %v6562_v50 = vadd.f32 %v1444_v20, %v1258_v44  ;;  %v647_v51 = vadd.f32 %v6314_v19, %v646_v43 }
 0x1b9   :  { %8166 = vst [vmem:[#allocation9_spill] sm:$0xff] %v6562_v50  ;;  %5017 = vmatmul.msk.bf16.gmra.mxu0 %vm387_vm2, %v6044_v37  ;;  %5064 = vmatmul.msk.bf16.gmra.mxu1 %vm1138_vm3, %v6558_v48  ;;  %v834_v53 = vmax.f32 %v647_v51, 0.0 }
 0x1ba   :  { %5098 = vmatmul.msk.bf16.gmra.mxu2 %vm1138_vm3, %v6558_v48 }
 0x1bb   :  { %v932_v63 = vpack.c.bf16 %v834_v53, %v834_v53 }
 0x1bd   :  { %v1449_v1 = vpop.f32.mrf.mxu2  ;;  %v1079_v8 = vunpack.c.l.b16 %v932_v63 }
 0x1be   :  { %v648_v55 = vpop.f32.mrf.mxu0  ;;  %v6570_v61 = vpop.f32.mrf.mxu1 }
 0x1bf   :  { %8167 = vst [vmem:[#allocation10_spill] sm:$0xff] %v6570_v61  ;;  %v649_v62 = vadd.f32 %v6314_v19, %v648_v55 }
 0x1c1   :  { %v835_v4 = vmax.f32 %v649_v62, 0.0 }
 0x1c3   :  { %v933_v6 = vpack.c.bf16 %v835_v4, %v835_v4 }
 0x1c5   :  { %v1080_v11 = vunpack.c.l.b16 %v933_v6  ;;  %v6584_v32 = vpop.f32.mrf.mxu2 }
 0x1c6   :  { %v651_v20 = vpop.f32.mrf.mxu0  ;;  %v1263_v23 = vpop.f32.mrf.mxu1  ;;  %8169 = vst [vmem:[#allocation12_spill] sm:$0xff] %v6584_v32 }
 0x1c7   :  { %v6576_v28 = vpack.c.b16 %v1080_v11, %v1079_v8  ;;  %v6578_v29 = vadd.f32 %v1449_v1, %v1263_v23  ;;  %v652_v31 = vadd.f32 %v6314_v19, %v651_v20  ;;  %v6046_v1 = vld [vmem:[%s8129_s0 + $0xe8] sm:$0xff] }
 0x1c9   :  { %8168 = vst [vmem:[#allocation11_spill] sm:$0xff] %v6578_v29  ;;  %5018 = vmatmul.msk.bf16.gmra.mxu0 %vm387_vm2, %v6045_v16  ;;  %5065 = vmatmul.msk.bf16.gmra.mxu1 %vm1138_vm3, %v6576_v28  ;;  %v836_v34 = vmax.f32 %v652_v31, 0.0 }
 0x1cb   :  { %v934_v44 = vpack.c.bf16 %v836_v34, %v836_v34 }
 0x1cd   :  { %v1553_v55 = vunpack.c.l.b16 %v934_v44  ;;  %v1454_v62 = vpop.f32.mrf.mxu2 }
 0x1ce   :  { %v653_v36 = vpop.f32.mrf.mxu0  ;;  %v6586_v37 = vpop.f32.mrf.mxu1 }
 0x1cf   :  { %8170 = vst [vmem:[#allocation13_spill] sm:$0xff] %v6586_v37  ;;  %v654_v43 = vadd.f32 %v6314_v19, %v653_v36 }
 0x1d1   :  { %v837_v51 = vmax.f32 %v654_v43, 0.0 }
 0x1d3   :  { %v935_v53 = vpack.c.bf16 %v837_v51, %v837_v51 }
 0x1d5   :  { %v1554_v63 = vunpack.c.l.b16 %v935_v53  ;;  %v6047_v53 = vld [vmem:[%s8129_s0 + $0xf0] sm:$0xff] }
 0x1d6   :  { %v656_v4 = vpop.f32.mrf.mxu0  ;;  %v1268_v6 = vpop.f32.mrf.mxu1 }
 0x1d7   :  { %v6592_v8 = vpack.c.b16 %v1554_v63, %v1553_v55  ;;  %v6594_v11 = vadd.f32 %v1454_v62, %v1268_v6  ;;  %v657_v16 = vadd.f32 %v6314_v19, %v656_v4 }
 0x1d9   :  { %8171 = vst [vmem:[#allocation14_spill] sm:$0xff] %v6594_v11  ;;  %5019 = vmatmul.msk.bf16.gmra.mxu0 %vm387_vm2, %v6046_v1  ;;  %v838_v20 = vmax.f32 %v657_v16, 0.0 }
 0x1db   :  { %v936_v34 = vpack.c.bf16 %v838_v20, %v838_v20 }
 0x1dd   :  { %v1364_v44 = vunpack.c.l.b16 %v936_v34 }
 0x1de   :  { %v658_v23 = vpop.f32.mrf.mxu0 }
 0x1df   :  { %v659_v31 = vadd.f32 %v6314_v19, %v658_v23 }
 0x1e1   :  { %v839_v36 = vmax.f32 %v659_v31, 0.0  ;;  %v6609_v31 = vpop.f32.mrf.mxu2 }
 0x1e2   :  { %8172 = vst [vmem:[#allocation15_spill] sm:$0xff] %v6609_v31  ;;  %v6049_v31 = vld [vmem:[%s8129_s0 + $0x100] sm:$0xff] }
 0x1e3   :  { %v937_v43 = vpack.c.bf16 %v839_v36, %v839_v36 }
 0x1e5   :  { %v1365_v51 = vunpack.c.l.b16 %v937_v43  ;;  %v6048_v43 = vld [vmem:[%s8129_s0 + $0xf8] sm:$0xff] }
 0x1e6   :  { %v661_v55 = vpop.f32.mrf.mxu0 }
 0x1e7   :  { %v6602_v62 = vpack.c.b16 %v1365_v51, %v1364_v44  ;;  %v662_v63 = vadd.f32 %v6314_v19, %v661_v55 }
 0x1e9   :  { %5020 = vmatmul.msk.bf16.gmra.mxu0 %vm387_vm2, %v6047_v53  ;;  %5099 = vmatmul.msk.bf16.gmra.mxu2 %vm1138_vm3, %v6602_v62  ;;  %v840_v1 = vmax.f32 %v662_v63, 0.0  ;;  %v6076_v53 = vld [vmem:[%s8130_s3 + $0x48] sm:$0xff] }
 0x1ea   :  { %2047 = vmatpush.bf16.msrb.mxu2 %v6076_v53 }
 0x1eb   :  { %v938_v16 = vpack.c.bf16 %v840_v1, %v840_v1 }
 0x1ed   :  { %v1081_v34 = vunpack.c.l.b16 %v938_v16 }
 0x1ee   :  { %v663_v4 = vpop.f32.mrf.mxu0 }
 0x1ef   :  { %v664_v6 = vadd.f32 %v6314_v19, %v663_v4  ;;  %v6625_v4 = vpop.f32.mrf.mxu1 }
 0x1f0   :  { %8173 = vst [vmem:[#allocation16_spill] sm:$0xff] %v6625_v4  ;;  %v6050_v4 = vld [vmem:[%s8129_s0 + $0x108] sm:$0xff] }
 0x1f1   :  { %v841_v20 = vmax.f32 %v664_v6, 0.0 }
 0x1f3   :  { %v939_v23 = vpack.c.bf16 %v841_v20, %v841_v20 }
 0x1f5   :  { %v1082_v36 = vunpack.c.l.b16 %v939_v23 }
 0x1f6   :  { %v666_v44 = vpop.f32.mrf.mxu0 }
 0x1f7   :  { %v6614_v51 = vpack.c.b16 %v1082_v36, %v1081_v34  ;;  %v667_v55 = vadd.f32 %v6314_v19, %v666_v44 }
 0x1f9   :  { %5021 = vmatmul.msk.bf16.gmra.mxu0 %vm387_vm2, %v6048_v43  ;;  %5066 = vmatmul.msk.bf16.gmra.mxu1 %vm1138_vm3, %v6614_v51  ;;  %v842_v1 = vmax.f32 %v667_v55, 0.0 }
 0x1fa   :  { %5100 = vmatmul.msk.bf16.gmra.mxu2 %vm1138_vm3, %v6614_v51 }
 0x1fb   :  { %v940_v20 = vpack.c.bf16 %v842_v1, %v842_v1  ;;  %v6080_v1 = vld [vmem:[%s8130_s3 + $0x68] sm:$0xff] }
 0x1fc   :  { %v1459_v63 = vpop.f32.mrf.mxu2  ;;  %2497 = vmatpush.bf16.msrb.mxu0 %v6080_v1 }
 0x1fd   :  { %v1083_v43 = vunpack.c.l.b16 %v940_v20 }
 0x1fe   :  { %v668_v6 = vpop.f32.mrf.mxu0 }
 0x1ff   :  { %v669_v16 = vadd.f32 %v6314_v19, %v668_v6  ;;  %v6074_v6 = vld [vmem:[%s8130_s3 + $0x38] sm:$0xff] }
 0x200   :  { %1838 = vmatpush.bf16.msrb.mxu1 %v6074_v6 }
 0x201   :  { %v843_v23 = vmax.f32 %v669_v16, 0.0 }
 0x203   :  { %v941_v34 = vpack.c.bf16 %v843_v23, %v843_v23 }
 0x204   :  { %v6628_v36 = vpop.f32.mrf.mxu2 }
 0x205   :  { %8174 = vst [vmem:[#allocation17_spill] sm:$0xff] %v6628_v36  ;;  %v1084_v44 = vunpack.c.l.b16 %v941_v34 }
 0x206   :  { %v671_v11 = vpop.f32.mrf.mxu0  ;;  %v1273_v53 = vpop.f32.mrf.mxu1 }
 0x207   :  { %v6633_v32 = vpack.c.b16 %v1084_v44, %v1083_v43  ;;  %v6635_v55 = vadd.f32 %v1459_v63, %v1273_v53  ;;  %v672_v16 = vadd.f32 %v6314_v19, %v671_v11 }
 0x209   :  { %8175 = vst [vmem:[#allocation18_spill] sm:$0xff] %v6635_v55  ;;  %5022 = vmatmul.msk.bf16.gmra.mxu0 %vm387_vm2, %v6049_v31  ;;  %5067 = vmatmul.msk.bf16.gmra.mxu1 %vm1138_vm3, %v6633_v32  ;;  %v844_v63 = vmax.f32 %v672_v16, 0.0 }
 0x20a   :  { %5101 = vmatmul.msk.bf16.gmra.mxu2 %vm1138_vm3, %v6633_v32 }
 0x20b   :  { %v942_v44 = vpack.c.bf16 %v844_v63, %v844_v63 }
 0x20d   :  { %v1464_v20 = vpop.f32.mrf.mxu2  ;;  %v1085_v36 = vunpack.c.l.b16 %v942_v44 }
 0x20e   :  { %v673_v23 = vpop.f32.mrf.mxu0  ;;  %v6649_v34 = vpop.f32.mrf.mxu1 }
 0x20f   :  { %8176 = vst [vmem:[#allocation19_spill] sm:$0xff] %v6649_v34  ;;  %v674_v43 = vadd.f32 %v6314_v19, %v673_v23 }
 0x211   :  { %v845_v53 = vmax.f32 %v674_v43, 0.0 }
 0x213   :  { %v943_v11 = vpack.c.bf16 %v845_v53, %v845_v53 }
 0x215   :  { %v1086_v31 = vunpack.c.l.b16 %v943_v11  ;;  %v6652_v55 = vpop.f32.mrf.mxu2 }
 0x216   :  { %8177 = vst [vmem:[#allocation20_spill] sm:$0xff] %v6652_v55  ;;  %v676_v1 = vpop.f32.mrf.mxu0  ;;  %v1278_v6 = vpop.f32.mrf.mxu1 }
 0x217   :  { %v6657_v16 = vpack.c.b16 %v1086_v31, %v1085_v36  ;;  %v6659_v37 = vadd.f32 %v1464_v20, %v1278_v6  ;;  %v677_v34 = vadd.f32 %v6314_v19, %v676_v1 }
 0x219   :  { %8178 = vst [vmem:[#allocation21_spill] sm:$0xff] %v6659_v37  ;;  %5023 = vmatmul.msk.bf16.gmra.mxu0 %vm387_vm2, %v6050_v4  ;;  %5068 = vmatmul.msk.bf16.gmra.mxu1 %vm1138_vm3, %v6657_v16  ;;  %v846_v63 = vmax.f32 %v677_v34, 0.0  ;;  %v6051_v4 = vld [vmem:[%s8129_s0 + $0x110] sm:$0xff] }
 0x21a   :  { %5102 = vmatmul.msk.bf16.gmra.mxu2 %vm1138_vm3, %v6657_v16 }
 0x21b   :  { %v944_v53 = vpack.c.bf16 %v846_v63, %v846_v63 }
 0x21d   :  { %v1469_v23 = vpop.f32.mrf.mxu2  ;;  %v1087_v31 = vunpack.c.l.b16 %v944_v53 }
 0x21e   :  { %v678_v43 = vpop.f32.mrf.mxu0  ;;  %v6667_v44 = vpop.f32.mrf.mxu1 }
 0x21f   :  { %8179 = vst [vmem:[#allocation22_spill] sm:$0xff] %v6667_v44  ;;  %v679_v36 = vadd.f32 %v6314_v19, %v678_v43 }
 0x221   :  { %v847_v20 = vmax.f32 %v679_v36, 0.0 }
 0x223   :  { %v945_v11 = vpack.c.bf16 %v847_v20, %v847_v20 }
 0x225   :  { %v1088_v1 = vunpack.c.l.b16 %v945_v11  ;;  %v6675_v34 = vpop.f32.mrf.mxu2 }
 0x226   :  { %v681_v6 = vpop.f32.mrf.mxu0  ;;  %v1283_v55 = vpop.f32.mrf.mxu1  ;;  %8180 = vst [vmem:[#allocation23_spill] sm:$0xff] %v6675_v34 }
 0x227   :  { %v6673_v37 = vpack.c.b16 %v1088_v1, %v1087_v31  ;;  %v6677_v29 = vadd.f32 %v1469_v23, %v1283_v55  ;;  %v682_v44 = vadd.f32 %v6314_v19, %v681_v6 }
 0x229   :  { %8181 = vst [vmem:[#allocation24_spill] sm:$0xff] %v6677_v29  ;;  %5024 = vmatmul.msk.bf16.gmra.mxu0 %vm387_vm2, %v6051_v4  ;;  %5069 = vmatmul.msk.bf16.gmra.mxu1 %vm1138_vm3, %v6673_v37  ;;  %v848_v63 = vmax.f32 %v682_v44, 0.0  ;;  %v6052_v4 = vld [vmem:[%s8129_s0 + $0x118] sm:$0xff] }
 0x22a   :  { %5103 = vmatmul.msk.bf16.gmra.mxu2 %vm1138_vm3, %v6673_v37 }
 0x22b   :  { %v946_v20 = vpack.c.bf16 %v848_v63, %v848_v63 }
 0x22d   :  { %v1474_v11 = vpop.f32.mrf.mxu2  ;;  %v1089_v31 = vunpack.c.l.b16 %v946_v20 }
 0x22e   :  { %v683_v43 = vpop.f32.mrf.mxu0  ;;  %v6685_v36 = vpop.f32.mrf.mxu1 }
 0x22f   :  { %8182 = vst [vmem:[#allocation25_spill] sm:$0xff] %v6685_v36  ;;  %v684_v53 = vadd.f32 %v6314_v19, %v683_v43 }
 0x231   :  { %v849_v55 = vmax.f32 %v684_v53, 0.0 }
 0x233   :  { %v947_v23 = vpack.c.bf16 %v849_v55, %v849_v55 }
 0x235   :  { %v1090_v1 = vunpack.c.l.b16 %v947_v23  ;;  %v6699_v63 = vpop.f32.mrf.mxu2 }
 0x236   :  { %v686_v6 = vpop.f32.mrf.mxu0  ;;  %v1288_v34 = vpop.f32.mrf.mxu1  ;;  %8184 = vst [vmem:[#allocation27_spill] sm:$0xff] %v6699_v63 }
 0x237   :  { %v6691_v29 = vpack.c.b16 %v1090_v1, %v1089_v31  ;;  %v6693_v44 = vadd.f32 %v1474_v11, %v1288_v34  ;;  %v687_v36 = vadd.f32 %v6314_v19, %v686_v6 }
 0x239   :  { %8183 = vst [vmem:[#allocation26_spill] sm:$0xff] %v6693_v44  ;;  %5025 = vmatmul.msk.bf16.gmra.mxu0 %vm387_vm2, %v6052_v4  ;;  %5070 = vmatmul.msk.bf16.gmra.mxu1 %vm1138_vm3, %v6691_v29  ;;  %v850_v43 = vmax.f32 %v687_v36, 0.0  ;;  %v6053_v4 = vld [vmem:[%s8129_s0 + $0x120] sm:$0xff] }
 0x23b   :  { %v948_v23 = vpack.c.bf16 %v850_v43, %v850_v43 }
 0x23d   :  { %v1555_v34 = vunpack.c.l.b16 %v948_v23  ;;  %v1479_v11 = vpop.f32.mrf.mxu2 }
 0x23e   :  { %v688_v53 = vpop.f32.mrf.mxu0  ;;  %v6701_v20 = vpop.f32.mrf.mxu1 }
 0x23f   :  { %8185 = vst [vmem:[#allocation28_spill] sm:$0xff] %v6701_v20  ;;  %v689_v55 = vadd.f32 %v6314_v19, %v688_v53 }
 0x241   :  { %v851_v31 = vmax.f32 %v689_v55, 0.0 }
 0x243   :  { %v949_v1 = vpack.c.bf16 %v851_v31, %v851_v31 }
 0x245   :  { %v1556_v44 = vunpack.c.l.b16 %v949_v1 }
 0x246   :  { %v691_v6 = vpop.f32.mrf.mxu0  ;;  %v1293_v49 = vpop.f32.mrf.mxu1 }
 0x247   :  { %v6707_v61 = vpack.c.b16 %v1556_v44, %v1555_v34  ;;  %v6709_v36 = vadd.f32 %v1479_v11, %v1293_v49  ;;  %v692_v63 = vadd.f32 %v6314_v19, %v691_v6  ;;  %v6054_v44 = vld [vmem:[%s8129_s0 + $0x128] sm:$0xff] }
 0x249   :  { %8186 = vst [vmem:[#allocation29_spill] sm:$0xff] %v6707_v61  ;;  %5026 = vmatmul.msk.bf16.gmra.mxu0 %vm387_vm2, %v6053_v4  ;;  %v852_v43 = vmax.f32 %v692_v63, 0.0 }
 0x24a   :  { %8187 = vst [vmem:[#allocation30_spill] sm:$0xff] %v6709_v36 }
 0x24b   :  { %v950_v23 = vpack.c.bf16 %v852_v43, %v852_v43 }
 0x24d   :  { %v1366_v20 = vunpack.c.l.b16 %v950_v23  ;;  %v6724_v23 = vpop.f32.mrf.mxu2 }
 0x24e   :  { %v693_v53 = vpop.f32.mrf.mxu0  ;;  %8188 = vst [vmem:[#allocation31_spill] sm:$0xff] %v6724_v23  ;;  %v6056_v23 = vld [vmem:[%s8129_s0 + $0x138] sm:$0xff] }
 0x24f   :  { %v694_v55 = vadd.f32 %v6314_v19, %v693_v53 }
 0x251   :  { %v853_v31 = vmax.f32 %v694_v55, 0.0 }
 0x253   :  { %v951_v1 = vpack.c.bf16 %v853_v31, %v853_v31 }
 0x255   :  { %v1367_v50 = vunpack.c.l.b16 %v951_v1 }
 0x256   :  { %v696_v34 = vpop.f32.mrf.mxu0 }
 0x257   :  { %v6717_v49 = vpack.c.b16 %v1367_v50, %v1366_v20  ;;  %v697_v11 = vadd.f32 %v6314_v19, %v696_v34  ;;  %v6055_v50 = vld [vmem:[%s8129_s0 + $0x130] sm:$0xff]  ;;  %v6734_v34 = vld [vmem:[%s8128_s2] ss:$0 sm:$0xff] }
 0x259   :  { %5027 = vmatmul.msk.bf16.gmra.mxu0 %vm387_vm2, %v6054_v44  ;;  %5104 = vmatmul.msk.bf16.gmra.mxu2 %vm1138_vm3, %v6717_v49  ;;  %v854_v63 = vmax.f32 %v697_v11, 0.0 }
 0x25b   :  { %v952_v43 = vpack.c.bf16 %v854_v63, %v854_v63 }
 0x25d   :  { %v1091_v31 = vunpack.c.l.b16 %v952_v43 }
 0x25e   :  { %v698_v4 = vpop.f32.mrf.mxu0 }
 0x25f   :  { %v699_v6 = vadd.f32 %v6314_v19, %v698_v4  ;;  %v6742_v4 = vpop.f32.mrf.mxu1 }
 0x260   :  { %8189 = vst [vmem:[#allocation32_spill] sm:$0xff] %v6742_v4 }
 0x261   :  { %v855_v53 = vmax.f32 %v699_v6, 0.0 }
 0x263   :  { %v953_v55 = vpack.c.bf16 %v855_v53, %v855_v53 }
 0x265   :  { %v1092_v1 = vunpack.c.l.b16 %v953_v55 }
 0x266   :  { %v701_v20 = vpop.f32.mrf.mxu0 }
 0x267   :  { %v6729_v44 = vpack.c.b16 %v1092_v1, %v1091_v31  ;;  %v702_v19 = vadd.f32 %v6734_v34, %v701_v20 }
 0x269   :  { %5028 = vmatmul.msk.bf16.gmra.mxu0 %vm387_vm2, %v6055_v50  ;;  %5071 = vmatmul.msk.bf16.gmra.mxu1 %vm1138_vm3, %v6729_v44  ;;  %v856_v63 = vmax.f32 %v702_v19, 0.0 }
 0x26a   :  { %5105 = vmatmul.msk.bf16.gmra.mxu2 %vm1138_vm3, %v6729_v44 }
 0x26b   :  { %v954_v53 = vpack.c.bf16 %v856_v63, %v856_v63 }
 0x26c   :  { %v1484_v11 = vpop.f32.mrf.mxu2 }
 0x26d   :  { %v1093_v20 = vunpack.c.l.b16 %v954_v53 }
 0x26e   :  { %v703_v6 = vpop.f32.mrf.mxu0 }
 0x26f   :  { %v704_v43 = vadd.f32 %v6734_v34, %v703_v6 }
 0x271   :  { %v857_v55 = vmax.f32 %v704_v43, 0.0 }
 0x273   :  { %v955_v31 = vpack.c.bf16 %v857_v55, %v857_v55 }
 0x274   :  { %v6745_v1 = vpop.f32.mrf.mxu2 }
 0x275   :  { %8190 = vst [vmem:[#allocation33_spill] sm:$0xff] %v6745_v1  ;;  %v1094_v50 = vunpack.c.l.b16 %v955_v31  ;;  %v6075_v1 = vld [vmem:[%s8130_s3 + $0x40] sm:$0xff] }
 0x276   :  { %v706_v36 = vpop.f32.mrf.mxu0  ;;  %v1298_v61 = vpop.f32.mrf.mxu1  ;;  %2048 = vmatpush.bf16.msrb.mxu2 %v6075_v1 }
 0x277   :  { %v6750_v2 = vpack.c.b16 %v1094_v50, %v1093_v20  ;;  %v6752_v19 = vadd.f32 %v1484_v11, %v1298_v61  ;;  %v707_v4 = vadd.f32 %v6734_v34, %v706_v36 }
 0x279   :  { %8191 = vst [vmem:[#allocation34_spill] sm:$0xff] %v6750_v2  ;;  %5029 = vmatmul.msk.bf16.gmra.mxu0 %vm387_vm2, %v6056_v23  ;;  %5072 = vmatmul.msk.bf16.gmra.mxu1 %vm1138_vm3, %v6750_v2  ;;  %v858_v63 = vmax.f32 %v707_v4, 0.0  ;;  %v6057_v23 = vld [vmem:[%s8129_s0 + $0x140] sm:$0xff]  ;;  %v6073_v4 = vld [vmem:[%s8130_s3 + $0x30] sm:$0xff] }
 0x27a   :  { %8192 = vst [vmem:[#allocation35_spill] sm:$0xff] %v6752_v19  ;;  %5106 = vmatmul.msk.bf16.gmra.mxu2 %vm1138_vm3, %v6750_v2  ;;  %1839 = vmatpush.bf16.msrb.mxu1 %v6073_v4 }
 0x27b   :  { %v956_v31 = vpack.c.bf16 %v858_v63, %v858_v63 }
 0x27d   :  { %v1489_v6 = vpop.f32.mrf.mxu2  ;;  %v1095_v20 = vunpack.c.l.b16 %v956_v31 }
 0x27e   :  { %v708_v43 = vpop.f32.mrf.mxu0  ;;  %v6760_v53 = vpop.f32.mrf.mxu1 }
 0x27f   :  { %8193 = vst [vmem:[#allocation36_spill] sm:$0xff] %v6760_v53  ;;  %v709_v55 = vadd.f32 %v6734_v34, %v708_v43  ;;  %v6071_v53 = vld [vmem:[%s8130_s3 + $0x20] sm:$0xff] }
 0x281   :  { %v859_v61 = vmax.f32 %v709_v55, 0.0 }
 0x283   :  { %v957_v11 = vpack.c.bf16 %v859_v61, %v859_v61 }
 0x285   :  { %v1096_v36 = vunpack.c.l.b16 %v957_v11  ;;  %v6763_v50 = vpop.f32.mrf.mxu2 }
 0x286   :  { %8194 = vst [vmem:[#allocation37_spill] sm:$0xff] %v6763_v50  ;;  %v711_v43 = vpop.f32.mrf.mxu0  ;;  %v1303_v63 = vpop.f32.mrf.mxu1 }
 0x287   :  { %v6774_v55 = vpack.c.b16 %v1096_v36, %v1095_v20  ;;  %v6776_v31 = vadd.f32 %v1489_v6, %v1303_v63  ;;  %v712_v61 = vadd.f32 %v6734_v34, %v711_v43  ;;  %v6072_v20 = vld [vmem:[%s8130_s3 + $0x28] sm:$0xff] }
 0x288   :  { %1597 = vmatpush.bf16.msrb.mxu3 %v6072_v20 }
 0x289   :  { %8195 = vst [vmem:[#allocation38_spill] sm:$0xff] %v6774_v55  ;;  %5030 = vmatmul.msk.bf16.gmra.mxu0 %vm387_vm2, %v6057_v23  ;;  %5073 = vmatmul.msk.bf16.gmra.mxu1 %vm1138_vm3, %v6774_v55  ;;  %v860_v11 = vmax.f32 %v712_v61, 0.0  ;;  %v6058_v61 = vld [vmem:[%s8129_s0 + $0x148] sm:$0xff] }
 0x28a   :  { %8196 = vst [vmem:[#allocation39_spill] sm:$0xff] %v6776_v31  ;;  %5107 = vmatmul.msk.bf16.gmra.mxu2 %vm1138_vm3, %v6774_v55 }
 0x28b   :  { %v958_v4 = vpack.c.bf16 %v860_v11, %v860_v11 }
 0x28c   :  { %1598 = vmatpush.bf16.msrb.mxu3 %v6071_v53 }
 0x28d   :  { %v1494_v50 = vpop.f32.mrf.mxu2  ;;  %v1097_v63 = vunpack.c.l.b16 %v958_v4 }
 0x28e   :  { %v713_v6 = vpop.f32.mrf.mxu0  ;;  %v6787_v36 = vpop.f32.mrf.mxu1 }
 0x28f   :  { %8197 = vst [vmem:[#allocation40_spill] sm:$0xff] %v6787_v36  ;;  %v714_v1 = vadd.f32 %v6734_v34, %v713_v6 }
 0x291   :  { %v861_v23 = vmax.f32 %v714_v1, 0.0 }
 0x293   :  { %v959_v43 = vpack.c.bf16 %v861_v23, %v861_v23 }
 0x295   :  { %v1098_v31 = vunpack.c.l.b16 %v959_v43  ;;  %v6798_v36 = vpop.f32.mrf.mxu2 }
 0x296   :  { %v716_v19 = vpop.f32.mrf.mxu0  ;;  %v1308_v55 = vpop.f32.mrf.mxu1  ;;  %8199 = vst [vmem:[#allocation42_spill] sm:$0xff] %v6798_v36 }
 0x297   :  { %v6796_v2 = vpack.c.b16 %v1098_v31, %v1097_v63  ;;  %v6800_v20 = vadd.f32 %v1494_v50, %v1308_v55  ;;  %v717_v11 = vadd.f32 %v6734_v34, %v716_v19  ;;  %v6059_v63 = vld [vmem:[%s8129_s0 + $0x150] sm:$0xff] }
 0x299   :  { %8198 = vst [vmem:[#allocation41_spill] sm:$0xff] %v6796_v2  ;;  %5031 = vmatmul.msk.bf16.gmra.mxu0 %vm387_vm2, %v6058_v61  ;;  %5074 = vmatmul.msk.bf16.gmra.mxu1 %vm1138_vm3, %v6796_v2  ;;  %v862_v6 = vmax.f32 %v717_v11, 0.0 }
 0x29a   :  { %8200 = vst [vmem:[#allocation43_spill] sm:$0xff] %v6800_v20  ;;  %5108 = vmatmul.msk.bf16.gmra.mxu2 %vm1138_vm3, %v6796_v2 }
 0x29b   :  { %v960_v23 = vpack.c.bf16 %v862_v6, %v862_v6  ;;  %v6078_v6 = vld [vmem:[%s8130_s3 + $0x58] sm:$0xff] }
 0x29d   :  { %v1499_v50 = vpop.f32.mrf.mxu2  ;;  %v1099_v43 = vunpack.c.l.b16 %v960_v23 }
 0x29e   :  { %v718_v1 = vpop.f32.mrf.mxu0  ;;  %v6808_v4 = vpop.f32.mrf.mxu1 }
 0x29f   :  { %8201 = vst [vmem:[#allocation44_spill] sm:$0xff] %v6808_v4  ;;  %v719_v31 = vadd.f32 %v6734_v34, %v718_v1 }
 0x2a1   :  { %v863_v55 = vmax.f32 %v719_v31, 0.0 }
 0x2a3   :  { %v961_v53 = vpack.c.bf16 %v863_v55, %v863_v55 }
 0x2a5   :  { %v1100_v19 = vunpack.c.l.b16 %v961_v53  ;;  %v6829_v1 = vpop.f32.mrf.mxu2 }
 0x2a6   :  { %v721_v61 = vpop.f32.mrf.mxu0  ;;  %v1313_v36 = vpop.f32.mrf.mxu1  ;;  %8203 = vst [vmem:[#allocation46_spill] sm:$0xff] %v6829_v1 }
 0x2a7   :  { %v6814_v20 = vpack.c.b16 %v1100_v19, %v1099_v43  ;;  %v722_v11 = vadd.f32 %v6734_v34, %v721_v61  ;;  %v6817_v2 = vadd.f32 %v1499_v50, %v1313_v36 }
 0x2a9   :  { %8202 = vst [vmem:[#allocation45_spill] sm:$0xff] %v6817_v2  ;;  %5032 = vmatmul.msk.bf16.gmra.mxu0 %vm387_vm2, %v6059_v63  ;;  %5075 = vmatmul.msk.bf16.vlgmr.msra.gmra.mxu3 %vm1138_vm3, %v6814_v20  ;;  %v864_v31 = vmax.f32 %v722_v11, 0.0 }
 0x2aa   :  { %5158 = vmatmul.msk.bf16.vlgmr.msrb.gmra.mxu1 %vm1138_vm3, %v6394_v54  ;;  %5195 = vmatmul.msk.bf16.vlgmr.msrb.gmra.mxu2 %vm1138_vm3, %v6404_v3  ;;  %v6060_v54 = vld [vmem:[%s8129_s0 + $0x158] sm:$0xff] }
 0x2ab   :  { %2256 = vmatpush.bf16.msra.mxu3 %v6078_v6  ;;  %v962_v50 = vpack.c.bf16 %v864_v31, %v864_v31 }
 0x2ad   :  { %v1557_v43 = vunpack.c.l.b16 %v962_v50  ;;  %v1504_v63 = vpop.f32.mrf.mxu2 }
 0x2ae   :  { %v723_v36 = vpop.f32.mrf.mxu0  ;;  %v6831_v23 = vpop.f32.mrf.mxu1 }
 0x2af   :  { %8204 = vst [vmem:[#allocation47_spill] sm:$0xff] %v6831_v23  ;;  %v724_v55 = vadd.f32 %v6734_v34, %v723_v36 }
 0x2b1   :  { %v865_v53 = vmax.f32 %v724_v55, 0.0 }
 0x2b3   :  { %v963_v19 = vpack.c.bf16 %v865_v53, %v865_v53 }
 0x2b5   :  { %v1558_v61 = vunpack.c.l.b16 %v963_v19  ;;  %v6061_v19 = vld [vmem:[%s8129_s0 + $0x160] sm:$0xff] }
 0x2b6   :  { %v726_v2 = vpop.f32.mrf.mxu0  ;;  %v1318_v4 = vpop.f32.mrf.mxu1 }
 0x2b7   :  { %v6837_v1 = vpack.c.b16 %v1558_v61, %v1557_v43  ;;  %v727_v11 = vadd.f32 %v6734_v34, %v726_v2  ;;  %v6840_v6 = vadd.f32 %v1504_v63, %v1318_v4 }
 0x2b9   :  { %8205 = vst [vmem:[#allocation48_spill] sm:$0xff] %v6837_v1  ;;  %5033 = vmatmul.msk.bf16.gmra.mxu0 %vm387_vm2, %v6060_v54  ;;  %5121 = vmatmul.msk.bf16.vlgmr.msrb.gmra.mxu3 %vm1138_vm3, %v6340_v57  ;;  %v866_v31 = vmax.f32 %v727_v11, 0.0 }
 0x2ba   :  { %8206 = vst [vmem:[#allocation49_spill] sm:$0xff] %v6840_v6  ;;  %5159 = vmatmul.msk.bf16.gmra.mxu1 %vm1138_vm3, %v6404_v3  ;;  %5196 = vmatmul.msk.bf16.gmra.mxu2 %vm1138_vm3, %v6418_v21 }
 0x2bb   :  { %v964_v50 = vpack.c.bf16 %v866_v31, %v866_v31 }
 0x2bd   :  { %v1790_v2 = vunpack.c.l.b16 %v964_v50 }
 0x2be   :  { %v728_v36 = vpop.f32.mrf.mxu0 }
 0x2bf   :  { %v729_v55 = vadd.f32 %v6734_v34, %v728_v36 }
 0x2c1   :  { %v867_v53 = vmax.f32 %v729_v55, 0.0 }
 0x2c3   :  { %v965_v4 = vpack.c.bf16 %v867_v53, %v867_v53  ;;  %v6864_v53 = vpop.f32.mrf.mxu2 }
 0x2c4   :  { %8207 = vst [vmem:[#allocation50_spill] sm:$0xff] %v6864_v53 }
 0x2c5   :  { %v1791_v43 = vunpack.c.l.b16 %v965_v4 }
 0x2c6   :  { %v731_v57 = vpop.f32.mrf.mxu0 }
 0x2c7   :  { %v6853_v63 = vpack.c.b16 %v1791_v43, %v1790_v2  ;;  %v732_v3 = vadd.f32 %v6734_v34, %v731_v57 }
 0x2c9   :  { %5034 = vmatmul.msk.bf16.gmra.mxu0 %vm387_vm2, %v6061_v19  ;;  %5122 = vmatmul.msk.bf16.gmra.mxu3 %vm1138_vm3, %v6352_v5  ;;  %v868_v61 = vmax.f32 %v732_v3, 0.0  ;;  %v6062_v5 = vld [vmem:[%s8129_s0 + $0x168] sm:$0xff] }
 0x2ca   :  { %5160 = vmatmul.msk.bf16.gmra.mxu1 %vm1138_vm3, %v6418_v21  ;;  %5197 = vmatmul.msk.bf16.gmra.mxu2 %vm1138_vm3, %v6436_v39 }
 0x2cb   :  { %v966_v11 = vpack.c.bf16 %v868_v61, %v868_v61  ;;  %v6879_v61 = vpop.f32.mrf.mxu1 }
 0x2cc   :  { %8209 = vst [vmem:[#allocation52_spill] sm:$0xff] %v6879_v61 }
 0x2cd   :  { %v1792_v50 = vunpack.c.l.b16 %v966_v11 }
 0x2ce   :  { %v733_v54 = vpop.f32.mrf.mxu0 }
 0x2cf   :  { %v734_v31 = vadd.f32 %v6734_v34, %v733_v54 }
 0x2d1   :  { %v869_v36 = vmax.f32 %v734_v31, 0.0 }
 0x2d3   :  { %v967_v55 = vpack.c.bf16 %v869_v36, %v869_v36 }
 0x2d5   :  { %v1793_v2 = vunpack.c.l.b16 %v967_v55 }
 0x2d6   :  { %v736_v4 = vpop.f32.mrf.mxu0 }
 0x2d7   :  { %v6869_v43 = vpack.c.b16 %v1793_v2, %v1792_v50  ;;  %v737_v19 = vadd.f32 %v6734_v34, %v736_v4 }
 0x2d9   :  { %8208 = vst [vmem:[#allocation51_spill] sm:$0xff] %v6869_v43  ;;  %5035 = vmatmul.msk.bf16.gmra.mxu0 %vm387_vm2, %v6062_v5  ;;  %5123 = vmatmul.msk.bf16.gmra.mxu3 %vm1138_vm3, %v6364_v17  ;;  %v870_v57 = vmax.f32 %v737_v19, 0.0  ;;  %v6063_v17 = vld [vmem:[%s8129_s0 + $0x170] sm:$0xff] }
 0x2da   :  { %5161 = vmatmul.msk.bf16.gmra.mxu1 %vm1138_vm3, %v6436_v39  ;;  %5198 = vmatmul.msk.bf16.gmra.mxu2 %vm1138_vm3, %v6452_v58 }
 0x2db   :  { %v968_v11 = vpack.c.bf16 %v870_v57, %v870_v57 }
 0x2dc   :  { %v1509_v3 = vpop.f32.mrf.mxu2 }
 0x2dd   :  { %v1794_v50 = vunpack.c.l.b16 %v968_v11 }
 0x2de   :  { %v738_v54 = vpop.f32.mrf.mxu0 }
 0x2df   :  { %v739_v31 = vadd.f32 %v6734_v34, %v738_v54 }
 0x2e1   :  { %v871_v36 = vmax.f32 %v739_v31, 0.0 }
 0x2e3   :  { %v969_v55 = vpack.c.bf16 %v871_v36, %v871_v36 }
 0x2e4   :  { %v1511_v2 = vpop.f32.mrf.mxu2 }
 0x2e5   :  { %v1795_v5 = vunpack.c.l.b16 %v969_v55 }
 0x2e6   :  { %v741_v4 = vpop.f32.mrf.mxu0  ;;  %v1323_v53 = vpop.f32.mrf.mxu1 }
 0x2e7   :  { %v6885_v6 = vpack.c.b16 %v1795_v5, %v1794_v50  ;;  %v742_v19 = vadd.f32 %v6734_v34, %v741_v4  ;;  %v6888_v61 = vadd.f32 %v1509_v3, %v1323_v53  ;;  %v6064_v4 = vld [vmem:[%s8129_s0 + $0x178] sm:$0xff] }
 0x2e9   :  { %8210 = vst [vmem:[#allocation53_spill] sm:$0xff] %v6885_v6  ;;  %5036 = vmatmul.msk.bf16.gmra.mxu0 %vm387_vm2, %v6063_v17  ;;  %5124 = vmatmul.msk.bf16.gmra.mxu3 %vm1138_vm3, %v6376_v30  ;;  %v872_v57 = vmax.f32 %v742_v19, 0.0  ;;  %v6079_v19 = vld [vmem:[%s8130_s3 + $0x60] sm:$0xff] }
 0x2ea   :  { %8211 = vst [vmem:[#allocation54_spill] sm:$0xff] %v6888_v61  ;;  %5162 = vmatmul.msk.bf16.gmra.mxu1 %vm1138_vm3, %v6452_v58  ;;  %5199 = vmatmul.msk.bf16.gmra.mxu2 %vm1138_vm3, %v6470_v14 }
 0x2eb   :  { %v970_v36 = vpack.c.bf16 %v872_v57, %v872_v57  ;;  %2498 = vmatpush.bf16.msrb.mxu0 %v6079_v19  ;;  %v6065_v19 = vld [vmem:[%s8129_s0 + $0x180] sm:$0xff] }
 0x2ed   :  { %v1514_v54 = vpop.f32.mrf.mxu2  ;;  %v1796_v55 = vunpack.c.l.b16 %v970_v36 }
 0x2ee   :  { %v743_v11 = vpop.f32.mrf.mxu0  ;;  %v1325_v31 = vpop.f32.mrf.mxu1 }
 0x2ef   :  { %v744_v50 = vadd.f32 %v6734_v34, %v743_v11  ;;  %v6898_v53 = vadd.f32 %v1511_v2, %v1325_v31 }
 0x2f1   :  { %8212 = vst [vmem:[#allocation55_spill] sm:$0xff] %v6898_v53  ;;  %v873_v3 = vmax.f32 %v744_v50, 0.0 }
 0x2f3   :  { %v971_v5 = vpack.c.bf16 %v873_v3, %v873_v3 }
 0x2f5   :  { %v1797_v17 = vunpack.c.l.b16 %v971_v5  ;;  %v1516_v30 = vpop.f32.mrf.mxu2 }
 0x2f6   :  { %v746_v61 = vpop.f32.mrf.mxu0  ;;  %v1328_v23 = vpop.f32.mrf.mxu1 }
 0x2f7   :  { %v6906_v57 = vpack.c.b16 %v1797_v17, %v1796_v55  ;;  %v747_v2 = vadd.f32 %v6734_v34, %v746_v61  ;;  %v6909_v11 = vadd.f32 %v1514_v54, %v1328_v23 }
 0x2f9   :  { %8213 = vst [vmem:[#allocation56_spill] sm:$0xff] %v6906_v57  ;;  %5037 = vmatmul.msk.bf16.gmra.mxu0 %vm387_vm2, %v6064_v4  ;;  %5125 = vmatmul.msk.bf16.gmra.mxu3 %vm1138_vm3, %v6386_v42  ;;  %v874_v31 = vmax.f32 %v747_v2, 0.0 }
 0x2fa   :  { %8214 = vst [vmem:[#allocation57_spill] sm:$0xff] %v6909_v11  ;;  %5163 = vmatmul.msk.bf16.gmra.mxu1 %vm1138_vm3, %v6496_v56  ;;  %5200 = vmatmul.msk.bf16.gmra.mxu2 %vm1138_vm3, %v6508_v12 }
 0x2fb   :  { %v972_v55 = vpack.c.bf16 %v874_v31, %v874_v31 }
 0x2fd   :  { %v1519_v36 = vpop.f32.mrf.mxu2  ;;  %v1798_v5 = vunpack.c.l.b16 %v972_v55 }
 0x2fe   :  { %v748_v50 = vpop.f32.mrf.mxu0  ;;  %v1330_v3 = vpop.f32.mrf.mxu1 }
 0x2ff   :  { %v749_v23 = vadd.f32 %v6734_v34, %v748_v50  ;;  %v6919_v61 = vadd.f32 %v1516_v30, %v1330_v3 }
 0x301   :  { %8215 = vst [vmem:[#allocation58_spill] sm:$0xff] %v6919_v61  ;;  %v875_v54 = vmax.f32 %v749_v23, 0.0 }
 0x303   :  { %v973_v17 = vpack.c.bf16 %v875_v54, %v875_v54 }
 0x305   :  { %v1799_v4 = vunpack.c.l.b16 %v973_v17  ;;  %v1521_v42 = vpop.f32.mrf.mxu2 }
 0x306   :  { %v751_v11 = vpop.f32.mrf.mxu0  ;;  %v1333_v53 = vpop.f32.mrf.mxu1 }
 0x307   :  { %v6924_v2 = vpack.c.b16 %v1799_v4, %v1798_v5  ;;  %v752_v1 = vadd.f32 %v6734_v34, %v751_v11  ;;  %v6927_v31 = vadd.f32 %v1519_v36, %v1333_v53 }
 0x309   :  { %8216 = vst [vmem:[#allocation59_spill] sm:$0xff] %v6927_v31  ;;  %5038 = vmatmul.msk.bf16.gmra.mxu0 %vm387_vm2, %v6065_v19  ;;  %5126 = vmatmul.msk.bf16.gmra.mxu3 %vm1138_vm3, %v6418_v21  ;;  %v876_v30 = vmax.f32 %v752_v1, 0.0 }
 0x30a   :  { %5164 = vmatmul.msk.bf16.gmra.mxu1 %vm1138_vm3, %v6508_v12  ;;  %5201 = vmatmul.msk.bf16.gmra.mxu2 %vm1138_vm3, %v6524_v45 }
 0x30b   :  { %v974_v23 = vpack.c.bf16 %v876_v30, %v876_v30 }
 0x30d   :  { %v1524_v50 = vpop.f32.mrf.mxu2  ;;  %v2023_v54 = vunpack.c.l.b16 %v974_v23 }
 0x30e   :  { %v753_v3 = vpop.f32.mrf.mxu0  ;;  %v1335_v55 = vpop.f32.mrf.mxu1 }
 0x30f   :  { %v754_v11 = vadd.f32 %v6734_v34, %v753_v3  ;;  %v6937_v53 = vadd.f32 %v1521_v42, %v1335_v55 }
 0x311   :  { %8217 = vst [vmem:[#allocation60_spill] sm:$0xff] %v6937_v53  ;;  %v877_v36 = vmax.f32 %v754_v11, 0.0 }
 0x313   :  { %v975_v5 = vpack.c.bf16 %v877_v36, %v877_v36 }
 0x315   :  { %v2024_v17 = vunpack.c.l.b16 %v975_v5  ;;  %v1526_v4 = vpop.f32.mrf.mxu2 }
 0x316   :  { %v756_v19 = vpop.f32.mrf.mxu0  ;;  %v1338_v31 = vpop.f32.mrf.mxu1 }
 0x317   :  { %v6939_v61 = vpack.c.b16 %v2024_v17, %v2023_v54  ;;  %v757_v21 = vadd.f32 %v6734_v34, %v756_v19  ;;  %v6942_v1 = vadd.f32 %v1524_v50, %v1338_v31 }
 0x319   :  { %8218 = vst [vmem:[#allocation61_spill] sm:$0xff] %v6939_v61  ;;  %5127 = vmatmul.msk.bf16.gmra.mxu3 %vm1138_vm3, %v6436_v39  ;;  %5269 = vmatmul.msk.bf16.vlgmr.msrb.gmra.mxu0 %vm1138_vm3, %v6496_v56  ;;  %v878_v42 = vmax.f32 %v757_v21, 0.0 }
 0x31a   :  { %8219 = vst [vmem:[#allocation62_spill] sm:$0xff] %v6942_v1  ;;  %5165 = vmatmul.msk.bf16.gmra.mxu1 %vm1138_vm3, %v6524_v45  ;;  %5202 = vmatmul.msk.bf16.gmra.mxu2 %vm1138_vm3, %v6542_v9 }
 0x31b   :  { %v976_v23 = vpack.c.bf16 %v878_v42, %v878_v42 }
 0x31d   :  { %v1529_v30 = vpop.f32.mrf.mxu2  ;;  %v2232_v36 = vunpack.c.l.b16 %v976_v23 }
 0x31e   :  { %v758_v3 = vpop.f32.mrf.mxu0  ;;  %v1340_v55 = vpop.f32.mrf.mxu1 }
 0x31f   :  { %v759_v31 = vadd.f32 %v6734_v34, %v758_v3  ;;  %v6953_v50 = vadd.f32 %v1526_v4, %v1340_v55 }
 0x321   :  { %8220 = vst [vmem:[#allocation63_spill] sm:$0xff] %v6953_v50  ;;  %v879_v11 = vmax.f32 %v759_v31, 0.0 }
 0x323   :  { %v977_v54 = vpack.c.bf16 %v879_v11, %v879_v11 }
 0x325   :  { %v2233_v5 = vunpack.c.l.b16 %v977_v54  ;;  %v1531_v56 = vpop.f32.mrf.mxu2 }
 0x326   :  { %v761_v17 = vpop.f32.mrf.mxu0 }
 0x327   :  { %v6955_v19 = vpack.c.b16 %v2233_v5, %v2232_v36  ;;  %v762_v1 = vadd.f32 %v6734_v34, %v761_v17  ;;  %v1841_v53 = vpop.f32.mrf.mxu1 }
 0x329   :  { %8221 = vst [vmem:[#allocation64_spill] sm:$0xff] %v6955_v19  ;;  %5128 = vmatmul.msk.bf16.gmra.mxu3 %vm1138_vm3, %v6452_v58  ;;  %5270 = vmatmul.msk.bf16.gmra.mxu0 %vm1138_vm3, %v6508_v12  ;;  %v880_v21 = vmax.f32 %v762_v1, 0.0 }
 0x32a   :  { %5166 = vmatmul.msk.bf16.gmra.mxu1 %vm1138_vm3, %v6542_v9  ;;  %5203 = vmatmul.msk.bf16.gmra.mxu2 %vm1138_vm3, %v6558_v48 }
 0x32b   :  { %v978_v23 = vpack.c.bf16 %v880_v21, %v880_v21 }
 0x32c   :  { %v1343_v4 = vpop.f32.mrf.mxu3 }
 0x32d   :  { %v6966_v42 = vadd.f32 %v1529_v30, %v1343_v4  ;;  %v2050_v3 = vpop.f32.mrf.mxu2  ;;  %v2449_v54 = vunpack.c.l.b16 %v978_v23 }
 0x32e   :  { %v763_v55 = vpop.f32.mrf.mxu0 }
 0x32f   :  { %8222 = vst [vmem:[#allocation65_spill] sm:$0xff] %v6966_v42  ;;  %v764_v31 = vadd.f32 %v6734_v34, %v763_v55  ;;  %v1843_v11 = vpop.f32.mrf.mxu1 }
 0x331   :  { %v881_v36 = vmax.f32 %v764_v31, 0.0 }
 0x333   :  { %v979_v5 = vpack.c.bf16 %v881_v36, %v881_v36 }
 0x334   :  { %v1345_v17 = vpop.f32.mrf.mxu3 }
 0x335   :  { %v2450_v19 = vunpack.c.l.b16 %v979_v5  ;;  %v6969_v50 = vadd.f32 %v1531_v56, %v1345_v17  ;;  %v2052_v58 = vpop.f32.mrf.mxu2  ;;  %v1412_v17 = vadd.f32 %v6413_v13, %v6428_v27 }
 0x336   :  { %v766_v39 = vpop.f32.mrf.mxu0 }
 0x337   :  { %8223 = vst [vmem:[#allocation66_spill] sm:$0xff] %v6969_v50  ;;  %v6971_v12 = vpack.c.b16 %v2450_v19, %v2449_v54  ;;  %v767_v1 = vadd.f32 %v6734_v34, %v766_v39  ;;  %v1846_v30 = vpop.f32.mrf.mxu1 }
 0x339   :  { %8224 = vst [vmem:[#allocation67_spill] sm:$0xff] %v6971_v12  ;;  %5129 = vmatmul.msk.bf16.gmra.mxu3 %vm1138_vm3, %v6470_v14  ;;  %5271 = vmatmul.msk.bf16.gmra.mxu0 %vm1138_vm3, %v6524_v45  ;;  %v882_v56 = vmax.f32 %v767_v1, 0.0 }
 0x33a   :  { %5167 = vmatmul.msk.bf16.gmra.mxu1 %vm1138_vm3, %v6558_v48  ;;  %5204 = vmatmul.msk.bf16.gmra.mxu2 %vm1138_vm3, %v6576_v28 }
 0x33b   :  { %v980_v39 = vpack.c.bf16 %v882_v56, %v882_v56 }
 0x33c   :  { %v1600_v21 = vpop.f32.mrf.mxu3 }
 0x33d   :  { %v1725_v19 = vadd.f32 %v1600_v21, %v6420_v22  ;;  %v2055_v4 = vpop.f32.mrf.mxu2  ;;  %v2451_v50 = vunpack.c.l.b16 %v980_v39 }
 0x33e   :  { %v768_v55 = vpop.f32.mrf.mxu0 }
 0x33f   :  { %v1966_v23 = vadd.f32 %v1841_v53, %v1725_v19  ;;  %v769_v31 = vadd.f32 %v6734_v34, %v768_v55  ;;  %v1848_v36 = vpop.f32.mrf.mxu1 }
 0x341   :  { %v883_v54 = vmax.f32 %v769_v31, 0.0  ;;  %v6984_v5 = vadd.f32 %v2050_v3, %v1966_v23  ;;  %v1417_v31 = vadd.f32 %v6431_v35, %v6446_v46 }
 0x343   :  { %v981_v42 = vpack.c.bf16 %v883_v54, %v883_v54 }
 0x344   :  { %v1602_v14 = vpop.f32.mrf.mxu3 }
 0x345   :  { %v2452_v1 = vunpack.c.l.b16 %v981_v42  ;;  %v1726_v12 = vadd.f32 %v1602_v14, %v1412_v17  ;;  %v2057_v61 = vpop.f32.mrf.mxu2 }
 0x346   :  { %v771_v22 = vpop.f32.mrf.mxu0 }
 0x347   :  { %v6988_v21 = vpack.c.b16 %v2452_v1, %v2451_v50  ;;  %v1967_v56 = vadd.f32 %v1843_v11, %v1726_v12  ;;  %v772_v53 = vadd.f32 %v6734_v34, %v771_v22  ;;  %v1851_v19 = vpop.f32.mrf.mxu1 }
 0x349   :  { %8225 = vst [vmem:[#allocation68_spill] sm:$0xff] %v6988_v21  ;;  %5130 = vmatmul.msk.bf16.gmra.mxu3 %vm1138_vm3, %v6488_v41  ;;  %5272 = vmatmul.msk.bf16.gmra.mxu0 %vm1138_vm3, %v6542_v9  ;;  %v6995_v13 = vadd.f32 %v2052_v58, %v1967_v56  ;;  %v884_v27 = vmax.f32 %v772_v53, 0.0 }
 0x34a   :  { %5168 = vmatmul.msk.bf16.gmra.mxu1 %vm1138_vm3, %v6602_v62  ;;  %5205 = vmatmul.msk.bf16.gmra.mxu2 %vm1138_vm3, %v6614_v51 }
 0x34b   :  { %v982_v3 = vpack.c.bf16 %v884_v27, %v884_v27 }
 0x34c   :  { %v1605_v14 = vpop.f32.mrf.mxu3 }
 0x34d   :  { %v1727_v12 = vadd.f32 %v1605_v14, %v6438_v40  ;;  %v2060_v50 = vpop.f32.mrf.mxu2  ;;  %v2453_v54 = vunpack.c.l.b16 %v982_v3 }
 0x34e   :  { %v773_v42 = vpop.f32.mrf.mxu0 }
 0x34f   :  { %v1968_v11 = vadd.f32 %v1846_v30, %v1727_v12  ;;  %v774_v55 = vadd.f32 %v6734_v34, %v773_v42  ;;  %v1853_v39 = vpop.f32.mrf.mxu1 }
 0x351   :  { %v885_v23 = vmax.f32 %v774_v55, 0.0  ;;  %v7003_v58 = vadd.f32 %v2055_v4, %v1968_v11 }
 0x353   :  { %v983_v17 = vpack.c.bf16 %v885_v23, %v885_v23 }
 0x354   :  { %v1607_v1 = vpop.f32.mrf.mxu3 }
 0x355   :  { %v2454_v22 = vunpack.c.l.b16 %v983_v17  ;;  %v1728_v56 = vadd.f32 %v1607_v1, %v1417_v31  ;;  %v2062_v53 = vpop.f32.mrf.mxu2  ;;  %v1422_v17 = vadd.f32 %v6454_v59, %v6464_v0 }
 0x356   :  { %v776_v40 = vpop.f32.mrf.mxu0 }
 0x357   :  { %v7007_v14 = vpack.c.b16 %v2454_v22, %v2453_v54  ;;  %v1969_v27 = vadd.f32 %v1848_v36, %v1728_v56  ;;  %v777_v30 = vadd.f32 %v6734_v34, %v776_v40  ;;  %v1856_v12 = vpop.f32.mrf.mxu1 }
 0x359   :  { %5131 = vmatmul.msk.bf16.gmra.mxu3 %vm1138_vm3, %v6524_v45  ;;  %5273 = vmatmul.msk.bf16.gmra.mxu0 %vm1138_vm3, %v6558_v48  ;;  %v7014_v35 = vadd.f32 %v2057_v61, %v1969_v27  ;;  %v886_v46 = vmax.f32 %v777_v30, 0.0 }
 0x35a   :  { %5169 = vmatmul.msk.bf16.gmra.mxu1 %vm1138_vm3, %v6614_v51  ;;  %5206 = vmatmul.msk.bf16.gmra.mxu2 %vm1138_vm3, %v6633_v32 }
 0x35b   :  { %v984_v11 = vpack.c.bf16 %v886_v46, %v886_v46 }
 0x35c   :  { %v1610_v4 = vpop.f32.mrf.mxu3 }
 0x35d   :  { %v1729_v36 = vadd.f32 %v1610_v4, %v6456_v60  ;;  %v2065_v42 = vpop.f32.mrf.mxu2  ;;  %v2455_v1 = vunpack.c.l.b16 %v984_v11 }
 0x35e   :  { %v778_v3 = vpop.f32.mrf.mxu0 }
 0x35f   :  { %v1970_v55 = vadd.f32 %v1851_v19, %v1729_v36  ;;  %v779_v23 = vadd.f32 %v6734_v34, %v778_v3  ;;  %v1858_v31 = vpop.f32.mrf.mxu1 }
 0x361   :  { %v887_v54 = vmax.f32 %v779_v23, 0.0  ;;  %v7022_v61 = vadd.f32 %v2060_v50, %v1970_v55  ;;  %v6077_v50 = vld [vmem:[%s8130_s3 + $0x50] sm:$0xff] }
 0x362   :  { %2257 = vmatpush.bf16.msra.mxu3 %v6077_v50 }
 0x363   :  { %v985_v22 = vpack.c.bf16 %v887_v54, %v887_v54 }
 0x364   :  { %v1612_v56 = vpop.f32.mrf.mxu3 }
 0x365   :  { %v2456_v40 = vunpack.c.l.b16 %v985_v22  ;;  %v1730_v27 = vadd.f32 %v1612_v56, %v1422_v17  ;;  %v2067_v30 = vpop.f32.mrf.mxu2  ;;  %v1427_v22 = vadd.f32 %v6478_v18, %v6480_v24 }
 0x366   :  { %v781_v60 = vpop.f32.mrf.mxu0 }
 0x367   :  { %v7026_v4 = vpack.c.b16 %v2456_v40, %v2455_v1  ;;  %v1971_v46 = vadd.f32 %v1853_v39, %v1730_v27  ;;  %v782_v19 = vadd.f32 %v6734_v34, %v781_v60  ;;  %v1861_v36 = vpop.f32.mrf.mxu1 }
 0x369   :  { %5132 = vmatmul.msk.bf16.gmra.mxu3 %vm1138_vm3, %v6542_v9  ;;  %5274 = vmatmul.msk.bf16.gmra.mxu0 %vm1138_vm3, %v6602_v62  ;;  %v7036_v59 = vadd.f32 %v2062_v53, %v1971_v46  ;;  %v888_v0 = vmax.f32 %v782_v19, 0.0 }
 0x36a   :  { %5170 = vmatmul.msk.bf16.gmra.mxu1 %vm1138_vm3, %v6633_v32  ;;  %5207 = vmatmul.msk.bf16.gmra.mxu2 %vm1138_vm3, %v6657_v16 }
 0x36b   :  { %v986_v23 = vpack.c.bf16 %v888_v0, %v888_v0 }
 0x36c   :  { %v1615_v39 = vpop.f32.mrf.mxu3 }
 0x36d   :  { %v1731_v3 = vadd.f32 %v1615_v39, %v6472_v15  ;;  %v2070_v11 = vpop.f32.mrf.mxu2  ;;  %v2457_v56 = vunpack.c.l.b16 %v986_v23 }
 0x36e   :  { %v783_v55 = vpop.f32.mrf.mxu0 }
 0x36f   :  { %v1972_v54 = vadd.f32 %v1856_v12, %v1731_v3  ;;  %v784_v17 = vadd.f32 %v6734_v34, %v783_v55  ;;  %v1863_v62 = vpop.f32.mrf.mxu1 }
 0x371   :  { %v889_v53 = vmax.f32 %v784_v17, 0.0  ;;  %v7044_v1 = vadd.f32 %v2065_v42, %v1972_v54 }
 0x373   :  { %v987_v40 = vpack.c.bf16 %v889_v53, %v889_v53 }
 0x374   :  { %v1617_v27 = vpop.f32.mrf.mxu3 }
 0x375   :  { %v2458_v60 = vunpack.c.l.b16 %v987_v40  ;;  %v1732_v46 = vadd.f32 %v1617_v27, %v1427_v22  ;;  %v2072_v19 = vpop.f32.mrf.mxu2  ;;  %v1432_v40 = vadd.f32 %v6503_v7, %v6516_v25 }
 0x376   :  { %v786_v15 = vpop.f32.mrf.mxu0 }
 0x377   :  { %v7048_v50 = vpack.c.b16 %v2458_v60, %v2457_v56  ;;  %v1973_v0 = vadd.f32 %v1858_v31, %v1732_v46  ;;  %v787_v12 = vadd.f32 %v6734_v34, %v786_v15  ;;  %v1866_v39 = vpop.f32.mrf.mxu1 }
 0x379   :  { %5133 = vmatmul.msk.bf16.gmra.mxu3 %vm1138_vm3, %v6558_v48  ;;  %5275 = vmatmul.msk.bf16.gmra.mxu0 %vm1138_vm3, %v6614_v51  ;;  %v7055_v18 = vadd.f32 %v2067_v30, %v1973_v0  ;;  %v890_v24 = vmax.f32 %v787_v12, 0.0  ;;  %v6084_v30 = vld [vmem:[%s8130_s3 + $0x88] sm:$0xff] }
 0x37a   :  { %5171 = vmatmul.msk.bf16.gmra.mxu1 %vm1138_vm3, %v6657_v16  ;;  %5208 = vmatmul.msk.bf16.gmra.mxu2 %vm1138_vm3, %v6673_v37 }
 0x37b   :  { %v988_v23 = vpack.c.bf16 %v890_v24, %v890_v24  ;;  %2915 = vmatpush.bf16.msra.mxu2 %v6084_v30 }
 0x37c   :  { %v1620_v42 = vpop.f32.mrf.mxu3 }
 0x37d   :  { %v1733_v31 = vadd.f32 %v1620_v42, %v6486_v38  ;;  %v2075_v3 = vpop.f32.mrf.mxu2  ;;  %v2682_v27 = vunpack.c.l.b16 %v988_v23 }
 0x37e   :  { %v788_v55 = vpop.f32.mrf.mxu0 }
 0x37f   :  { %v1974_v54 = vadd.f32 %v1861_v36, %v1733_v31  ;;  %v789_v17 = vadd.f32 %v6734_v34, %v788_v55  ;;  %v1868_v53 = vpop.f32.mrf.mxu1 }
 0x381   :  { %v891_v22 = vmax.f32 %v789_v17, 0.0  ;;  %v7066_v56 = vadd.f32 %v2070_v11, %v1974_v54  ;;  %v6082_v11 = vld [vmem:[%s8130_s3 + $0x78] sm:$0xff] }
 0x382   :  { %2706 = vmatpush.bf16.msra.mxu1 %v6082_v11 }
 0x383   :  { %8226 = vst [vmem:[#allocation69_spill] sm:$0xff] %v7066_v56  ;;  %v989_v38 = vpack.c.bf16 %v891_v22, %v891_v22 }
 0x384   :  { %v1622_v60 = vpop.f32.mrf.mxu3 }
 0x385   :  { %v2683_v46 = vunpack.c.l.b16 %v989_v38  ;;  %v1734_v15 = vadd.f32 %v1622_v60, %v1432_v40  ;;  %v2077_v36 = vpop.f32.mrf.mxu2  ;;  %v1437_v38 = vadd.f32 %v6519_v33, %v6534_v52 }
 0x386   :  { %v791_v0 = vpop.f32.mrf.mxu0 }
 0x387   :  { %v7070_v12 = vpack.c.b16 %v2683_v46, %v2682_v27  ;;  %v1975_v24 = vadd.f32 %v1863_v62, %v1734_v15  ;;  %v792_v42 = vadd.f32 %v6734_v34, %v791_v0  ;;  %v1871_v31 = vpop.f32.mrf.mxu1 }
 0x389   :  { %8227 = vst [vmem:[#allocation70_spill] sm:$0xff] %v7070_v12  ;;  %5134 = vmatmul.msk.bf16.gmra.mxu3 %vm1138_vm3, %v6576_v28  ;;  %5276 = vmatmul.msk.bf16.gmra.mxu0 %vm1138_vm3, %v6633_v32  ;;  %v7080_v7 = vadd.f32 %v2072_v19, %v1975_v24  ;;  %v892_v25 = vmax.f32 %v792_v42, 0.0 }
 0x38a   :  { %5172 = vmatmul.msk.bf16.gmra.mxu1 %vm1138_vm3, %v6673_v37  ;;  %5209 = vmatmul.msk.bf16.gmra.mxu2 %vm1138_vm3, %v6691_v29 }
 0x38b   :  { %8228 = vst [vmem:[#allocation71_spill] sm:$0xff] %v7080_v7  ;;  %v990_v17 = vpack.c.bf16 %v892_v25, %v892_v25 }
 0x38c   :  { %v1625_v62 = vpop.f32.mrf.mxu3 }
 0x38d   :  { %v1735_v55 = vadd.f32 %v1625_v62, %v6526_v47  ;;  %v2080_v23 = vpop.f32.mrf.mxu2  ;;  %v2891_v60 = vunpack.c.l.b16 %v990_v17 }
 0x38e   :  { %v793_v54 = vpop.f32.mrf.mxu0 }
 0x38f   :  { %v1976_v30 = vadd.f32 %v1866_v39, %v1735_v55  ;;  %v794_v22 = vadd.f32 %v6734_v34, %v793_v54  ;;  %v1873_v40 = vpop.f32.mrf.mxu1  ;;  %v8233_v54 = vld [vmem:[#allocation7_spill] sm:$0xff] }
 0x391   :  { %v893_v19 = vmax.f32 %v794_v22, 0.0  ;;  %v7088_v27 = vadd.f32 %v2075_v3, %v1976_v30 }
 0x393   :  { %8229 = vst [vmem:[#allocation72_spill] sm:$0xff] %v7088_v27  ;;  %v991_v46 = vpack.c.bf16 %v893_v19, %v893_v19  ;;  %v8257_v27 = vld [vmem:[#allocation29_spill] sm:$0xff] }
 0x394   :  { %v1627_v15 = vpop.f32.mrf.mxu3 }
 0x395   :  { %v2892_v0 = vunpack.c.l.b16 %v991_v46  ;;  %v1736_v24 = vadd.f32 %v1627_v15, %v1437_v38  ;;  %v2082_v42 = vpop.f32.mrf.mxu2 }
 0x396   :  { %v7105_v3 = vpop.f32.mrf.mxu0 }
 0x397   :  { %v7092_v47 = vpack.c.b16 %v2892_v0, %v2891_v60  ;;  %v1977_v11 = vadd.f32 %v1868_v53, %v1736_v24  ;;  %v1876_v25 = vpop.f32.mrf.mxu1 }
 0x399   :  { %8230 = vst [vmem:[#allocation73_spill] sm:$0xff] %v7092_v47  ;;  %5135 = vmatmul.msk.bf16.gmra.mxu3 %vm1138_vm3, %v6592_v8  ;;  %5277 = vmatmul.msk.bf16.gmra.mxu0 %vm1138_vm3, %v6657_v16  ;;  %v7098_v34 = vadd.f32 %v2077_v36, %v1977_v11  ;;  %v1442_v36 = vadd.f32 %v8233_v54, %v6552_v26  ;;  %v8238_v11 = vld [vmem:[#allocation10_spill] sm:$0xff] }
 0x39a   :  { %5173 = vmatmul.msk.bf16.gmra.mxu1 %vm1138_vm3, %v6717_v49  ;;  %5210 = vmatmul.msk.bf16.gmra.mxu2 %vm1138_vm3, %v6729_v44 }
 0x39b   :  { %8231 = vst [vmem:[#allocation74_spill] sm:$0xff] %v7098_v34 }
 0x39c   :  { %v1630_v33 = vpop.f32.mrf.mxu3 }
 0x39d   :  { %v1737_v52 = vadd.f32 %v1630_v33, %v6544_v10  ;;  %v2085_v39 = vpop.f32.mrf.mxu2  ;;  %v8239_v33 = vld [vmem:[#allocation8_spill] sm:$0xff] }
 0x39e   :  { %v7111_v60 = vpop.f32.mrf.mxu0 }
 0x39f   :  { %v1978_v53 = vadd.f32 %v1871_v31, %v1737_v52  ;;  %v1878_v62 = vpop.f32.mrf.mxu1  ;;  %v8235_v31 = vld [vmem:[#allocation34_spill] sm:$0xff]  ;;  %v1447_v52 = vadd.f32 %v8239_v33, %v8238_v11 }
 0x3a1   :  { %v7107_v55 = vadd.f32 %v2080_v23, %v1978_v53  ;;  %v8236_v23 = vld [vmem:[#allocation9_spill] sm:$0xff] }
 0x3a3   :  { %8232 = vst [vmem:[#allocation75_spill] sm:$0xff] %v7107_v55 }
 0x3a4   :  { %v1632_v17 = vpop.f32.mrf.mxu3 }
 0x3a5   :  { %v1738_v30 = vadd.f32 %v1632_v17, %v1442_v36  ;;  %v2087_v22 = vpop.f32.mrf.mxu2 }
 0x3a6   :  { %v7128_v53 = vpop.f32.mrf.mxu0 }
 0x3a7   :  { %v1979_v19 = vadd.f32 %v1873_v40, %v1738_v30  ;;  %v1881_v38 = vpop.f32.mrf.mxu1 }
 0x3a9   :  { %5136 = vmatmul.msk.bf16.gmra.mxu3 %vm1138_vm3, %v6633_v32  ;;  %5278 = vmatmul.msk.bf16.gmra.mxu0 %vm1138_vm3, %v6673_v37  ;;  %v7117_v10 = vadd.f32 %v2082_v42, %v1979_v19 }
 0x3aa   :  { %5174 = vmatmul.msk.bf16.gmra.mxu1 %vm1138_vm3, %v6729_v44  ;;  %5211 = vmatmul.msk.bf16.gmra.mxu2 %vm1138_vm3, %v8235_v31 }
 0x3ab   :  { %8234 = vst [vmem:[#allocation7_spill] sm:$0xff] %v7117_v10 }
 0x3ac   :  { %v1635_v26 = vpop.f32.mrf.mxu3 }
 0x3ad   :  { %v1739_v40 = vadd.f32 %v1635_v26, %v8236_v23  ;;  %v2090_v46 = vpop.f32.mrf.mxu2  ;;  %v8242_v23 = vld [vmem:[#allocation11_spill] sm:$0xff] }
 0x3ae   :  { %v7140_v26 = vpop.f32.mrf.mxu0 }
 0x3af   :  { %v1980_v15 = vadd.f32 %v1876_v25, %v1739_v40  ;;  %v1883_v0 = vpop.f32.mrf.mxu1 }
 0x3b1   :  { %v7124_v24 = vadd.f32 %v2085_v39, %v1980_v15  ;;  %v8241_v39 = vld [vmem:[#allocation38_spill] sm:$0xff] }
 0x3b3   :  { %8237 = vst [vmem:[#allocation34_spill] sm:$0xff] %v7124_v24 }
 0x3b4   :  { %v1637_v42 = vpop.f32.mrf.mxu3 }
 0x3b5   :  { %v1740_v54 = vadd.f32 %v1637_v42, %v1447_v52  ;;  %v2092_v36 = vpop.f32.mrf.mxu2  ;;  %v8244_v52 = vld [vmem:[#allocation13_spill] sm:$0xff] }
 0x3b6   :  { %v7147_v47 = vpop.f32.mrf.mxu0 }
 0x3b7   :  { %v1981_v17 = vadd.f32 %v1878_v62, %v1740_v54  ;;  %v1886_v30 = vpop.f32.mrf.mxu1 }
 0x3b9   :  { %5137 = vmatmul.msk.bf16.gmra.mxu3 %vm1138_vm3, %v6657_v16  ;;  %5279 = vmatmul.msk.bf16.gmra.mxu0 %vm1138_vm3, %v6717_v49  ;;  %v7134_v25 = vadd.f32 %v2087_v22, %v1981_v17  ;;  %v8245_v49 = vld [vmem:[#allocation12_spill] sm:$0xff] }
 0x3ba   :  { %5175 = vmatmul.msk.bf16.gmra.mxu1 %vm1138_vm3, %v8235_v31  ;;  %5212 = vmatmul.msk.bf16.gmra.mxu2 %vm1138_vm3, %v8241_v39  ;;  %v1452_v22 = vadd.f32 %v8245_v49, %v8244_v52 }
 0x3bb   :  { %8240 = vst [vmem:[#allocation9_spill] sm:$0xff] %v7134_v25 }
 0x3bc   :  { %v1640_v19 = vpop.f32.mrf.mxu3 }
 0x3bd   :  { %v1741_v62 = vadd.f32 %v1640_v19, %v8242_v23  ;;  %v2095_v40 = vpop.f32.mrf.mxu2  ;;  %v8248_v23 = vld [vmem:[#allocation14_spill] sm:$0xff] }
 0x3be   :  { %v7160_v49 = vpop.f32.mrf.mxu0 }
 0x3bf   :  { %v1982_v15 = vadd.f32 %v1881_v38, %v1741_v62  ;;  %v1888_v11 = vpop.f32.mrf.mxu1 }
 0x3c1   :  { %v7143_v33 = vadd.f32 %v2090_v46, %v1982_v15  ;;  %v8247_v46 = vld [vmem:[#allocation41_spill] sm:$0xff] }
 0x3c3   :  { %8243 = vst [vmem:[#allocation10_spill] sm:$0xff] %v7143_v33 }
 0x3c4   :  { %v1642_v42 = vpop.f32.mrf.mxu3 }
 0x3c5   :  { %v1742_v54 = vadd.f32 %v1642_v42, %v1452_v22  ;;  %v2097_v17 = vpop.f32.mrf.mxu2  ;;  %v8250_v42 = vld [vmem:[#allocation16_spill] sm:$0xff] }
 0x3c7   :  { %v1983_v12 = vadd.f32 %v1883_v0, %v1742_v54  ;;  %v1891_v25 = vpop.f32.mrf.mxu1  ;;  %v8251_v54 = vld [vmem:[#allocation15_spill] sm:$0xff] }
 0x3c9   :  { %5138 = vmatmul.msk.bf16.gmra.mxu3 %vm1138_vm3, %v6673_v37  ;;  %5280 = vmatmul.msk.bf16.gmra.mxu0 %vm1138_vm3, %v6729_v44  ;;  %v7153_v38 = vadd.f32 %v2092_v36, %v1983_v12  ;;  %v1457_v12 = vadd.f32 %v8251_v54, %v8250_v42  ;;  %v8255_v54 = vld [vmem:[#allocation19_spill] sm:$0xff] }
 0x3ca   :  { %5176 = vmatmul.msk.bf16.gmra.mxu1 %vm1138_vm3, %v8241_v39  ;;  %5213 = vmatmul.msk.bf16.gmra.mxu2 %vm1138_vm3, %v8247_v46 }
 0x3cb   :  { %8246 = vst [vmem:[#allocation8_spill] sm:$0xff] %v7153_v38 }
 0x3cc   :  { %v1645_v19 = vpop.f32.mrf.mxu3 }
 0x3cd   :  { %v1743_v62 = vadd.f32 %v1645_v19, %v8248_v23  ;;  %v2100_v15 = vpop.f32.mrf.mxu2  ;;  %v8253_v23 = vld [vmem:[#allocation18_spill] sm:$0xff] }
 0x3cf   :  { %v1984_v0 = vadd.f32 %v1886_v30, %v1743_v62  ;;  %v1893_v52 = vpop.f32.mrf.mxu1 }
 0x3d1   :  { %v7162_v22 = vadd.f32 %v2095_v40, %v1984_v0  ;;  %v7176_v40 = vpop.f32.mrf.mxu0 }
 0x3d3   :  { %8249 = vst [vmem:[#allocation38_spill] sm:$0xff] %v7162_v22 }
 0x3d4   :  { %v1647_v36 = vpop.f32.mrf.mxu3 }
 0x3d5   :  { %v1744_v38 = vadd.f32 %v1647_v36, %v1457_v12  ;;  %v2102_v33 = vpop.f32.mrf.mxu2  ;;  %v8256_v12 = vld [vmem:[#allocation17_spill] sm:$0xff] }
 0x3d7   :  { %v1985_v24 = vadd.f32 %v1888_v11, %v1744_v38  ;;  %v1896_v10 = vpop.f32.mrf.mxu1 }
 0x3d9   :  { %5139 = vmatmul.msk.bf16.gmra.mxu3 %vm1138_vm3, %v6691_v29  ;;  %5281 = vmatmul.msk.bf16.gmra.mxu0 %vm1138_vm3, %v8235_v31  ;;  %v7170_v30 = vadd.f32 %v2097_v17, %v1985_v24  ;;  %v1462_v24 = vadd.f32 %v8256_v12, %v8255_v54  ;;  %v7183_v36 = vpop.f32.mrf.mxu0  ;;  %v8261_v12 = vld [vmem:[#allocation22_spill] sm:$0xff] }
 0x3da   :  { %5177 = vmatmul.msk.bf16.gmra.mxu1 %vm1138_vm3, %v8247_v46  ;;  %5214 = vmatmul.msk.bf16.gmra.mxu2 %vm1138_vm3, %v6814_v20 }
 0x3db   :  { %8252 = vst [vmem:[#allocation11_spill] sm:$0xff] %v7170_v30 }
 0x3dc   :  { %v1650_v19 = vpop.f32.mrf.mxu3 }
 0x3dd   :  { %v1745_v11 = vadd.f32 %v1650_v19, %v8253_v23  ;;  %v2105_v38 = vpop.f32.mrf.mxu2  ;;  %v8259_v19 = vld [vmem:[#allocation21_spill] sm:$0xff] }
 0x3df   :  { %v1986_v62 = vadd.f32 %v1891_v25, %v1745_v11  ;;  %v1898_v0 = vpop.f32.mrf.mxu1 }
 0x3e1   :  { %v7179_v42 = vadd.f32 %v2100_v15, %v1986_v62 }
 0x3e3   :  { %8254 = vst [vmem:[#allocation13_spill] sm:$0xff] %v7179_v42 }
 0x3e4   :  { %v1652_v17 = vpop.f32.mrf.mxu3 }
 0x3e5   :  { %v1746_v30 = vadd.f32 %v1652_v17, %v1462_v24  ;;  %v2107_v22 = vpop.f32.mrf.mxu2  ;;  %v8262_v24 = vld [vmem:[#allocation20_spill] sm:$0xff] }
 0x3e7   :  { %v1987_v55 = vadd.f32 %v1893_v52, %v1746_v30  ;;  %v1901_v34 = vpop.f32.mrf.mxu1  ;;  %v7196_v52 = vpop.f32.mrf.mxu0 }
 0x3e9   :  { %5140 = vmatmul.msk.bf16.gmra.mxu3 %vm1138_vm3, %v8257_v27  ;;  %5282 = vmatmul.msk.bf16.gmra.mxu0 %vm1138_vm3, %v8241_v39  ;;  %v7189_v25 = vadd.f32 %v2102_v33, %v1987_v55  ;;  %v1467_v55 = vadd.f32 %v8262_v24, %v8261_v12  ;;  %v8267_v24 = vld [vmem:[#allocation25_spill] sm:$0xff] }
 0x3ea   :  { %5178 = vmatmul.msk.bf16.gmra.mxu1 %vm1138_vm3, %v6853_v63  ;;  %5215 = vmatmul.msk.bf16.gmra.mxu2 %vm1138_vm3, %v6869_v43 }
 0x3eb   :  { %8258 = vst [vmem:[#allocation12_spill] sm:$0xff] %v7189_v25 }
 0x3ec   :  { %v1655_v15 = vpop.f32.mrf.mxu3 }
 0x3ed   :  { %v1747_v23 = vadd.f32 %v1655_v15, %v8259_v19  ;;  %v2110_v11 = vpop.f32.mrf.mxu2  ;;  %v8265_v15 = vld [vmem:[#allocation24_spill] sm:$0xff] }
 0x3ef   :  { %v1988_v30 = vadd.f32 %v1896_v10, %v1747_v23  ;;  %v1903_v62 = vpop.f32.mrf.mxu1  ;;  %v7202_v56 = vpop.f32.mrf.mxu0 }
 0x3f0   :  { %8263 = vst [vmem:[#allocation14_spill] sm:$0xff] %v7202_v56 }
 0x3f1   :  { %v7198_v54 = vadd.f32 %v2105_v38, %v1988_v30 }
 0x3f3   :  { %8260 = vst [vmem:[#allocation41_spill] sm:$0xff] %v7198_v54 }
 0x3f4   :  { %v1657_v33 = vpop.f32.mrf.mxu3 }
 0x3f5   :  { %v1748_v17 = vadd.f32 %v1657_v33, %v1467_v55  ;;  %v2112_v25 = vpop.f32.mrf.mxu2  ;;  %v8268_v55 = vld [vmem:[#allocation23_spill] sm:$0xff] }
 0x3f6   :  { %v1472_v33 = vadd.f32 %v8268_v55, %v8267_v24 }
 0x3f7   :  { %v1989_v42 = vadd.f32 %v1898_v0, %v1748_v17  ;;  %v1906_v7 = vpop.f32.mrf.mxu1  ;;  %v7219_v17 = vpop.f32.mrf.mxu0 }
 0x3f9   :  { %5141 = vmatmul.msk.bf16.gmra.mxu3 %vm1138_vm3, %v8235_v31  ;;  %5283 = vmatmul.msk.bf16.gmra.mxu0 %vm1138_vm3, %v8247_v46  ;;  %v7208_v10 = vadd.f32 %v2107_v22, %v1989_v42 }
 0x3fa   :  { %5179 = vmatmul.msk.bf16.gmra.mxu1 %vm1138_vm3, %v6869_v43  ;;  %5216 = vmatmul.msk.bf16.gmra.mxu2 %vm1138_vm3, %v6885_v6 }
 0x3fb   :  { %8264 = vst [vmem:[#allocation16_spill] sm:$0xff] %v7208_v10 }
 0x3fc   :  { %v1660_v38 = vpop.f32.mrf.mxu3 }
 0x3fd   :  { %v1749_v0 = vadd.f32 %v1660_v38, %v8265_v15  ;;  %v2115_v19 = vpop.f32.mrf.mxu2  ;;  %v8271_v15 = vld [vmem:[#allocation26_spill] sm:$0xff] }
 0x3ff   :  { %v1990_v23 = vadd.f32 %v1901_v34, %v1749_v0  ;;  %v1908_v30 = vpop.f32.mrf.mxu1  ;;  %v7231_v38 = vpop.f32.mrf.mxu0 }
 0x400   :  { %8270 = vst [vmem:[#allocation19_spill] sm:$0xff] %v7231_v38 }
 0x401   :  { %v7215_v12 = vadd.f32 %v2110_v11, %v1990_v23 }
 0x403   :  { %8266 = vst [vmem:[#allocation15_spill] sm:$0xff] %v7215_v12  ;;  %v6083_v12 = vld [vmem:[%s8130_s3 + $0x80] sm:$0xff] }
 0x404   :  { %v1662_v22 = vpop.f32.mrf.mxu3  ;;  %2916 = vmatpush.bf16.msra.mxu2 %v6083_v12 }
 0x405   :  { %v1750_v42 = vadd.f32 %v1662_v22, %v1472_v33  ;;  %v2117_v10 = vpop.f32.mrf.mxu2  ;;  %v8273_v33 = vld [vmem:[#allocation28_spill] sm:$0xff] }
 0x407   :  { %v1991_v54 = vadd.f32 %v1903_v62, %v1750_v42  ;;  %v1911_v56 = vpop.f32.mrf.mxu1 }
 0x409   :  { %5142 = vmatmul.msk.bf16.gmra.mxu3 %vm1138_vm3, %v8241_v39  ;;  %5284 = vmatmul.msk.bf16.gmra.mxu0 %vm1138_vm3, %v6853_v63  ;;  %v7225_v34 = vadd.f32 %v2112_v25, %v1991_v54  ;;  %v8274_v63 = vld [vmem:[#allocation27_spill] sm:$0xff] }
 0x40a   :  { %5180 = vmatmul.msk.bf16.gmra.mxu1 %vm1138_vm3, %v6885_v6  ;;  %5217 = vmatmul.msk.bf16.gmra.mxu2 %vm1138_vm3, %v6906_v57  ;;  %v1477_v25 = vadd.f32 %v8274_v63, %v8273_v33 }
 0x40b   :  { %8269 = vst [vmem:[#allocation18_spill] sm:$0xff] %v7225_v34  ;;  %v6081_v34 = vld [vmem:[%s8130_s3 + $0x70] sm:$0xff] }
 0x40c   :  { %v1665_v11 = vpop.f32.mrf.mxu3  ;;  %2707 = vmatpush.bf16.msra.mxu1 %v6081_v34 }
 0x40d   :  { %v1751_v62 = vadd.f32 %v1665_v11, %v8271_v15  ;;  %v2120_v0 = vpop.f32.mrf.mxu2  ;;  %v7244_v11 = vpop.f32.mrf.mxu0 }
 0x40e   :  { %8275 = vst [vmem:[#allocation29_spill] sm:$0xff] %v7244_v11 }
 0x40f   :  { %v1992_v23 = vadd.f32 %v1906_v7, %v1751_v62  ;;  %v1913_v24 = vpop.f32.mrf.mxu1 }
 0x411   :  { %v7234_v55 = vadd.f32 %v2115_v19, %v1992_v23  ;;  %v8277_v23 = vld [vmem:[#allocation30_spill] sm:$0xff] }
 0x413   :  { %8272 = vst [vmem:[#allocation17_spill] sm:$0xff] %v7234_v55 }
 0x414   :  { %v1667_v54 = vpop.f32.mrf.mxu3 }
 0x415   :  { %v1752_v22 = vadd.f32 %v1667_v54, %v1477_v25  ;;  %v2122_v42 = vpop.f32.mrf.mxu2  ;;  %v7257_v63 = vpop.f32.mrf.mxu0  ;;  %v8280_v54 = vld [vmem:[#allocation32_spill] sm:$0xff] }
 0x416   :  { %8278 = vst [vmem:[#allocation22_spill] sm:$0xff] %v7257_v63 }
 0x417   :  { %v1993_v7 = vadd.f32 %v1908_v30, %v1752_v22  ;;  %v1916_v15 = vpop.f32.mrf.mxu1  ;;  %v8281_v22 = vld [vmem:[#allocation31_spill] sm:$0xff] }
 0x419   :  { %5143 = vmatmul.msk.bf16.gmra.mxu3 %vm1138_vm3, %v8247_v46  ;;  %5285 = vmatmul.msk.bf16.gmra.mxu0 %vm1138_vm3, %v6869_v43  ;;  %v7250_v19 = vadd.f32 %v2117_v10, %v1993_v7  ;;  %v1482_v10 = vadd.f32 %v8281_v22, %v8280_v54  ;;  %v8287_v22 = vld [vmem:[#allocation36_spill] sm:$0xff] }
 0x41a   :  { %5181 = vmatmul.msk.bf16.gmra.mxu1 %vm1138_vm3, %v6906_v57  ;;  %5218 = vmatmul.msk.bf16.gmra.mxu2 %vm1138_vm3, %v6924_v2 }
 0x41b   :  { %8276 = vst [vmem:[#allocation21_spill] sm:$0xff] %v7250_v19 }
 0x41c   :  { %v1670_v62 = vpop.f32.mrf.mxu3 }
 0x41d   :  { %v1753_v30 = vadd.f32 %v1670_v62, %v8277_v23  ;;  %v2125_v33 = vpop.f32.mrf.mxu2  ;;  %v6092_v62 = vld [vmem:[%s8131_s5 + $0x38] sm:$0xff]  ;;  %v8285_v23 = vld [vmem:[#allocation35_spill] sm:$0xff] }
 0x41e   :  { %3301 = vmatpush.bf16.msrb.mxu3 %v6092_v62 }
 0x41f   :  { %v1994_v34 = vadd.f32 %v1911_v56, %v1753_v30  ;;  %v1918_v12 = vpop.f32.mrf.mxu1 }
 0x421   :  { %v7259_v25 = vadd.f32 %v2120_v0, %v1994_v34  ;;  %v8283_v0 = vld [vmem:[#allocation61_spill] sm:$0xff] }
 0x423   :  { %8279 = vst [vmem:[#allocation20_spill] sm:$0xff] %v7259_v25 }
 0x424   :  { %v1672_v7 = vpop.f32.mrf.mxu3 }
 0x425   :  { %v1754_v19 = vadd.f32 %v1672_v7, %v1482_v10  ;;  %v2127_v55 = vpop.f32.mrf.mxu2  ;;  %v8288_v10 = vld [vmem:[#allocation33_spill] sm:$0xff] }
 0x426   :  { %v1487_v7 = vadd.f32 %v8288_v10, %v8287_v22  ;;  %v8296_v22 = vld [vmem:[#allocation40_spill] sm:$0xff]  ;;  %v8297_v10 = vld [vmem:[#allocation37_spill] sm:$0xff] }
 0x427   :  { %v1995_v11 = vadd.f32 %v1913_v24, %v1754_v19  ;;  %v1921_v43 = vpop.f32.mrf.mxu1  ;;  %v7276_v24 = vpop.f32.mrf.mxu0 }
 0x428   :  { %8284 = vst [vmem:[#allocation25_spill] sm:$0xff] %v7276_v24  ;;  %v8290_v24 = vld [vmem:[#allocation48_spill] sm:$0xff] }
 0x429   :  { %5144 = vmatmul.msk.bf16.gmra.mxu3 %vm1138_vm3, %v6814_v20  ;;  %5286 = vmatmul.msk.bf16.gmra.mxu0 %vm1138_vm3, %v6885_v6  ;;  %v7267_v56 = vadd.f32 %v2122_v42, %v1995_v11 }
 0x42a   :  { %5182 = vmatmul.msk.bf16.gmra.mxu1 %vm1138_vm3, %v6924_v2  ;;  %5219 = vmatmul.msk.bf16.gmra.mxu2 %vm1138_vm3, %v8283_v0 }
 0x42b   :  { %8282 = vst [vmem:[#allocation24_spill] sm:$0xff] %v7267_v56 }
 0x42c   :  { %v1675_v19 = vpop.f32.mrf.mxu3 }
 0x42d   :  { %v1755_v30 = vadd.f32 %v1675_v19, %v8285_v23  ;;  %v2130_v34 = vpop.f32.mrf.mxu2  ;;  %v8293_v19 = vld [vmem:[#allocation39_spill] sm:$0xff] }
 0x42f   :  { %v1996_v54 = vadd.f32 %v1916_v15, %v1755_v30  ;;  %v1923_v42 = vpop.f32.mrf.mxu1  ;;  %v7283_v25 = vpop.f32.mrf.mxu0 }
 0x430   :  { %8289 = vst [vmem:[#allocation26_spill] sm:$0xff] %v7283_v25 }
 0x431   :  { %v7279_v11 = vadd.f32 %v2125_v33, %v1996_v54  ;;  %v8292_v33 = vld [vmem:[#allocation6_spill] sm:$0xff] }
 0x433   :  { %8286 = vst [vmem:[#allocation23_spill] sm:$0xff] %v7279_v11 }
 0x434   :  { %v1677_v56 = vpop.f32.mrf.mxu3 }
 0x435   :  { %v1756_v0 = vadd.f32 %v1677_v56, %v1487_v7  ;;  %v2132_v63 = vpop.f32.mrf.mxu2 }
 0x437   :  { %v1997_v6 = vadd.f32 %v1918_v12, %v1756_v0  ;;  %v1926_v38 = vpop.f32.mrf.mxu1  ;;  %v7296_v12 = vpop.f32.mrf.mxu0 }
 0x438   :  { %8294 = vst [vmem:[#allocation27_spill] sm:$0xff] %v7296_v12  ;;  %v8307_v12 = vld [vmem:[#allocation67_spill] sm:$0xff] }
 0x439   :  { %5145 = vmatmul.msk.bf16.gmra.mxu3 %vm1138_vm3, %v8290_v24  ;;  %5287 = vmatmul.msk.bf16.gmra.mxu0 %vm1138_vm3, %v6906_v57  ;;  %v7289_v15 = vadd.f32 %v2127_v55, %v1997_v6  ;;  %v1492_v6 = vadd.f32 %v8297_v10, %v8296_v22  ;;  %v8299_v57 = vld [vmem:[#allocation2_spill] sm:$0xff] }
 0x43a   :  { %5306 = vmatmul.msk.bf16.vlgmr.msra.gmra.mxu1 %vm1138_vm3, %v8292_v33  ;;  %5343 = vmatmul.msk.bf16.vlgmr.msra.gmra.mxu2 %vm1138_vm3, %v6524_v45  ;;  %v8304_v10 = vld [vmem:[#allocation42_spill] sm:$0xff] }
 0x43b   :  { %8291 = vst [vmem:[#allocation28_spill] sm:$0xff] %v7289_v15 }
 0x43c   :  { %v1680_v62 = vpop.f32.mrf.mxu3 }
 0x43d   :  { %v1757_v56 = vadd.f32 %v1680_v62, %v8293_v19  ;;  %v2135_v23 = vpop.f32.mrf.mxu2  ;;  %v8301_v62 = vld [vmem:[#allocation43_spill] sm:$0xff] }
 0x43f   :  { %v1998_v0 = vadd.f32 %v1921_v43, %v1757_v56  ;;  %v1928_v30 = vpop.f32.mrf.mxu1  ;;  %v7302_v25 = vpop.f32.mrf.mxu0 }
 0x440   :  { %8298 = vst [vmem:[#allocation32_spill] sm:$0xff] %v7302_v25  ;;  %v8306_v25 = vld [vmem:[#allocation3_spill] sm:$0xff] }
 0x441   :  { %v7298_v54 = vadd.f32 %v2130_v34, %v1998_v0 }
 0x443   :  { %8295 = vst [vmem:[#allocation30_spill] sm:$0xff] %v7298_v54 }
 0x444   :  { %v1682_v55 = vpop.f32.mrf.mxu3 }
 0x445   :  { %v1758_v7 = vadd.f32 %v1682_v55, %v1492_v6  ;;  %v2137_v15 = vpop.f32.mrf.mxu2 }
 0x447   :  { %v1999_v33 = vadd.f32 %v1923_v42, %v1758_v7  ;;  %v1931_v11 = vpop.f32.mrf.mxu1  ;;  %v7319_v55 = vpop.f32.mrf.mxu0 }
 0x448   :  { %8305 = vst [vmem:[#allocation36_spill] sm:$0xff] %v7319_v55  ;;  %v8313_v55 = vld [vmem:[#allocation4_spill] sm:$0xff] }
 0x449   :  { %5232 = vmatmul.msk.bf16.vlgmr.msra.gmra.mxu3 %vm1138_vm3, %v8299_v57  ;;  %5288 = vmatmul.msk.bf16.gmra.mxu0 %vm1138_vm3, %v6924_v2  ;;  %v7308_v43 = vadd.f32 %v2132_v63, %v1999_v33  ;;  %v8303_v57 = vld [vmem:[#allocation44_spill] sm:$0xff] }
 0x44a   :  { %5307 = vmatmul.msk.bf16.gmra.mxu1 %vm1138_vm3, %v6524_v45  ;;  %5344 = vmatmul.msk.bf16.gmra.mxu2 %vm1138_vm3, %v6542_v9  ;;  %v1497_v6 = vadd.f32 %v8304_v10, %v8303_v57  ;;  %v8311_v10 = vld [vmem:[#allocation47_spill] sm:$0xff] }
 0x44b   :  { %8300 = vst [vmem:[#allocation31_spill] sm:$0xff] %v7308_v43 }
 0x44c   :  { %v1685_v34 = vpop.f32.mrf.mxu3 }
 0x44d   :  { %v1759_v42 = vadd.f32 %v1685_v34, %v8301_v62  ;;  %v2140_v19 = vpop.f32.mrf.mxu2  ;;  %v8309_v62 = vld [vmem:[#allocation45_spill] sm:$0xff] }
 0x44f   :  { %v2000_v56 = vadd.f32 %v1926_v38, %v1759_v42  ;;  %v1933_v0 = vpop.f32.mrf.mxu1  ;;  %v7331_v34 = vpop.f32.mrf.mxu0 }
 0x451   :  { %v7315_v22 = vadd.f32 %v2135_v23, %v2000_v56 }
 0x453   :  { %8302 = vst [vmem:[#allocation35_spill] sm:$0xff] %v7315_v22 }
 0x454   :  { %v1687_v63 = vpop.f32.mrf.mxu3 }
 0x455   :  { %v1760_v7 = vadd.f32 %v1687_v63, %v1497_v6  ;;  %v2142_v33 = vpop.f32.mrf.mxu2 }
 0x457   :  { %v2001_v43 = vadd.f32 %v1928_v30, %v1760_v7  ;;  %v1936_v54 = vpop.f32.mrf.mxu1  ;;  %v7338_v7 = vpop.f32.mrf.mxu0 }
 0x459   :  { %5233 = vmatmul.msk.bf16.gmra.mxu3 %vm1138_vm3, %v8306_v25  ;;  %5289 = vmatmul.msk.bf16.gmra.mxu0 %vm1138_vm3, %v8307_v12  ;;  %v7325_v38 = vadd.f32 %v2137_v15, %v2001_v43  ;;  %v8312_v12 = vld [vmem:[#allocation46_spill] sm:$0xff] }
 0x45a   :  { %5308 = vmatmul.msk.bf16.gmra.mxu1 %vm1138_vm3, %v6542_v9  ;;  %5345 = vmatmul.msk.bf16.gmra.mxu2 %vm1138_vm3, %v6558_v48  ;;  %v1502_v15 = vadd.f32 %v8312_v12, %v8311_v10  ;;  %v8317_v12 = vld [vmem:[#allocation52_spill] sm:$0xff] }
 0x45b   :  { %8308 = vst [vmem:[#allocation33_spill] sm:$0xff] %v7325_v38 }
 0x45c   :  { %v1690_v23 = vpop.f32.mrf.mxu3 }
 0x45d   :  { %v1761_v30 = vadd.f32 %v1690_v23, %v8309_v62  ;;  %v2145_v42 = vpop.f32.mrf.mxu2  ;;  %v8315_v23 = vld [vmem:[#allocation49_spill] sm:$0xff] }
 0x45f   :  { %v2002_v56 = vadd.f32 %v1931_v11, %v1761_v30  ;;  %v1938_v57 = vpop.f32.mrf.mxu1  ;;  %v7351_v10 = vpop.f32.mrf.mxu0 }
 0x461   :  { %v7334_v25 = vadd.f32 %v2140_v19, %v2002_v56 }
 0x463   :  { %8310 = vst [vmem:[#allocation48_spill] sm:$0xff] %v7334_v25 }
 0x464   :  { %v1692_v43 = vpop.f32.mrf.mxu3 }
 0x465   :  { %v1762_v6 = vadd.f32 %v1692_v43, %v1502_v15  ;;  %v2147_v63 = vpop.f32.mrf.mxu2  ;;  %v8318_v15 = vld [vmem:[#allocation50_spill] sm:$0xff] }
 0x467   :  { %v2003_v38 = vadd.f32 %v1933_v0, %v1762_v6  ;;  %v1941_v22 = vpop.f32.mrf.mxu1 }
 0x469   :  { %5234 = vmatmul.msk.bf16.gmra.mxu3 %vm1138_vm3, %v8313_v55  ;;  %5290 = vmatmul.msk.bf16.gmra.mxu0 %vm1138_vm3, %v6988_v21  ;;  %v7344_v11 = vadd.f32 %v2142_v33, %v2003_v38  ;;  %v1507_v33 = vadd.f32 %v8318_v15, %v8317_v12  ;;  %v8319_v21 = vld [vmem:[#allocation5_spill] sm:$0xff] }
 0x46a   :  { %5309 = vmatmul.msk.bf16.gmra.mxu1 %vm1138_vm3, %v6558_v48  ;;  %5346 = vmatmul.msk.bf16.gmra.mxu2 %vm1138_vm3, %v6576_v28 }
 0x46b   :  { %8314 = vst [vmem:[#allocation6_spill] sm:$0xff] %v7344_v11 }
 0x46c   :  { %v1695_v19 = vpop.f32.mrf.mxu3 }
 0x46d   :  { %v1763_v62 = vadd.f32 %v1695_v19, %v8315_v23  ;;  %v2150_v30 = vpop.f32.mrf.mxu2  ;;  %v8321_v23 = vld [vmem:[#allocation54_spill] sm:$0xff] }
 0x46f   :  { %v2004_v0 = vadd.f32 %v1936_v54, %v1763_v62  ;;  %v1943_v56 = vpop.f32.mrf.mxu1 }
 0x471   :  { %v7353_v55 = vadd.f32 %v2145_v42, %v2004_v0  ;;  %v7367_v42 = vpop.f32.mrf.mxu0 }
 0x473   :  { %8316 = vst [vmem:[#allocation39_spill] sm:$0xff] %v7353_v55 }
 0x474   :  { %v1697_v38 = vpop.f32.mrf.mxu3 }
 0x475   :  { %v1764_v43 = vadd.f32 %v1697_v38, %v1507_v33  ;;  %v2152_v6 = vpop.f32.mrf.mxu2 }
 0x477   :  { %v2005_v11 = vadd.f32 %v1938_v57, %v1764_v43  ;;  %v1946_v25 = vpop.f32.mrf.mxu1 }
 0x479   :  { %5235 = vmatmul.msk.bf16.gmra.mxu3 %vm1138_vm3, %v8319_v21  ;;  %5291 = vmatmul.msk.bf16.gmra.mxu0 %vm1138_vm3, %v7007_v14  ;;  %v7361_v54 = vadd.f32 %v2147_v63, %v2005_v11  ;;  %v7372_v33 = vpop.f32.mrf.mxu0  ;;  %v8323_v63 = vld [vmem:[#allocation55_spill] sm:$0xff] }
 0x47a   :  { %5310 = vmatmul.msk.bf16.gmra.mxu1 %vm1138_vm3, %v6576_v28  ;;  %5347 = vmatmul.msk.bf16.gmra.mxu2 %vm1138_vm3, %v6592_v8 }
 0x47b   :  { %8320 = vst [vmem:[#allocation40_spill] sm:$0xff] %v7361_v54 }
 0x47c   :  { %v1700_v19 = vpop.f32.mrf.mxu3 }
 0x47d   :  { %v1765_v57 = vadd.f32 %v1700_v19, %v8321_v23  ;;  %v2155_v62 = vpop.f32.mrf.mxu2 }
 0x47f   :  { %v2006_v0 = vadd.f32 %v1941_v22, %v1765_v57  ;;  %v1948_v12 = vpop.f32.mrf.mxu1 }
 0x481   :  { %v7370_v21 = vadd.f32 %v2150_v30, %v2006_v0  ;;  %v8325_v30 = vld [vmem:[#allocation57_spill] sm:$0xff] }
 0x483   :  { %8322 = vst [vmem:[#allocation37_spill] sm:$0xff] %v7370_v21 }
 0x484   :  { %v1702_v15 = vpop.f32.mrf.mxu3 }
 0x485   :  { %v1766_v11 = vadd.f32 %v1702_v15, %v8323_v63  ;;  %v2157_v38 = vpop.f32.mrf.mxu2 }
 0x487   :  { %v2007_v43 = vadd.f32 %v1943_v56, %v1766_v11  ;;  %v1951_v54 = vpop.f32.mrf.mxu1  ;;  %v7386_v56 = vpop.f32.mrf.mxu0 }
 0x489   :  { %5236 = vmatmul.msk.bf16.gmra.mxu3 %vm1138_vm3, %v6488_v41  ;;  %5292 = vmatmul.msk.bf16.gmra.mxu0 %vm1138_vm3, %v7026_v4  ;;  %v7379_v19 = vadd.f32 %v2152_v6, %v2007_v43  ;;  %v6091_v41 = vld [vmem:[%s8131_s5 + $0x30] sm:$0xff] }
 0x48a   :  { %5311 = vmatmul.msk.bf16.gmra.mxu1 %vm1138_vm3, %v6614_v51  ;;  %5348 = vmatmul.msk.bf16.gmra.mxu2 %vm1138_vm3, %v6633_v32  ;;  %v8326_v51 = vld [vmem:[#allocation58_spill] sm:$0xff] }
 0x48b   :  { %8324 = vst [vmem:[#allocation2_spill] sm:$0xff] %v7379_v19  ;;  %3302 = vmatpush.bf16.msrb.mxu3 %v6091_v41 }
 0x48c   :  { %v1705_v22 = vpop.f32.mrf.mxu3 }
 0x48d   :  { %v1767_v23 = vadd.f32 %v1705_v22, %v8325_v30  ;;  %v2160_v57 = vpop.f32.mrf.mxu2  ;;  %v8328_v22 = vld [vmem:[#allocation59_spill] sm:$0xff] }
 0x48f   :  { %v2008_v0 = vadd.f32 %v1946_v25, %v1767_v23  ;;  %v1953_v15 = vpop.f32.mrf.mxu1  ;;  %v7394_v55 = vpop.f32.mrf.mxu0 }
 0x491   :  { %v7391_v6 = vadd.f32 %v2155_v62, %v2008_v0 }
 0x494   :  { %v1707_v63 = vpop.f32.mrf.mxu3 }
 0x495   :  { %v1768_v11 = vadd.f32 %v1707_v63, %v8326_v51  ;;  %v2162_v43 = vpop.f32.mrf.mxu2  ;;  %v8329_v63 = vld [vmem:[#allocation60_spill] sm:$0xff] }
 0x497   :  { %v2009_v19 = vadd.f32 %v1948_v12, %v1768_v11  ;;  %v1956_v21 = vpop.f32.mrf.mxu1 }
 0x499   :  { %5237 = vmatmul.msk.bf16.gmra.mxu3 %vm1138_vm3, %v6524_v45  ;;  %5293 = vmatmul.msk.bf16.gmra.mxu0 %vm1138_vm3, %v7048_v50  ;;  %v7400_v25 = vadd.f32 %v2157_v38, %v2009_v19 }
 0x49a   :  { %5312 = vmatmul.msk.bf16.gmra.mxu1 %vm1138_vm3, %v6633_v32  ;;  %5349 = vmatmul.msk.bf16.gmra.mxu2 %vm1138_vm3, %v6657_v16 }
 0x49b   :  { %8327 = vst [vmem:[#allocation43_spill] sm:$0xff] %v7400_v25 }
 0x49c   :  { %v1710_v62 = vpop.f32.mrf.mxu3 }
 0x49d   :  { %v1769_v12 = vadd.f32 %v1710_v62, %v8328_v22  ;;  %v2165_v30 = vpop.f32.mrf.mxu2 }
 0x49f   :  { %v2010_v23 = vadd.f32 %v1951_v54, %v1769_v12  ;;  %v1958_v0 = vpop.f32.mrf.mxu1 }
 0x4a1   :  { %v7407_v41 = vadd.f32 %v2160_v57, %v2010_v23  ;;  %v8331_v57 = vld [vmem:[#allocation62_spill] sm:$0xff] }
 0x4a4   :  { %v1712_v45 = vpop.f32.mrf.mxu3 }
 0x4a5   :  { %v1770_v51 = vadd.f32 %v1712_v45, %v8329_v63  ;;  %v2167_v11 = vpop.f32.mrf.mxu2  ;;  %v8332_v63 = vld [vmem:[#allocation63_spill] sm:$0xff] }
 0x4a7   :  { %v2011_v38 = vadd.f32 %v1953_v15, %v1770_v51  ;;  %v1961_v19 = vpop.f32.mrf.mxu1 }
 0x4a9   :  { %5238 = vmatmul.msk.bf16.gmra.mxu3 %vm1138_vm3, %v6542_v9  ;;  %v7412_v25 = vadd.f32 %v2162_v43, %v2011_v38 }
 0x4aa   :  { %5313 = vmatmul.msk.bf16.gmra.mxu1 %vm1138_vm3, %v6657_v16  ;;  %5350 = vmatmul.msk.bf16.gmra.mxu2 %vm1138_vm3, %v6673_v37 }
 0x4ab   :  { %8330 = vst [vmem:[#allocation44_spill] sm:$0xff] %v7412_v25 }
 0x4ac   :  { %v1715_v54 = vpop.f32.mrf.mxu3 }
 0x4ad   :  { %v1771_v62 = vadd.f32 %v1715_v54, %v8331_v57  ;;  %v2170_v22 = vpop.f32.mrf.mxu2 }
 0x4af   :  { %v2012_v12 = vadd.f32 %v1956_v21, %v1771_v62  ;;  %v1963_v23 = vpop.f32.mrf.mxu1 }
 0x4b1   :  { %v7419_v45 = vadd.f32 %v2165_v30, %v2012_v12  ;;  %v8334_v30 = vld [vmem:[#allocation65_spill] sm:$0xff] }
 0x4b4   :  { %v1717_v15 = vpop.f32.mrf.mxu3 }
 0x4b5   :  { %v1772_v51 = vadd.f32 %v1717_v15, %v8332_v63  ;;  %v2172_v9 = vpop.f32.mrf.mxu2  ;;  %v8336_v63 = vld [vmem:[#allocation66_spill] sm:$0xff] }
 0x4b7   :  { %v2013_v43 = vadd.f32 %v1958_v0, %v1772_v51  ;;  %v2709_v38 = vpop.f32.mrf.mxu1 }
 0x4b9   :  { %5239 = vmatmul.msk.bf16.gmra.mxu3 %vm1138_vm3, %v6558_v48  ;;  %v7424_v25 = vadd.f32 %v2167_v11, %v2013_v43 }
 0x4ba   :  { %5314 = vmatmul.msk.bf16.gmra.mxu1 %vm1138_vm3, %v6673_v37  ;;  %5351 = vmatmul.msk.bf16.gmra.mxu2 %vm1138_vm3, %v6691_v29 }
 0x4bb   :  { %8333 = vst [vmem:[#allocation42_spill] sm:$0xff] %v7424_v25 }
 0x4bc   :  { %v1720_v21 = vpop.f32.mrf.mxu3 }
 0x4bd   :  { %v1773_v54 = vadd.f32 %v1720_v21, %v8334_v30  ;;  %v2918_v57 = vpop.f32.mrf.mxu2 }
 0x4bf   :  { %v2014_v62 = vadd.f32 %v1961_v19, %v1773_v54  ;;  %v2711_v12 = vpop.f32.mrf.mxu1 }
 0x4c1   :  { %v7431_v15 = vadd.f32 %v2170_v22, %v2014_v62 }
 0x4c3   :  { %8335 = vst [vmem:[#allocation3_spill] sm:$0xff] %v7431_v15 }
 0x4c4   :  { %v1722_v0 = vpop.f32.mrf.mxu3 }
 0x4c5   :  { %v1774_v51 = vadd.f32 %v1722_v0, %v8336_v63  ;;  %v2920_v48 = vpop.f32.mrf.mxu2 }
 0x4c7   :  { %v2015_v11 = vadd.f32 %v1963_v23, %v1774_v51  ;;  %v2714_v43 = vpop.f32.mrf.mxu1 }
 0x4c9   :  { %5240 = vmatmul.msk.bf16.gmra.mxu3 %vm1138_vm3, %v6576_v28  ;;  %v7436_v25 = vadd.f32 %v2172_v9, %v2015_v11  ;;  %v7447_v28 = vld [vmem:[%s8132_s4] ss:$0 sm:$0xff] }
 0x4ca   :  { %5315 = vmatmul.msk.bf16.gmra.mxu1 %vm1138_vm3, %v6691_v29  ;;  %5352 = vmatmul.msk.bf16.gmra.mxu2 %vm1138_vm3, %v8257_v27 }
 0x4cb   :  { %8337 = vst [vmem:[#allocation67_spill] sm:$0xff] %v7436_v25 }
 0x4cc   :  { %v2259_v19 = vpop.f32.mrf.mxu3 }
 0x4cd   :  { %v2384_v22 = vadd.f32 %v2259_v19, %v6984_v5  ;;  %v2923_v21 = vpop.f32.mrf.mxu2 }
 0x4cf   :  { %v2625_v30 = vadd.f32 %v7105_v3, %v2384_v22  ;;  %v2716_v54 = vpop.f32.mrf.mxu1 }
 0x4d1   :  { %v2834_v23 = vadd.f32 %v2709_v38, %v2625_v30 }
 0x4d3   :  { %v3043_v62 = vadd.f32 %v2918_v57, %v2834_v23 }
 0x4d4   :  { %v2261_v9 = vpop.f32.mrf.mxu3 }
 0x4d5   :  { %v2385_v0 = vadd.f32 %v2261_v9, %v6995_v13  ;;  %v2925_v63 = vpop.f32.mrf.mxu2  ;;  %v3097_v51 = vadd.f32 %v7447_v28, %v3043_v62 }
 0x4d7   :  { %v2626_v11 = vadd.f32 %v7111_v60, %v2385_v0  ;;  %v2719_v5 = vpop.f32.mrf.mxu1  ;;  %v3147_v3 = vmax.f32 %v3097_v51, 0.0 }
 0x4d9   :  { %v2835_v19 = vadd.f32 %v2711_v12, %v2626_v11  ;;  %5241 = vmatmul.msk.bf16.gmra.mxu3 %vm1138_vm3, %v6592_v8  ;;  %v3197_v60 = vpack.c.bf16 %v3147_v3, %v3147_v3 }
 0x4da   :  { %5316 = vmatmul.msk.bf16.gmra.mxu1 %vm1138_vm3, %v6729_v44  ;;  %5353 = vmatmul.msk.bf16.gmra.mxu2 %vm1138_vm3, %v8235_v31 }
 0x4db   :  { %v3044_v38 = vadd.f32 %v2920_v48, %v2835_v19  ;;  %v3313_v0 = vunpack.c.l.b16 %v3197_v60 }
 0x4dc   :  { %v2264_v57 = vpop.f32.mrf.mxu3 }
 0x4dd   :  { %v3098_v13 = vadd.f32 %v7447_v28, %v3044_v38  ;;  %v2386_v22 = vadd.f32 %v2264_v57, %v7003_v58  ;;  %v2928_v30 = vpop.f32.mrf.mxu2 }
 0x4df   :  { %v3148_v23 = vmax.f32 %v3098_v13, 0.0  ;;  %v2627_v12 = vadd.f32 %v7128_v53, %v2386_v22  ;;  %v2721_v62 = vpop.f32.mrf.mxu1 }
 0x4e1   :  { %v3198_v8 = vpack.c.bf16 %v3148_v23, %v3148_v23  ;;  %v2836_v9 = vadd.f32 %v2714_v43, %v2627_v12 }
 0x4e3   :  { %v3314_v44 = vunpack.c.l.b16 %v3198_v8  ;;  %v3045_v11 = vadd.f32 %v2923_v21, %v2836_v9 }
 0x4e4   :  { %v2266_v25 = vpop.f32.mrf.mxu3 }
 0x4e5   :  { %v7461_v15 = vpack.c.b16 %v3314_v44, %v3313_v0  ;;  %v2387_v48 = vadd.f32 %v2266_v25, %v7014_v35  ;;  %v2930_v51 = vpop.f32.mrf.mxu2  ;;  %v3099_v19 = vadd.f32 %v7447_v28, %v3045_v11 }
 0x4e7   :  { %v2628_v58 = vadd.f32 %v7140_v26, %v2387_v48  ;;  %v2724_v3 = vpop.f32.mrf.mxu1  ;;  %v3149_v53 = vmax.f32 %v3099_v19, 0.0 }
 0x4e9   :  { %v2837_v38 = vadd.f32 %v2716_v54, %v2628_v58  ;;  %5242 = vmatmul.msk.bf16.gmra.mxu3 %vm1138_vm3, %v6633_v32  ;;  %v3199_v26 = vpack.c.bf16 %v3149_v53, %v3149_v53 }
 0x4ea   :  { %5317 = vmatmul.msk.bf16.gmra.mxu1 %vm1138_vm3, %v8235_v31  ;;  %5354 = vmatmul.msk.bf16.gmra.mxu2 %vm1138_vm3, %v8241_v39 }
 0x4eb   :  { %v3046_v43 = vadd.f32 %v2925_v63, %v2837_v38  ;;  %v3266_v23 = vunpack.c.l.b16 %v3199_v26 }
 0x4ec   :  { %v2269_v21 = vpop.f32.mrf.mxu3 }
 0x4ed   :  { %v3100_v35 = vadd.f32 %v7447_v28, %v3046_v43  ;;  %v2388_v25 = vadd.f32 %v2269_v21, %v7022_v61  ;;  %v2933_v57 = vpop.f32.mrf.mxu2 }
 0x4ef   :  { %v3150_v13 = vmax.f32 %v3100_v35, 0.0  ;;  %v2629_v54 = vadd.f32 %v7147_v47, %v2388_v25  ;;  %v2726_v22 = vpop.f32.mrf.mxu1 }
 0x4f1   :  { %v3200_v32 = vpack.c.bf16 %v3150_v13, %v3150_v13  ;;  %v2838_v60 = vadd.f32 %v2719_v5, %v2629_v54 }
 0x4f3   :  { %v3267_v12 = vunpack.c.l.b16 %v3200_v32  ;;  %v3047_v8 = vadd.f32 %v2928_v30, %v2838_v60 }
 0x4f4   :  { %v2271_v9 = vpop.f32.mrf.mxu3 }
 0x4f5   :  { %v7475_v0 = vpack.c.b16 %v3267_v12, %v3266_v23  ;;  %v2389_v63 = vadd.f32 %v2271_v9, %v7036_v59  ;;  %v2935_v44 = vpop.f32.mrf.mxu2  ;;  %v3101_v11 = vadd.f32 %v7447_v28, %v3047_v8  ;;  %v6090_v59 = vld [vmem:[%s8131_s5 + $0x28] sm:$0xff]  ;;  %v8338_v9 = vld [vmem:[#allocation69_spill] sm:$0xff] }
 0x4f6   :  { %3303 = vmatpush.bf16.msrb.mxu3 %v6090_v59 }
 0x4f7   :  { %v2630_v61 = vadd.f32 %v7160_v49, %v2389_v63  ;;  %v2729_v48 = vpop.f32.mrf.mxu1  ;;  %v3151_v47 = vmax.f32 %v3101_v11, 0.0 }
 0x4f9   :  { %v2839_v19 = vadd.f32 %v2721_v62, %v2630_v61  ;;  %5243 = vmatmul.msk.bf16.gmra.mxu3 %vm1138_vm3, %v6657_v16  ;;  %v3201_v16 = vpack.c.bf16 %v3151_v47, %v3151_v47 }
 0x4fa   :  { %5318 = vmatmul.msk.bf16.gmra.mxu1 %vm1138_vm3, %v8241_v39  ;;  %5355 = vmatmul.msk.bf16.gmra.mxu2 %vm1138_vm3, %v8247_v46 }
 0x4fb   :  { %v3048_v5 = vadd.f32 %v2930_v51, %v2839_v19  ;;  %v3368_v25 = vunpack.c.l.b16 %v3201_v16 }
 0x4fc   :  { %v2274_v30 = vpop.f32.mrf.mxu3 }
 0x4fd   :  { %v3102_v49 = vadd.f32 %v7447_v28, %v3048_v5  ;;  %v2390_v62 = vadd.f32 %v2274_v30, %v7044_v1  ;;  %v2938_v58 = vpop.f32.mrf.mxu2 }
 0x4ff   :  { %v3152_v38 = vmax.f32 %v3102_v49, 0.0  ;;  %v2631_v53 = vadd.f32 %v7176_v40, %v2390_v62  ;;  %v2731_v43 = vpop.f32.mrf.mxu1 }
 0x501   :  { %v3202_v21 = vpack.c.bf16 %v3152_v38, %v3152_v38  ;;  %v2840_v35 = vadd.f32 %v2724_v3, %v2631_v53 }
 0x503   :  { %v3369_v51 = vunpack.c.l.b16 %v3202_v21  ;;  %v3049_v26 = vadd.f32 %v2933_v57, %v2840_v35  ;;  %v8340_v21 = vld [vmem:[#allocation14_spill] sm:$0xff] }
 0x504   :  { %v2276_v13 = vpop.f32.mrf.mxu3 }
 0x505   :  { %v7492_v54 = vpack.c.b16 %v3369_v51, %v3368_v25  ;;  %v2391_v32 = vadd.f32 %v2276_v13, %v7055_v18  ;;  %v2940_v60 = vpop.f32.mrf.mxu2  ;;  %v3103_v1 = vadd.f32 %v7447_v28, %v3049_v26  ;;  %v8341_v13 = vld [vmem:[#allocation72_spill] sm:$0xff] }
 0x507   :  { %v2632_v23 = vadd.f32 %v7183_v36, %v2391_v32  ;;  %v2734_v12 = vpop.f32.mrf.mxu1  ;;  %v3153_v40 = vmax.f32 %v3103_v1, 0.0 }
 0x509   :  { %v2841_v8 = vadd.f32 %v2726_v22, %v2632_v23  ;;  %5244 = vmatmul.msk.bf16.gmra.mxu3 %vm1138_vm3, %v6673_v37  ;;  %v3203_v36 = vpack.c.bf16 %v3153_v40, %v3153_v40 }
 0x50a   :  { %5319 = vmatmul.msk.bf16.gmra.mxu1 %vm1138_vm3, %v8247_v46  ;;  %5356 = vmatmul.msk.bf16.gmra.mxu2 %vm1138_vm3, %v6814_v20 }
 0x50b   :  { %v3050_v3 = vadd.f32 %v2935_v44, %v2841_v8  ;;  %v3425_v5 = vunpack.c.l.b16 %v3203_v36  ;;  %v8339_v44 = vld [vmem:[#allocation71_spill] sm:$0xff] }
 0x50c   :  { %v2279_v57 = vpop.f32.mrf.mxu3 }
 0x50d   :  { %v3104_v18 = vadd.f32 %v7447_v28, %v3050_v3  ;;  %v2392_v63 = vadd.f32 %v2279_v57, %v8338_v9  ;;  %v2943_v11 = vpop.f32.mrf.mxu2 }
 0x50f   :  { %v3154_v61 = vmax.f32 %v3104_v18, 0.0  ;;  %v2633_v22 = vadd.f32 %v7196_v52, %v2392_v63  ;;  %v2736_v19 = vpop.f32.mrf.mxu1 }
 0x511   :  { %v3204_v37 = vpack.c.bf16 %v3154_v61, %v3154_v61  ;;  %v2842_v47 = vadd.f32 %v2729_v48, %v2633_v22 }
 0x513   :  { %v3426_v59 = vunpack.c.l.b16 %v3204_v37  ;;  %v3051_v30 = vadd.f32 %v2938_v58, %v2842_v47  ;;  %v8343_v47 = vld [vmem:[#allocation19_spill] sm:$0xff] }
 0x514   :  { %v2281_v49 = vpop.f32.mrf.mxu3 }
 0x515   :  { %v7506_v62 = vpack.c.b16 %v3426_v59, %v3425_v5  ;;  %v2393_v16 = vadd.f32 %v2281_v49, %v8339_v44  ;;  %v2945_v38 = vpop.f32.mrf.mxu2  ;;  %v3105_v53 = vadd.f32 %v7447_v28, %v3051_v30 }
 0x517   :  { %v2634_v35 = vadd.f32 %v8340_v21, %v2393_v16  ;;  %v2739_v25 = vpop.f32.mrf.mxu1  ;;  %v3155_v52 = vmax.f32 %v3105_v53, 0.0  ;;  %v8346_v53 = vld [vmem:[#allocation75_spill] sm:$0xff] }
 0x519   :  { %v2843_v51 = vadd.f32 %v2731_v43, %v2634_v35  ;;  %5245 = vmatmul.msk.bf16.gmra.mxu3 %vm1138_vm3, %v6691_v29  ;;  %v3205_v23 = vpack.c.bf16 %v3155_v52, %v3155_v52 }
 0x51a   :  { %5320 = vmatmul.msk.bf16.gmra.mxu1 %vm1138_vm3, %v6814_v20  ;;  %5357 = vmatmul.msk.bf16.gmra.mxu2 %vm1138_vm3, %v8290_v24 }
 0x51b   :  { %v3052_v48 = vadd.f32 %v2940_v60, %v2843_v51  ;;  %v3482_v57 = vunpack.c.l.b16 %v3205_v23  ;;  %v8342_v60 = vld [vmem:[#allocation74_spill] sm:$0xff] }
 0x51c   :  { %v2284_v58 = vpop.f32.mrf.mxu3 }
 0x51d   :  { %v3106_v26 = vadd.f32 %v7447_v28, %v3052_v48  ;;  %v2394_v32 = vadd.f32 %v2284_v58, %v8341_v13  ;;  %v2948_v1 = vpop.f32.mrf.mxu2 }
 0x51f   :  { %v3156_v8 = vmax.f32 %v3106_v26, 0.0  ;;  %v2635_v43 = vadd.f32 %v7219_v17, %v2394_v32  ;;  %v2741_v40 = vpop.f32.mrf.mxu1  ;;  %v8344_v17 = vld [vmem:[#allocation51_spill] sm:$0xff] }
 0x521   :  { %v3206_v29 = vpack.c.bf16 %v3156_v8, %v3156_v8  ;;  %v2844_v3 = vadd.f32 %v2734_v12, %v2635_v43  ;;  %v8345_v12 = vld [vmem:[#allocation53_spill] sm:$0xff] }
 0x523   :  { %v3483_v18 = vunpack.c.l.b16 %v3206_v29  ;;  %v3053_v9 = vadd.f32 %v2943_v11, %v2844_v3 }
 0x524   :  { %v2286_v63 = vpop.f32.mrf.mxu3 }
 0x525   :  { %v7520_v36 = vpack.c.b16 %v3483_v18, %v3482_v57  ;;  %v2395_v61 = vadd.f32 %v2286_v63, %v8342_v60  ;;  %v2950_v22 = vpop.f32.mrf.mxu2  ;;  %v3107_v37 = vadd.f32 %v7447_v28, %v3053_v9  ;;  %v8349_v18 = vld [vmem:[#allocation22_spill] sm:$0xff] }
 0x527   :  { %v2636_v5 = vadd.f32 %v8343_v47, %v2395_v61  ;;  %v2744_v59 = vpop.f32.mrf.mxu1  ;;  %v3157_v11 = vmax.f32 %v3107_v37, 0.0 }
 0x529   :  { %v2845_v30 = vadd.f32 %v2736_v19, %v2636_v5  ;;  %5246 = vmatmul.msk.bf16.gmra.mxu3 %vm1138_vm3, %v8257_v27  ;;  %v3207_v51 = vpack.c.bf16 %v3157_v11, %v3157_v11  ;;  %v8347_v19 = vld [vmem:[#allocation29_spill] sm:$0xff]  ;;  %v8351_v5 = vld [vmem:[#allocation34_spill] sm:$0xff] }
 0x52a   :  { %5321 = vmatmul.msk.bf16.gmra.mxu1 %vm1138_vm3, %v8344_v17  ;;  %5358 = vmatmul.msk.bf16.gmra.mxu2 %vm1138_vm3, %v8345_v12 }
 0x52b   :  { %v3054_v49 = vadd.f32 %v2945_v38, %v2845_v30  ;;  %v3539_v13 = vunpack.c.l.b16 %v3207_v51  ;;  %v8348_v38 = vld [vmem:[#allocation7_spill] sm:$0xff] }
 0x52c   :  { %v2289_v44 = vpop.f32.mrf.mxu3 }
 0x52d   :  { %v3108_v16 = vadd.f32 %v7447_v28, %v3054_v49  ;;  %v2396_v21 = vadd.f32 %v2289_v44, %v8346_v53  ;;  %v2953_v35 = vpop.f32.mrf.mxu2 }
 0x52f   :  { %v3158_v52 = vmax.f32 %v3108_v16, 0.0  ;;  %v2637_v48 = vadd.f32 %v8347_v19, %v2396_v21  ;;  %v2746_v58 = vpop.f32.mrf.mxu1 }
 0x531   :  { %v3208_v27 = vpack.c.bf16 %v3158_v52, %v3158_v52  ;;  %v2846_v26 = vadd.f32 %v2739_v25, %v2637_v48  ;;  %v8350_v25 = vld [vmem:[#allocation56_spill] sm:$0xff] }
 0x533   :  { %v3540_v32 = vunpack.c.l.b16 %v3208_v27  ;;  %v3055_v23 = vadd.f32 %v2948_v1, %v2846_v26 }
 0x534   :  { %v2291_v8 = vpop.f32.mrf.mxu3 }
 0x535   :  { %v7534_v43 = vpack.c.b16 %v3540_v32, %v3539_v13  ;;  %v2397_v29 = vadd.f32 %v2291_v8, %v8348_v38  ;;  %v2955_v3 = vpop.f32.mrf.mxu2  ;;  %v3109_v57 = vadd.f32 %v7447_v28, %v3055_v23  ;;  %v8354_v32 = vld [vmem:[#allocation26_spill] sm:$0xff] }
 0x537   :  { %v2638_v9 = vadd.f32 %v8349_v18, %v2397_v29  ;;  %v2749_v63 = vpop.f32.mrf.mxu1  ;;  %v3159_v1 = vmax.f32 %v3109_v57, 0.0  ;;  %v8355_v18 = vld [vmem:[#allocation10_spill] sm:$0xff] }
 0x539   :  { %v2847_v60 = vadd.f32 %v2741_v40, %v2638_v9  ;;  %5247 = vmatmul.msk.bf16.gmra.mxu3 %vm1138_vm3, %v8235_v31  ;;  %v3209_v11 = vpack.c.bf16 %v3159_v1, %v3159_v1  ;;  %v8352_v40 = vld [vmem:[#allocation25_spill] sm:$0xff] }
 0x53a   :  { %5322 = vmatmul.msk.bf16.gmra.mxu1 %vm1138_vm3, %v8345_v12  ;;  %5359 = vmatmul.msk.bf16.gmra.mxu2 %vm1138_vm3, %v8350_v25 }
 0x53b   :  { %v3056_v61 = vadd.f32 %v2950_v22, %v2847_v60  ;;  %v3596_v21 = vunpack.c.l.b16 %v3209_v11  ;;  %v8353_v22 = vld [vmem:[#allocation9_spill] sm:$0xff] }
 0x53c   :  { %v2294_v37 = vpop.f32.mrf.mxu3 }
 0x53d   :  { %v3110_v47 = vadd.f32 %v7447_v28, %v3056_v61  ;;  %v2398_v30 = vadd.f32 %v2294_v37, %v8351_v5  ;;  %v2958_v17 = vpop.f32.mrf.mxu2 }
 0x53f   :  { %v3160_v49 = vmax.f32 %v3110_v47, 0.0  ;;  %v2639_v44 = vadd.f32 %v8352_v40, %v2398_v30  ;;  %v2751_v16 = vpop.f32.mrf.mxu1 }
 0x541   :  { %v3210_v31 = vpack.c.bf16 %v3160_v49, %v3160_v49  ;;  %v2848_v53 = vadd.f32 %v2744_v59, %v2639_v44 }
 0x543   :  { %v3597_v51 = vunpack.c.l.b16 %v3210_v31  ;;  %v3057_v52 = vadd.f32 %v2953_v35, %v2848_v53 }
 0x544   :  { %v2296_v19 = vpop.f32.mrf.mxu3 }
 0x545   :  { %v7548_v48 = vpack.c.b16 %v3597_v51, %v3596_v21  ;;  %v2399_v27 = vadd.f32 %v2296_v19, %v8353_v22  ;;  %v2960_v26 = vpop.f32.mrf.mxu2  ;;  %v3111_v13 = vadd.f32 %v7447_v28, %v3057_v52  ;;  %v8358_v51 = vld [vmem:[#allocation32_spill] sm:$0xff] }
 0x547   :  { %v2640_v23 = vadd.f32 %v8354_v32, %v2399_v27  ;;  %v2754_v8 = vpop.f32.mrf.mxu1  ;;  %v3161_v59 = vmax.f32 %v3111_v13, 0.0 }
 0x549   :  { %v2849_v38 = vadd.f32 %v2746_v58, %v2640_v23  ;;  %5248 = vmatmul.msk.bf16.gmra.mxu3 %vm1138_vm3, %v8241_v39  ;;  %v3211_v1 = vpack.c.bf16 %v3161_v59, %v3161_v59  ;;  %v8356_v58 = vld [vmem:[#allocation27_spill] sm:$0xff]  ;;  %v8360_v23 = vld [vmem:[#allocation38_spill] sm:$0xff] }
 0x54a   :  { %5323 = vmatmul.msk.bf16.gmra.mxu1 %vm1138_vm3, %v8350_v25  ;;  %5360 = vmatmul.msk.bf16.gmra.mxu2 %vm1138_vm3, %v6924_v2 }
 0x54b   :  { %v3058_v35 = vadd.f32 %v2955_v3, %v2849_v38  ;;  %v3653_v30 = vunpack.c.l.b16 %v3211_v1  ;;  %v8357_v3 = vld [vmem:[#allocation8_spill] sm:$0xff] }
 0x54c   :  { %v2299_v29 = vpop.f32.mrf.mxu3 }
 0x54d   :  { %v3112_v57 = vadd.f32 %v7447_v28, %v3058_v35  ;;  %v2400_v9 = vadd.f32 %v2299_v29, %v8355_v18  ;;  %v2963_v60 = vpop.f32.mrf.mxu2 }
 0x54f   :  { %v3162_v61 = vmax.f32 %v3112_v57, 0.0  ;;  %v2641_v37 = vadd.f32 %v8356_v58, %v2400_v9  ;;  %v2756_v47 = vpop.f32.mrf.mxu1 }
 0x551   :  { %v3212_v39 = vpack.c.bf16 %v3162_v61, %v3162_v61  ;;  %v2850_v5 = vadd.f32 %v2749_v63, %v2641_v37  ;;  %v8359_v63 = vld [vmem:[#allocation61_spill] sm:$0xff] }
 0x553   :  { %v3654_v11 = vunpack.c.l.b16 %v3212_v39  ;;  %v3059_v49 = vadd.f32 %v2958_v17, %v2850_v5 }
 0x554   :  { %v2301_v40 = vpop.f32.mrf.mxu3 }
 0x555   :  { %v7562_v44 = vpack.c.b16 %v3654_v11, %v3653_v30  ;;  %v2401_v31 = vadd.f32 %v2301_v40, %v8357_v3  ;;  %v2965_v53 = vpop.f32.mrf.mxu2  ;;  %v3113_v21 = vadd.f32 %v7447_v28, %v3059_v49  ;;  %v6089_v11 = vld [vmem:[%s8131_s5 + $0x20] sm:$0xff] }
 0x556   :  { %3304 = vmatpush.bf16.msrb.mxu3 %v6089_v11 }
 0x557   :  { %v2642_v52 = vadd.f32 %v8358_v51, %v2401_v31  ;;  %v2759_v19 = vpop.f32.mrf.mxu1  ;;  %v3163_v17 = vmax.f32 %v3113_v21, 0.0 }
 0x559   :  { %v2851_v22 = vadd.f32 %v2751_v16, %v2642_v52  ;;  %5249 = vmatmul.msk.bf16.gmra.mxu3 %vm1138_vm3, %v8247_v46  ;;  %v3213_v35 = vpack.c.bf16 %v3163_v17, %v3163_v17  ;;  %v8361_v16 = vld [vmem:[#allocation36_spill] sm:$0xff] }
 0x55a   :  { %5324 = vmatmul.msk.bf16.gmra.mxu1 %vm1138_vm3, %v6924_v2  ;;  %5361 = vmatmul.msk.bf16.gmra.mxu2 %vm1138_vm3, %v8359_v63 }
 0x55b   :  { %v3060_v27 = vadd.f32 %v2960_v26, %v2851_v22  ;;  %v3710_v1 = vunpack.c.l.b16 %v3213_v35  ;;  %v8362_v26 = vld [vmem:[#allocation11_spill] sm:$0xff]  ;;  %v8364_v22 = vld [vmem:[#allocation13_spill] sm:$0xff] }
 0x55c   :  { %v2304_v13 = vpop.f32.mrf.mxu3 }
 0x55d   :  { %v3114_v32 = vadd.f32 %v7447_v28, %v3060_v27  ;;  %v2402_v38 = vadd.f32 %v2304_v13, %v8360_v23  ;;  %v2968_v59 = vpop.f32.mrf.mxu2 }
 0x55f   :  { %v3164_v29 = vmax.f32 %v3114_v32, 0.0  ;;  %v2643_v57 = vadd.f32 %v8361_v16, %v2402_v38  ;;  %v2761_v18 = vpop.f32.mrf.mxu1  ;;  %v7593_v38 = vpop.f32.mrf.mxu0 }
 0x561   :  { %v3214_v46 = vpack.c.bf16 %v3164_v29, %v3164_v29  ;;  %v2852_v9 = vadd.f32 %v2754_v8, %v2643_v57 }
 0x563   :  { %v3711_v61 = vunpack.c.l.b16 %v3214_v46  ;;  %v3061_v58 = vadd.f32 %v2963_v60, %v2852_v9  ;;  %v8363_v60 = vld [vmem:[#allocation64_spill] sm:$0xff] }
 0x564   :  { %v2306_v37 = vpop.f32.mrf.mxu3  ;;  %v8365_v46 = vld [vmem:[#allocation12_spill] sm:$0xff] }
 0x565   :  { %v7576_v39 = vpack.c.b16 %v3711_v61, %v3710_v1  ;;  %v2403_v5 = vadd.f32 %v2306_v37, %v8362_v26  ;;  %v2970_v30 = vpop.f32.mrf.mxu2  ;;  %v3115_v49 = vadd.f32 %v7447_v28, %v3061_v58 }
 0x567   :  { %v2644_v40 = vadd.f32 %v7331_v34, %v2403_v5  ;;  %v2764_v3 = vpop.f32.mrf.mxu1  ;;  %v3165_v31 = vmax.f32 %v3115_v49, 0.0  ;;  %v7606_v11 = vpop.f32.mrf.mxu0 }
 0x569   :  { %v2853_v8 = vadd.f32 %v2756_v47, %v2644_v40  ;;  %5250 = vmatmul.msk.bf16.gmra.mxu3 %vm1138_vm3, %v6814_v20  ;;  %v3215_v27 = vpack.c.bf16 %v3165_v31, %v3165_v31  ;;  %v8367_v40 = vld [vmem:[#allocation41_spill] sm:$0xff] }
 0x56a   :  { %5325 = vmatmul.msk.bf16.gmra.mxu1 %vm1138_vm3, %v8359_v63  ;;  %5362 = vmatmul.msk.bf16.gmra.mxu2 %vm1138_vm3, %v8363_v60 }
 0x56b   :  { %v3062_v21 = vadd.f32 %v2965_v53, %v2853_v8  ;;  %v3767_v35 = vunpack.c.l.b16 %v3215_v27 }
 0x56c   :  { %v2309_v51 = vpop.f32.mrf.mxu3 }
 0x56d   :  { %v3116_v52 = vadd.f32 %v7447_v28, %v3062_v21  ;;  %v2404_v17 = vadd.f32 %v2309_v51, %v8364_v22  ;;  %v2973_v34 = vpop.f32.mrf.mxu2 }
 0x56f   :  { %v3166_v13 = vmax.f32 %v3116_v52, 0.0  ;;  %v2645_v47 = vadd.f32 %v7338_v7, %v2404_v17  ;;  %v2766_v32 = vpop.f32.mrf.mxu1 }
 0x571   :  { %v3216_v20 = vpack.c.bf16 %v3166_v13, %v3166_v13  ;;  %v2854_v23 = vadd.f32 %v2759_v19, %v2645_v47  ;;  %v8366_v19 = vld [vmem:[#allocation68_spill] sm:$0xff] }
 0x572   :  { %v8368_v47 = vld [vmem:[#allocation16_spill] sm:$0xff] }
 0x573   :  { %v3768_v29 = vunpack.c.l.b16 %v3216_v20  ;;  %v3063_v16 = vadd.f32 %v2968_v59, %v2854_v23 }
 0x574   :  { %v2311_v57 = vpop.f32.mrf.mxu3 }
 0x575   :  { %v7595_v53 = vpack.c.b16 %v3768_v29, %v3767_v35  ;;  %v2405_v9 = vadd.f32 %v2311_v57, %v8365_v46  ;;  %v2975_v1 = vpop.f32.mrf.mxu2  ;;  %v3117_v61 = vadd.f32 %v7447_v28, %v3063_v16  ;;  %v7614_v35 = vpop.f32.mrf.mxu0 }
 0x577   :  { %v2646_v58 = vadd.f32 %v7351_v10, %v2405_v9  ;;  %v2769_v37 = vpop.f32.mrf.mxu1  ;;  %v3167_v59 = vmax.f32 %v3117_v61, 0.0  ;;  %v8369_v61 = vld [vmem:[#allocation15_spill] sm:$0xff] }
 0x579   :  { %v2855_v7 = vadd.f32 %v2761_v18, %v2646_v58  ;;  %5251 = vmatmul.msk.bf16.gmra.mxu3 %vm1138_vm3, %v8290_v24  ;;  %v3217_v18 = vpack.c.bf16 %v3167_v59, %v3167_v59 }
 0x57a   :  { %5326 = vmatmul.msk.bf16.gmra.mxu1 %vm1138_vm3, %v8366_v19  ;;  %5363 = vmatmul.msk.bf16.gmra.mxu2 %vm1138_vm3, %v7007_v14 }
 0x57b   :  { %v3064_v26 = vadd.f32 %v2970_v30, %v2855_v7  ;;  %v3824_v22 = vunpack.c.l.b16 %v3217_v18  ;;  %v8370_v18 = vld [vmem:[#allocation18_spill] sm:$0xff] }
 0x57c   :  { %v2314_v5 = vpop.f32.mrf.mxu3 }
 0x57d   :  { %v3118_v49 = vadd.f32 %v7447_v28, %v3064_v26  ;;  %v2406_v10 = vadd.f32 %v2314_v5, %v8367_v40  ;;  %v2978_v8 = vpop.f32.mrf.mxu2 }
 0x57f   :  { %v3168_v31 = vmax.f32 %v3118_v49, 0.0  ;;  %v2647_v24 = vadd.f32 %v7367_v42, %v2406_v10  ;;  %v2771_v21 = vpop.f32.mrf.mxu1 }
 0x581   :  { %v3218_v51 = vpack.c.bf16 %v3168_v31, %v3168_v31  ;;  %v2856_v52 = vadd.f32 %v2764_v3, %v2647_v24 }
 0x583   :  { %v3825_v17 = vunpack.c.l.b16 %v3218_v51  ;;  %v3065_v27 = vadd.f32 %v2973_v34, %v2856_v52 }
 0x584   :  { %v2316_v13 = vpop.f32.mrf.mxu3 }
 0x585   :  { %v7611_v30 = vpack.c.b16 %v3825_v17, %v3824_v22  ;;  %v2407_v20 = vadd.f32 %v2316_v13, %v8368_v47  ;;  %v2980_v23 = vpop.f32.mrf.mxu2  ;;  %v3119_v29 = vadd.f32 %v7447_v28, %v3065_v27  ;;  %v8371_v47 = vld [vmem:[#allocation17_spill] sm:$0xff] }
 0x587   :  { %v2648_v16 = vadd.f32 %v7372_v33, %v2407_v20  ;;  %v2774_v57 = vpop.f32.mrf.mxu1  ;;  %v3169_v3 = vmax.f32 %v3119_v29, 0.0 }
 0x589   :  { %v2857_v42 = vadd.f32 %v2766_v32, %v2648_v16  ;;  %5252 = vmatmul.msk.bf16.gmra.mxu3 %vm1138_vm3, %v8345_v12  ;;  %v3219_v33 = vpack.c.bf16 %v3169_v3, %v3169_v3  ;;  %v7627_v12 = vpop.f32.mrf.mxu0 }
 0x58a   :  { %5327 = vmatmul.msk.bf16.gmra.mxu1 %vm1138_vm3, %v7007_v14  ;;  %5364 = vmatmul.msk.bf16.gmra.mxu2 %vm1138_vm3, %v7026_v4 }
 0x58b   :  { %v3066_v34 = vadd.f32 %v2975_v1, %v2857_v42  ;;  %v3881_v5 = vunpack.c.l.b16 %v3219_v33 }
 0x58c   :  { %v2319_v46 = vpop.f32.mrf.mxu3 }
 0x58d   :  { %v3120_v9 = vadd.f32 %v7447_v28, %v3066_v34  ;;  %v2408_v58 = vadd.f32 %v2319_v46, %v8369_v61  ;;  %v2983_v7 = vpop.f32.mrf.mxu2 }
 0x58f   :  { %v3170_v19 = vmax.f32 %v3120_v9, 0.0  ;;  %v2649_v32 = vadd.f32 %v7386_v56, %v2408_v58  ;;  %v2776_v59 = vpop.f32.mrf.mxu1  ;;  %v8372_v58 = vld [vmem:[#allocation21_spill] sm:$0xff] }
 0x591   :  { %v3220_v26 = vpack.c.bf16 %v3170_v19, %v3170_v19  ;;  %v2858_v14 = vadd.f32 %v2769_v37, %v2649_v32  ;;  %v7634_v56 = vpop.f32.mrf.mxu0 }
 0x593   :  { %v3882_v49 = vunpack.c.l.b16 %v3220_v26  ;;  %v3067_v40 = vadd.f32 %v2978_v8, %v2858_v14 }
 0x594   :  { %v2321_v10 = vpop.f32.mrf.mxu3 }
 0x595   :  { %v7629_v1 = vpack.c.b16 %v3882_v49, %v3881_v5  ;;  %v2409_v31 = vadd.f32 %v2321_v10, %v8370_v18  ;;  %v2985_v24 = vpop.f32.mrf.mxu2  ;;  %v3121_v51 = vadd.f32 %v7447_v28, %v3067_v40  ;;  %v6184_v49 = vld [vmem:[%s8131_s5 + $0x318] sm:$0xff] }
 0x596   :  { %4656 = vmatpush.bf16.msra.mxu0 %v6184_v49  ;;  %v6086_v49 = vld [vmem:[%s8131_s5 + $0x8] sm:$0xff] }
 0x597   :  { %v2650_v52 = vadd.f32 %v7394_v55, %v2409_v31  ;;  %v2779_v22 = vpop.f32.mrf.mxu1  ;;  %v3171_v37 = vmax.f32 %v3121_v51, 0.0 }
 0x599   :  { %v2859_v17 = vadd.f32 %v2771_v21, %v2650_v52  ;;  %5253 = vmatmul.msk.bf16.gmra.mxu3 %vm1138_vm3, %v8350_v25  ;;  %v3221_v29 = vpack.c.bf16 %v3171_v37, %v3171_v37  ;;  %v7645_v34 = vpop.f32.mrf.mxu0 }
 0x59a   :  { %5328 = vmatmul.msk.bf16.gmra.mxu1 %vm1138_vm3, %v7026_v4  ;;  %5365 = vmatmul.msk.bf16.gmra.mxu2 %vm1138_vm3, %v7048_v50 }
 0x59b   :  { %v3068_v8 = vadd.f32 %v2980_v23, %v2859_v17  ;;  %v3938_v4 = vunpack.c.l.b16 %v3221_v29 }
 0x59c   :  { %v2324_v27 = vpop.f32.mrf.mxu3 }
 0x59d   :  { %v3122_v13 = vadd.f32 %v7447_v28, %v3068_v8  ;;  %v2410_v55 = vadd.f32 %v2324_v27, %v8371_v47  ;;  %v2988_v20 = vpop.f32.mrf.mxu2 }
 0x59f   :  { %v3172_v16 = vmax.f32 %v3122_v13, 0.0  ;;  %v2651_v21 = vadd.f32 %v7593_v38, %v2410_v55  ;;  %v2781_v42 = vpop.f32.mrf.mxu1  ;;  %v8375_v55 = vld [vmem:[#allocation24_spill] sm:$0xff] }
 0x5a1   :  { %v3222_v25 = vpack.c.bf16 %v3172_v16, %v3172_v16  ;;  %v2860_v3 = vadd.f32 %v2774_v57, %v2651_v21  ;;  %v8373_v57 = vld [vmem:[#allocation70_spill] sm:$0xff]  ;;  %v7661_v10 = vpop.f32.mrf.mxu0 }
 0x5a3   :  { %v3939_v46 = vunpack.c.l.b16 %v3222_v25  ;;  %v3069_v9 = vadd.f32 %v2983_v7, %v2860_v3 }
 0x5a4   :  { %v2326_v61 = vpop.f32.mrf.mxu3 }
 0x5a5   :  { %v7647_v23 = vpack.c.b16 %v3939_v46, %v3938_v4  ;;  %v2411_v33 = vadd.f32 %v2326_v61, %v8372_v58  ;;  %v2990_v19 = vpop.f32.mrf.mxu2  ;;  %v3123_v32 = vadd.f32 %v7447_v28, %v3069_v9 }
 0x5a7   :  { %v2652_v26 = vadd.f32 %v7606_v11, %v2411_v33  ;;  %v2784_v14 = vpop.f32.mrf.mxu1  ;;  %v3173_v7 = vmax.f32 %v3123_v32, 0.0 }
 0x5a9   :  { %v2861_v38 = vadd.f32 %v2776_v59, %v2652_v26  ;;  %5254 = vmatmul.msk.bf16.gmra.mxu3 %vm1138_vm3, %v6924_v2  ;;  %v8374_v59 = vld [vmem:[#allocation20_spill] sm:$0xff]  ;;  %v3223_v31 = vpack.c.bf16 %v3173_v7, %v3173_v7  ;;  %v7669_v21 = vpop.f32.mrf.mxu0 }
 0x5aa   :  { %5329 = vmatmul.msk.bf16.gmra.mxu1 %vm1138_vm3, %v7048_v50  ;;  %5366 = vmatmul.msk.bf16.gmra.mxu2 %vm1138_vm3, %v8373_v57 }
 0x5ab   :  { %v3070_v5 = vadd.f32 %v2985_v24, %v2861_v38  ;;  %v3995_v37 = vunpack.c.l.b16 %v3223_v31 }
 0x5ac   :  { %v2329_v40 = vpop.f32.mrf.mxu3 }
 0x5ad   :  { %v3124_v11 = vadd.f32 %v7447_v28, %v3070_v5  ;;  %v2412_v18 = vadd.f32 %v2329_v40, %v8374_v59  ;;  %v2993_v2 = vpop.f32.mrf.mxu2 }
 0x5af   :  { %v3174_v50 = vmax.f32 %v3124_v11, 0.0  ;;  %v2653_v51 = vadd.f32 %v7614_v35, %v2412_v18  ;;  %v2786_v52 = vpop.f32.mrf.mxu1 }
 0x5b1   :  { %v3224_v17 = vpack.c.bf16 %v3174_v50, %v3174_v50  ;;  %v2862_v24 = vadd.f32 %v2779_v22, %v2653_v51  ;;  %v6088_v22 = vld [vmem:[%s8131_s5 + $0x18] sm:$0xff]  ;;  %v2585_v7 = vpop.f32.mrf.mxu0  ;;  %v8378_v50 = vld [vmem:[#allocation28_spill] sm:$0xff] }
 0x5b2   :  { %3347 = vmatpush.bf16.msra.mxu3 %v6088_v22 }
 0x5b3   :  { %v3996_v8 = vunpack.c.l.b16 %v3224_v17  ;;  %v3071_v27 = vadd.f32 %v2988_v20, %v2862_v24  ;;  %v8376_v20 = vld [vmem:[#allocation73_spill] sm:$0xff] }
 0x5b4   :  { %v2331_v13 = vpop.f32.mrf.mxu3 }
 0x5b5   :  { %v7666_v47 = vpack.c.b16 %v3996_v8, %v3995_v37  ;;  %v2413_v29 = vadd.f32 %v2331_v13, %v8375_v55  ;;  %v2995_v16 = vpop.f32.mrf.mxu2  ;;  %v3125_v25 = vadd.f32 %v7447_v28, %v3071_v27 }
 0x5b7   :  { %v2654_v3 = vadd.f32 %v7627_v12, %v2413_v29  ;;  %v2789_v4 = vpop.f32.mrf.mxu1  ;;  %v3175_v46 = vmax.f32 %v3125_v25, 0.0  ;;  %v8379_v25 = vld [vmem:[#allocation30_spill] sm:$0xff] }
 0x5b9   :  { %v2863_v35 = vadd.f32 %v2781_v42, %v2654_v3  ;;  %5255 = vmatmul.msk.bf16.gmra.mxu3 %vm1138_vm3, %v8359_v63  ;;  %v8377_v42 = vld [vmem:[#allocation23_spill] sm:$0xff]  ;;  %v6087_v63 = vld [vmem:[%s8131_s5 + $0x10] sm:$0xff]  ;;  %v3225_v32 = vpack.c.bf16 %v3175_v46, %v3175_v46 }
 0x5ba   :  { %5330 = vmatmul.msk.bf16.gmra.mxu1 %vm1138_vm3, %v8373_v57  ;;  %5367 = vmatmul.msk.bf16.gmra.mxu2 %vm1138_vm3, %v8376_v20 }
 0x5bb   :  { %v3072_v9 = vadd.f32 %v2990_v19, %v2863_v35  ;;  %3348 = vmatpush.bf16.msra.mxu3 %v6087_v63  ;;  %v4052_v40 = vunpack.c.l.b16 %v3225_v32 }
 0x5bc   :  { %v2334_v61 = vpop.f32.mrf.mxu3 }
 0x5bd   :  { %v3126_v12 = vadd.f32 %v7447_v28, %v3072_v9  ;;  %v2414_v58 = vadd.f32 %v2334_v61, %v8377_v42  ;;  %v2998_v33 = vpop.f32.mrf.mxu2 }
 0x5bf   :  { %v3176_v26 = vmax.f32 %v3126_v12, 0.0  ;;  %v2655_v38 = vadd.f32 %v7634_v56, %v2414_v58  ;;  %v2791_v57 = vpop.f32.mrf.mxu1  ;;  %3349 = vmatpush.bf16.msra.mxu3 %v6086_v49  ;;  %v6085_v56 = vld [vmem:[%s8131_s5] sm:$0xff] }
 0x5c1   :  { %v3226_v5 = vpack.c.bf16 %v3176_v26, %v3176_v26  ;;  %v2864_v19 = vadd.f32 %v2784_v14, %v2655_v38  ;;  %v6096_v38 = vld [vmem:[%s8131_s5 + $0x58] sm:$0xff] }
 0x5c3   :  { %v4053_v11 = vunpack.c.l.b16 %v3226_v5  ;;  %v3073_v59 = vadd.f32 %v2993_v2, %v2864_v19  ;;  %3350 = vmatpush.bf16.msra.mxu3 %v6085_v56  ;;  %v2587_v2 = vpop.f32.mrf.mxu0 }
 0x5c4   :  { %v2336_v18 = vpop.f32.mrf.mxu3 }
 0x5c5   :  { %v7691_v31 = vpack.c.b16 %v4053_v11, %v4052_v40  ;;  %v2415_v51 = vadd.f32 %v2336_v18, %v8378_v50  ;;  %v3000_v17 = vpop.f32.mrf.mxu2  ;;  %v3127_v14 = vadd.f32 %v7447_v28, %v3073_v59  ;;  %v8381_v18 = vld [vmem:[#allocation35_spill] sm:$0xff] }
 0x5c7   :  { %v2656_v24 = vadd.f32 %v7645_v34, %v2415_v51  ;;  %v2794_v37 = vpop.f32.mrf.mxu1  ;;  %v3177_v27 = vmax.f32 %v3127_v14, 0.0 }
 0x5c9   :  { %v2865_v8 = vadd.f32 %v2786_v52, %v2656_v24  ;;  %5256 = vmatmul.msk.bf16.gmra.mxu3 %vm1138_vm3, %v8363_v60  ;;  %v3227_v22 = vpack.c.bf16 %v3177_v27, %v3177_v27 }
 0x5cb   :  { %v3074_v13 = vadd.f32 %v2995_v16, %v2865_v8  ;;  %v4109_v52 = vunpack.c.l.b16 %v3227_v22  ;;  %v2590_v58 = vpop.f32.mrf.mxu0  ;;  %v8380_v16 = vld [vmem:[#allocation31_spill] sm:$0xff]  ;;  %v8382_v22 = vld [vmem:[#allocation33_spill] sm:$0xff] }
 0x5cc   :  { %v2339_v55 = vpop.f32.mrf.mxu3 }
 0x5cd   :  { %v3128_v29 = vadd.f32 %v7447_v28, %v3074_v13  ;;  %v2416_v3 = vadd.f32 %v2339_v55, %v8379_v25  ;;  %v3003_v35 = vpop.f32.mrf.mxu2 }
 0x5cf   :  { %v3178_v20 = vmax.f32 %v3128_v29, 0.0  ;;  %v2657_v46 = vadd.f32 %v7661_v10, %v2416_v3  ;;  %v2796_v34 = vpop.f32.mrf.mxu1 }
 0x5d1   :  { %v3228_v9 = vpack.c.bf16 %v3178_v20, %v3178_v20  ;;  %v2866_v61 = vadd.f32 %v2789_v4, %v2657_v46 }
 0x5d3   :  { %v4110_v12 = vunpack.c.l.b16 %v3228_v9  ;;  %v3075_v42 = vadd.f32 %v2998_v33, %v2866_v61  ;;  %v6095_v33 = vld [vmem:[%s8131_s5 + $0x50] sm:$0xff] }
 0x5d4   :  { %v2341_v60 = vpop.f32.mrf.mxu3 }
 0x5d5   :  { %v7704_v63 = vpack.c.b16 %v4110_v12, %v4109_v52  ;;  %v2417_v32 = vadd.f32 %v2341_v60, %v8380_v16  ;;  %v3005_v26 = vpop.f32.mrf.mxu2  ;;  %v3129_v10 = vadd.f32 %v7447_v28, %v3075_v42  ;;  %v6099_v12 = vld [vmem:[%s8131_s5 + $0x70] sm:$0xff] }
 0x5d7   :  { %v2658_v5 = vadd.f32 %v7669_v21, %v2417_v32  ;;  %v2799_v4 = vpop.f32.mrf.mxu1  ;;  %v3179_v49 = vmax.f32 %v3129_v10, 0.0  ;;  %v6094_v21 = vld [vmem:[%s8131_s5 + $0x48] sm:$0xff] }
 0x5d9   :  { %v2867_v19 = vadd.f32 %v2791_v57, %v2658_v5  ;;  %5392 = vmatmul.msk.bf16.vlgmr.msrb.gmra.mxu3 %vm3293_vm4, %v7475_v0  ;;  %v2592_v57 = vpop.f32.mrf.mxu0  ;;  %v3229_v0 = vpack.c.bf16 %v3179_v49, %v3179_v49 }
 0x5da   :  { %3402 = vmatpush.bf16.msrb.mxu3 %v6096_v38  ;;  %v8383_v38 = vld [vmem:[#allocation48_spill] sm:$0xff] }
 0x5db   :  { %v3076_v40 = vadd.f32 %v3000_v17, %v2867_v19  ;;  %v6093_v17 = vld [vmem:[%s8131_s5 + $0x40] sm:$0xff]  ;;  %v4166_v13 = vunpack.c.l.b16 %v3229_v0 }
 0x5dc   :  { %v2344_v11 = vpop.f32.mrf.mxu3  ;;  %v8384_v0 = vld [vmem:[#allocation6_spill] sm:$0xff] }
 0x5dd   :  { %v3130_v59 = vadd.f32 %v7447_v28, %v3076_v40  ;;  %v2418_v50 = vadd.f32 %v2344_v11, %v8381_v18  ;;  %v3008_v51 = vpop.f32.mrf.mxu2 }
 0x5de   :  { %3403 = vmatpush.bf16.msrb.mxu3 %v6095_v33 }
 0x5df   :  { %v3180_v56 = vmax.f32 %v3130_v59, 0.0  ;;  %v2659_v14 = vadd.f32 %v2585_v7, %v2418_v50  ;;  %v2801_v24 = vpop.f32.mrf.mxu1  ;;  %v6100_v7 = vld [vmem:[%s8131_s5 + $0x78] sm:$0xff] }
 0x5e1   :  { %v3230_v8 = vpack.c.bf16 %v3180_v56, %v3180_v56  ;;  %v2868_v27 = vadd.f32 %v2794_v37, %v2659_v14  ;;  %v2595_v61 = vpop.f32.mrf.mxu0 }
 0x5e2   :  { %3404 = vmatpush.bf16.msrb.mxu3 %v6094_v21 }
 0x5e3   :  { %v4167_v55 = vunpack.c.l.b16 %v3230_v8  ;;  %v3077_v29 = vadd.f32 %v3003_v35, %v2868_v27 }
 0x5e4   :  { %v2346_v25 = vpop.f32.mrf.mxu3 }
 0x5e5   :  { %v7725_v3 = vpack.c.b16 %v4167_v55, %v4166_v13  ;;  %v2419_v20 = vadd.f32 %v2346_v25, %v8382_v22  ;;  %v3010_v46 = vpop.f32.mrf.mxu2  ;;  %v3131_v37 = vadd.f32 %v7447_v28, %v3077_v29 }
 0x5e6   :  { %3405 = vmatpush.bf16.msrb.mxu3 %v6093_v17  ;;  %v6103_v17 = vld [vmem:[%s8131_s5 + $0x90] sm:$0xff] }
 0x5e7   :  { %v2660_v9 = vadd.f32 %v2587_v2, %v2419_v20  ;;  %v2804_v35 = vpop.f32.mrf.mxu1  ;;  %v3181_v42 = vmax.f32 %v3131_v37, 0.0  ;;  %v6098_v2 = vld [vmem:[%s8131_s5 + $0x68] sm:$0xff] }
 0x5e8   :  { %v8385_v20 = vld [vmem:[#allocation39_spill] sm:$0xff] }
 0x5e9   :  { %v2869_v52 = vadd.f32 %v2796_v34, %v2660_v9  ;;  %5409 = vmatmul.msk.bf16.vlgmr.msra.gmra.mxu3 %vm3293_vm4, %v7461_v15  ;;  %v3231_v15 = vpack.c.bf16 %v3181_v42, %v3181_v42  ;;  %v2597_v40 = vpop.f32.mrf.mxu0 }
 0x5ea   :  { %3459 = vmatpush.bf16.msra.mxu3 %v6100_v7 }
 0x5eb   :  { %v3078_v60 = vadd.f32 %v3005_v26, %v2869_v52  ;;  %v6097_v26 = vld [vmem:[%s8131_s5 + $0x60] sm:$0xff] }
 0x5ec   :  { %v2349_v16 = vpop.f32.mrf.mxu3 }
 0x5ed   :  { %v3132_v32 = vadd.f32 %v7447_v28, %v3078_v60  ;;  %v2420_v10 = vadd.f32 %v2349_v16, %v8383_v38  ;;  %v3013_v5 = vpop.f32.mrf.mxu2  ;;  %v4223_v28 = vunpack.c.l.b16 %v3231_v15 }
 0x5ee   :  { %3460 = vmatpush.bf16.msra.mxu3 %v6099_v12 }
 0x5ef   :  { %v3182_v34 = vmax.f32 %v3132_v32, 0.0  ;;  %v2661_v19 = vadd.f32 %v2590_v58, %v2420_v10  ;;  %v2806_v18 = vpop.f32.mrf.mxu1  ;;  %v6104_v58 = vld [vmem:[%s8131_s5 + $0x98] sm:$0xff] }
 0x5f1   :  { %v3232_v33 = vpack.c.bf16 %v3182_v34, %v3182_v34  ;;  %v2870_v49 = vadd.f32 %v2799_v4, %v2661_v19  ;;  %v7754_v4 = vld [vmem:[%s8132_s4] ss:$0 sm:$0xff]  ;;  %v2600_v29 = vpop.f32.mrf.mxu0 }
 0x5f2   :  { %3461 = vmatpush.bf16.msra.mxu3 %v6098_v2  ;;  %v8386_v2 = vld [vmem:[#allocation40_spill] sm:$0xff] }
 0x5f3   :  { %v4224_v11 = vunpack.c.l.b16 %v3232_v33  ;;  %v3079_v59 = vadd.f32 %v3008_v51, %v2870_v49 }
 0x5f4   :  { %v2351_v50 = vpop.f32.mrf.mxu3 }
 0x5f5   :  { %v7745_v21 = vpack.c.b16 %v4224_v11, %v4223_v28  ;;  %v2421_v56 = vadd.f32 %v2351_v50, %v8384_v0  ;;  %v3015_v14 = vpop.f32.mrf.mxu2  ;;  %v3133_v8 = vadd.f32 %v7754_v4, %v3079_v59  ;;  %v8387_v0 = vld [vmem:[#allocation37_spill] sm:$0xff] }
 0x5f6   :  { %3462 = vmatpush.bf16.msra.mxu3 %v6097_v26  ;;  %v6107_v26 = vld [vmem:[%s8131_s5 + $0xb0] sm:$0xff] }
 0x5f7   :  { %v2662_v51 = vadd.f32 %v2592_v57, %v2421_v56  ;;  %v3183_v13 = vmax.f32 %v3133_v8, 0.0  ;;  %v2809_v37 = vpop.f32.mrf.mxu1  ;;  %v6102_v57 = vld [vmem:[%s8131_s5 + $0x88] sm:$0xff] }
 0x5f9   :  { %v2871_v27 = vadd.f32 %v2801_v24, %v2662_v51  ;;  %5434 = vmatmul.msk.bf16.vlgmr.msrb.gmra.mxu3 %vm3293_vm4, %v7492_v54  ;;  %v3233_v54 = vpack.c.bf16 %v3183_v13, %v3183_v13  ;;  %v2602_v34 = vpop.f32.mrf.mxu0 }
 0x5fa   :  { %3516 = vmatpush.bf16.msrb.mxu3 %v6104_v58 }
 0x5fb   :  { %v3080_v55 = vadd.f32 %v3010_v46, %v2871_v27  ;;  %v6101_v46 = vld [vmem:[%s8131_s5 + $0x80] sm:$0xff]  ;;  %v4280_v60 = vunpack.c.l.b16 %v3233_v54 }
 0x5fc   :  { %v2354_v25 = vpop.f32.mrf.mxu3 }
 0x5fd   :  { %v3134_v22 = vadd.f32 %v7754_v4, %v3080_v55  ;;  %v2422_v7 = vadd.f32 %v2354_v25, %v8385_v20  ;;  %v3018_v52 = vpop.f32.mrf.mxu2 }
 0x5fe   :  { %3517 = vmatpush.bf16.msrb.mxu3 %v6103_v17 }
 0x5ff   :  { %v3184_v24 = vmax.f32 %v3134_v22, 0.0  ;;  %v2663_v9 = vadd.f32 %v2595_v61, %v2422_v7  ;;  %v6108_v61 = vld [vmem:[%s8131_s5 + $0xb8] sm:$0xff]  ;;  %v2811_v33 = vpop.f32.mrf.mxu1 }
 0x601   :  { %v3234_v12 = vpack.c.bf16 %v3184_v24, %v3184_v24  ;;  %v2872_v42 = vadd.f32 %v2804_v35, %v2663_v9  ;;  %v2605_v8 = vpop.f32.mrf.mxu0 }
 0x602   :  { %3518 = vmatpush.bf16.msrb.mxu3 %v6102_v57  ;;  %v8388_v57 = vld [vmem:[#allocation2_spill] sm:$0xff] }
 0x603   :  { %v4281_v16 = vunpack.c.l.b16 %v3234_v12  ;;  %v3081_v32 = vadd.f32 %v3013_v5, %v2872_v42  ;;  %v6111_v42 = vld [vmem:[%s8131_s5 + $0xd0] sm:$0xff] }
 0x604   :  { %v2356_v38 = vpop.f32.mrf.mxu3 }
 0x605   :  { %v7770_v10 = vpack.c.b16 %v4281_v16, %v4280_v60  ;;  %v2423_v15 = vadd.f32 %v2356_v38, %v8386_v2  ;;  %v3135_v35 = vadd.f32 %v7754_v4, %v3081_v32  ;;  %v3020_v5 = vpop.f32.mrf.mxu2 }
 0x606   :  { %3519 = vmatpush.bf16.msrb.mxu3 %v6101_v46 }
 0x607   :  { %v2664_v19 = vadd.f32 %v2597_v40, %v2423_v15  ;;  %v3185_v28 = vmax.f32 %v3135_v35, 0.0  ;;  %v6106_v40 = vld [vmem:[%s8131_s5 + $0xa8] sm:$0xff]  ;;  %v2814_v17 = vpop.f32.mrf.mxu1 }
 0x609   :  { %v2873_v49 = vadd.f32 %v2806_v18, %v2664_v19  ;;  %5459 = vmatmul.msk.bf16.vlgmr.msra.gmra.mxu3 %vm3293_vm4, %v7506_v62  ;;  %v3235_v18 = vpack.c.bf16 %v3185_v28, %v3185_v28  ;;  %v2607_v12 = vpop.f32.mrf.mxu0 }
 0x60a   :  { %3573 = vmatpush.bf16.msra.mxu3 %v6108_v61 }
 0x60b   :  { %v3082_v11 = vadd.f32 %v3015_v14, %v2873_v49  ;;  %v6105_v14 = vld [vmem:[%s8131_s5 + $0xa0] sm:$0xff]  ;;  %v4337_v13 = vunpack.c.l.b16 %v3235_v18 }
 0x60c   :  { %v2359_v59 = vpop.f32.mrf.mxu3  ;;  %v6109_v49 = vld [vmem:[%s8131_s5 + $0xc0] sm:$0xff] }
 0x60d   :  { %v3136_v50 = vadd.f32 %v7754_v4, %v3082_v11  ;;  %v2424_v56 = vadd.f32 %v2359_v59, %v8387_v0  ;;  %v3023_v22 = vpop.f32.mrf.mxu2 }
 0x60e   :  { %3574 = vmatpush.bf16.msra.mxu3 %v6107_v26 }
 0x60f   :  { %v3186_v62 = vmax.f32 %v3136_v50, 0.0  ;;  %v2665_v58 = vadd.f32 %v2600_v29, %v2424_v56  ;;  %v6183_v29 = vld [vmem:[%s8131_s5 + $0x310] sm:$0xff]  ;;  %v2816_v16 = vpop.f32.mrf.mxu1  ;;  %v8389_v50 = vld [vmem:[#allocation43_spill] sm:$0xff] }
 0x610   :  { %4657 = vmatpush.bf16.msra.mxu0 %v6183_v29 }
 0x611   :  { %v3236_v51 = vpack.c.bf16 %v3186_v62, %v3186_v62  ;;  %v2874_v27 = vadd.f32 %v2809_v37, %v2665_v58  ;;  %v6112_v37 = vld [vmem:[%s8131_s5 + $0xd8] sm:$0xff] }
 0x612   :  { %3575 = vmatpush.bf16.msra.mxu3 %v6106_v40  ;;  %v6116_v40 = vld [vmem:[%s8131_s5 + $0xf8] sm:$0xff] }
 0x613   :  { %v4338_v55 = vunpack.c.l.b16 %v3236_v51  ;;  %v3083_v25 = vadd.f32 %v3018_v52, %v2874_v27  ;;  %v6115_v51 = vld [vmem:[%s8131_s5 + $0xf0] sm:$0xff] }
 0x614   :  { %v2361_v20 = vpop.f32.mrf.mxu3 }
 0x615   :  { %v7790_v7 = vpack.c.b16 %v4338_v55, %v4337_v13  ;;  %v2425_v54 = vadd.f32 %v2361_v20, %v8388_v57  ;;  %v3137_v24 = vadd.f32 %v7754_v4, %v3083_v25  ;;  %v3025_v15 = vpop.f32.mrf.mxu2 }
 0x616   :  { %3576 = vmatpush.bf16.msra.mxu3 %v6105_v14 }
 0x617   :  { %v2666_v9 = vadd.f32 %v2602_v34, %v2425_v54  ;;  %v3187_v46 = vmax.f32 %v3137_v24, 0.0  ;;  %v2819_v56 = vpop.f32.mrf.mxu1 }
 0x619   :  { %v2875_v52 = vadd.f32 %v2811_v33, %v2666_v9  ;;  %5484 = vmatmul.msk.bf16.vlgmr.msrb.gmra.mxu3 %vm3293_vm4, %v7520_v36  ;;  %v6110_v36 = vld [vmem:[%s8131_s5 + $0xc8] sm:$0xff]  ;;  %v3237_v34 = vpack.c.bf16 %v3187_v46, %v3187_v46  ;;  %v6113_v9 = vld [vmem:[%s8131_s5 + $0xe0] sm:$0xff] }
 0x61a   :  { %3630 = vmatpush.bf16.msrb.mxu3 %v6112_v37 }
 0x61b   :  { %v3084_v60 = vadd.f32 %v3020_v5, %v2875_v52  ;;  %v4394_v5 = vunpack.c.l.b16 %v3237_v34 }
 0x61c   :  { %v2364_v32 = vpop.f32.mrf.mxu3 }
 0x61d   :  { %v3138_v38 = vadd.f32 %v7754_v4, %v3084_v60  ;;  %v2426_v2 = vadd.f32 %v2364_v32, %v7391_v6  ;;  %v2610_v6 = vpop.f32.mrf.mxu0  ;;  %v3028_v58 = vpop.f32.mrf.mxu2  ;;  %v8390_v60 = vld [vmem:[#allocation44_spill] sm:$0xff]  ;;  %v6120_v32 = vld [vmem:[%s8131_s5 + $0x118] sm:$0xff] }
 0x61e   :  { %3631 = vmatpush.bf16.msrb.mxu3 %v6111_v42 }
 0x61f   :  { %v3188_v61 = vmax.f32 %v3138_v38, 0.0  ;;  %v2667_v35 = vadd.f32 %v2605_v8, %v2426_v2  ;;  %v2821_v54 = vpop.f32.mrf.mxu1 }
 0x621   :  { %v3238_v19 = vpack.c.bf16 %v3188_v61, %v3188_v61  ;;  %v2876_v33 = vadd.f32 %v2814_v17, %v2667_v35  ;;  %v6119_v61 = vld [vmem:[%s8131_s5 + $0x110] sm:$0xff] }
 0x622   :  { %3632 = vmatpush.bf16.msrb.mxu3 %v6110_v36 }
 0x623   :  { %v4395_v26 = vunpack.c.l.b16 %v3238_v19  ;;  %v3085_v28 = vadd.f32 %v3023_v22, %v2876_v33  ;;  %v6114_v22 = vld [vmem:[%s8131_s5 + $0xe8] sm:$0xff]  ;;  %v6192_v33 = vld [vmem:[%s8133_s7 + $0x38] sm:$0xff] }
 0x624   :  { %v2366_v11 = vpop.f32.mrf.mxu3  ;;  %4745 = vmatpush.bf16.msrb.mxu1 %v6192_v33 }
 0x625   :  { %v7813_v59 = vpack.c.b16 %v4395_v26, %v4394_v5  ;;  %v2427_v0 = vadd.f32 %v2366_v11, %v8389_v50  ;;  %v3139_v18 = vadd.f32 %v7754_v4, %v3085_v28  ;;  %v2612_v25 = vpop.f32.mrf.mxu0  ;;  %v3030_v24 = vpop.f32.mrf.mxu2 }
 0x626   :  { %3633 = vmatpush.bf16.msrb.mxu3 %v6109_v49 }
 0x627   :  { %v2668_v62 = vadd.f32 %v2607_v12, %v2427_v0  ;;  %v3189_v27 = vmax.f32 %v3139_v18, 0.0  ;;  %v2824_v34 = vpop.f32.mrf.mxu1  ;;  %v6182_v0 = vld [vmem:[%s8131_s5 + $0x308] sm:$0xff] }
 0x628   :  { %4658 = vmatpush.bf16.msra.mxu0 %v6182_v0 }
 0x629   :  { %v2877_v8 = vadd.f32 %v2816_v16, %v2668_v62  ;;  %5509 = vmatmul.msk.bf16.vlgmr.msra.gmra.mxu3 %vm3293_vm4, %v7534_v43  ;;  %v3239_v20 = vpack.c.bf16 %v3189_v27, %v3189_v27 }
 0x62a   :  { %3687 = vmatpush.bf16.msra.mxu3 %v6116_v40 }
 0x62b   :  { %v3086_v17 = vadd.f32 %v3025_v15, %v2877_v8  ;;  %v4451_v52 = vunpack.c.l.b16 %v3239_v20 }
 0x62c   :  { %v2369_v14 = vpop.f32.mrf.mxu3 }
 0x62d   :  { %v3140_v13 = vadd.f32 %v7754_v4, %v3086_v17  ;;  %v2428_v55 = vadd.f32 %v2369_v14, %v7407_v41  ;;  %v2615_v15 = vpop.f32.mrf.mxu0  ;;  %v3033_v49 = vpop.f32.mrf.mxu2 }
 0x62e   :  { %3688 = vmatpush.bf16.msra.mxu3 %v6115_v51  ;;  %v6181_v51 = vld [vmem:[%s8131_s5 + $0x300] sm:$0xff] }
 0x62f   :  { %v3190_v43 = vmax.f32 %v3140_v13, 0.0  ;;  %v2669_v57 = vadd.f32 %v2610_v6, %v2428_v55  ;;  %v2826_v27 = vpop.f32.mrf.mxu1  ;;  %v8391_v13 = vld [vmem:[#allocation42_spill] sm:$0xff]  ;;  %4659 = vmatpush.bf16.msra.mxu0 %v6181_v51 }
 0x631   :  { %v3240_v29 = vpack.c.bf16 %v3190_v43, %v3190_v43  ;;  %v2878_v37 = vadd.f32 %v2819_v56, %v2669_v57 }
 0x632   :  { %3689 = vmatpush.bf16.msra.mxu3 %v6114_v22  ;;  %v6124_v22 = vld [vmem:[%s8131_s5 + $0x138] sm:$0xff] }
 0x633   :  { %v4452_v41 = vunpack.c.l.b16 %v3240_v29  ;;  %v3087_v12 = vadd.f32 %v3028_v58, %v2878_v37 }
 0x634   :  { %v2371_v42 = vpop.f32.mrf.mxu3 }
 0x635   :  { %v7833_v46 = vpack.c.b16 %v4452_v41, %v4451_v52  ;;  %v2429_v16 = vadd.f32 %v2371_v42, %v8390_v60  ;;  %v3141_v38 = vadd.f32 %v7754_v4, %v3087_v12  ;;  %v2617_v18 = vpop.f32.mrf.mxu0  ;;  %v8392_v41 = vld [vmem:[#allocation3_spill] sm:$0xff] }
 0x636   :  { %3690 = vmatpush.bf16.msra.mxu3 %v6113_v9  ;;  %v6122_v60 = vld [vmem:[%s8131_s5 + $0x128] sm:$0xff] }
 0x637   :  { %v2670_v2 = vadd.f32 %v2612_v25, %v2429_v16  ;;  %v3191_v35 = vmax.f32 %v3141_v38, 0.0  ;;  %v3035_v25 = vpop.f32.mrf.mxu2  ;;  %v2829_v42 = vpop.f32.mrf.mxu1 }
 0x639   :  { %v2879_v36 = vadd.f32 %v2821_v54, %v2670_v2  ;;  %5534 = vmatmul.msk.bf16.vlgmr.msrb.gmra.mxu3 %vm3293_vm4, %v7548_v48  ;;  %v6118_v48 = vld [vmem:[%s8131_s5 + $0x108] sm:$0xff]  ;;  %v3241_v6 = vpack.c.bf16 %v3191_v35, %v3191_v35  ;;  %v6123_v54 = vld [vmem:[%s8131_s5 + $0x130] sm:$0xff] }
 0x63a   :  { %3744 = vmatpush.bf16.msrb.mxu3 %v6120_v32 }
 0x63b   :  { %v3088_v19 = vadd.f32 %v3030_v24, %v2879_v36  ;;  %v4508_v62 = vunpack.c.l.b16 %v3241_v6  ;;  %v6121_v36 = vld [vmem:[%s8131_s5 + $0x120] sm:$0xff] }
 0x63c   :  { %v2374_v5 = vpop.f32.mrf.mxu3 }
 0x63d   :  { %v3142_v26 = vadd.f32 %v7754_v4, %v3088_v19  ;;  %v2430_v28 = vadd.f32 %v2374_v5, %v7419_v45  ;;  %v6117_v45 = vld [vmem:[%s8131_s5 + $0x100] sm:$0xff]  ;;  %v2620_v24 = vpop.f32.mrf.mxu0 }
 0x63e   :  { %3745 = vmatpush.bf16.msrb.mxu3 %v6119_v61 }
 0x63f   :  { %v3192_v11 = vmax.f32 %v3142_v26, 0.0  ;;  %v2671_v50 = vadd.f32 %v2615_v15, %v2430_v28  ;;  %v3038_v38 = vpop.f32.mrf.mxu2  ;;  %v6128_v28 = vld [vmem:[%s8131_s5 + $0x158] sm:$0xff] }
 0x641   :  { %v3242_v56 = vpack.c.bf16 %v3192_v11, %v3192_v11  ;;  %v2880_v40 = vadd.f32 %v2824_v34, %v2671_v50  ;;  %v2831_v11 = vpop.f32.mrf.mxu1 }
 0x642   :  { %3746 = vmatpush.bf16.msrb.mxu3 %v6118_v48 }
 0x643   :  { %v4509_v58 = vunpack.c.l.b16 %v3242_v56  ;;  %v3089_v8 = vadd.f32 %v3033_v49, %v2880_v40  ;;  %v8393_v49 = vld [vmem:[#allocation67_spill] sm:$0xff]  ;;  %v6127_v56 = vld [vmem:[%s8131_s5 + $0x150] sm:$0xff] }
 0x644   :  { %v2376_v17 = vpop.f32.mrf.mxu3 }
 0x645   :  { %v7862_v14 = vpack.c.b16 %v4509_v58, %v4508_v62  ;;  %v2431_v55 = vadd.f32 %v2376_v17, %v8391_v13  ;;  %v3143_v20 = vadd.f32 %v7754_v4, %v3089_v8  ;;  %v2622_v26 = vpop.f32.mrf.mxu0  ;;  %v6191_v58 = vld [vmem:[%s8133_s7 + $0x30] sm:$0xff]  ;;  %v6125_v17 = vld [vmem:[%s8131_s5 + $0x140] sm:$0xff] }
 0x646   :  { %3747 = vmatpush.bf16.msrb.mxu3 %v6117_v45  ;;  %4746 = vmatpush.bf16.msrb.mxu1 %v6191_v58 }
 0x647   :  { %v2672_v43 = vadd.f32 %v2617_v18, %v2431_v55  ;;  %v3193_v29 = vmax.f32 %v3143_v20, 0.0  ;;  %v3040_v0 = vpop.f32.mrf.mxu2  ;;  %v6131_v20 = vld [vmem:[%s8131_s5 + $0x170] sm:$0xff] }
 0x649   :  { %v2881_v57 = vadd.f32 %v2826_v27, %v2672_v43  ;;  %5559 = vmatmul.msk.bf16.vlgmr.msra.gmra.mxu3 %vm3293_vm4, %v7562_v44  ;;  %v3243_v44 = vpack.c.bf16 %v3193_v29, %v3193_v29  ;;  %v6129_v29 = vld [vmem:[%s8131_s5 + $0x160] sm:$0xff] }
 0x64a   :  { %3801 = vmatpush.bf16.msra.mxu3 %v6124_v22  ;;  %v6132_v22 = vld [vmem:[%s8131_s5 + $0x178] sm:$0xff] }
 0x64b   :  { %v3090_v37 = vadd.f32 %v3035_v25, %v2881_v57  ;;  %v4565_v34 = vunpack.c.l.b16 %v3243_v44 }
 0x64c   :  { %v2379_v9 = vpop.f32.mrf.mxu3 }
 0x64d   :  { %v3144_v52 = vadd.f32 %v7754_v4, %v3090_v37  ;;  %v2432_v12 = vadd.f32 %v2379_v9, %v8392_v41  ;;  %v6135_v9 = vld [vmem:[%s8131_s5 + $0x190] sm:$0xff] }
 0x64e   :  { %3802 = vmatpush.bf16.msra.mxu3 %v6123_v54  ;;  %v6130_v54 = vld [vmem:[%s8131_s5 + $0x168] sm:$0xff] }
 0x64f   :  { %v3194_v16 = vmax.f32 %v3144_v52, 0.0  ;;  %v2673_v32 = vadd.f32 %v2620_v24, %v2432_v12  ;;  %v6134_v12 = vld [vmem:[%s8131_s5 + $0x188] sm:$0xff] }
 0x651   :  { %v3244_v2 = vpack.c.bf16 %v3194_v16, %v3194_v16  ;;  %v2882_v15 = vadd.f32 %v2829_v42, %v2673_v32  ;;  %v6133_v42 = vld [vmem:[%s8131_s5 + $0x180] sm:$0xff]  ;;  %v6139_v16 = vld [vmem:[%s8131_s5 + $0x1b0] sm:$0xff] }
 0x652   :  { %3803 = vmatpush.bf16.msra.mxu3 %v6122_v60 }
 0x653   :  { %v4566_v61 = vunpack.c.l.b16 %v3244_v2  ;;  %v3091_v35 = vadd.f32 %v3038_v38, %v2882_v15  ;;  %v6190_v2 = vld [vmem:[%s8133_s7 + $0x28] sm:$0xff] }
 0x654   :  { %v2381_v19 = vpop.f32.mrf.mxu3  ;;  %v6138_v15 = vld [vmem:[%s8131_s5 + $0x1a8] sm:$0xff]  ;;  %4747 = vmatpush.bf16.msrb.mxu1 %v6190_v2 }
 0x655   :  { %v7882_v33 = vpack.c.b16 %v4566_v61, %v4565_v34  ;;  %v2433_v5 = vadd.f32 %v2381_v19, %v8393_v49  ;;  %v3145_v48 = vadd.f32 %v7754_v4, %v3091_v35  ;;  %v6144_v61 = vld [vmem:[%s8131_s5 + $0x1d8] sm:$0xff]  ;;  %v6143_v35 = vld [vmem:[%s8131_s5 + $0x1d0] sm:$0xff] }
 0x656   :  { %3804 = vmatpush.bf16.msra.mxu3 %v6121_v36 }
 0x657   :  { %v2674_v6 = vadd.f32 %v2622_v26, %v2433_v5  ;;  %v3195_v40 = vmax.f32 %v3145_v48, 0.0  ;;  %v6142_v5 = vld [vmem:[%s8131_s5 + $0x1c8] sm:$0xff]  ;;  %v6141_v26 = vld [vmem:[%s8131_s5 + $0x1c0] sm:$0xff] }
 0x659   :  { %v2883_v50 = vadd.f32 %v2831_v11, %v2674_v6  ;;  %5584 = vmatmul.msk.bf16.vlgmr.msrb.gmra.mxu3 %vm3293_vm4, %v7576_v39  ;;  %v6126_v39 = vld [vmem:[%s8131_s5 + $0x148] sm:$0xff]  ;;  %v3245_v8 = vpack.c.bf16 %v3195_v40, %v3195_v40  ;;  %v6147_v6 = vld [vmem:[%s8131_s5 + $0x1f0] sm:$0xff] }
 0x65a   :  { %3858 = vmatpush.bf16.msrb.mxu3 %v6128_v28 }
 0x65b   :  { %v3092_v18 = vadd.f32 %v3040_v0, %v2883_v50  ;;  %v4622_v13 = vunpack.c.l.b16 %v3245_v8  ;;  %v6146_v0 = vld [vmem:[%s8131_s5 + $0x1e8] sm:$0xff]  ;;  %v6149_v8 = vld [vmem:[%s8131_s5 + $0x200] sm:$0xff] }
 0x65c   :  { %v3306_v45 = vpop.f32.mrf.mxu3 }
 0x65d   :  { %v3146_v62 = vadd.f32 %v7754_v4, %v3092_v18 }
 0x65e   :  { %3859 = vmatpush.bf16.msrb.mxu3 %v6127_v56  ;;  %v6145_v56 = vld [vmem:[%s8131_s5 + $0x1e0] sm:$0xff] }
 0x65f   :  { %v3196_v51 = vmax.f32 %v3146_v62, 0.0 }
 0x661   :  { %v3246_v27 = vpack.c.bf16 %v3196_v51, %v3196_v51 }
 0x662   :  { %3860 = vmatpush.bf16.msrb.mxu3 %v6126_v39  ;;  %v6150_v39 = vld [vmem:[%s8131_s5 + $0x208] sm:$0xff] }
 0x663   :  { %v4623_v4 = vunpack.c.l.b16 %v3246_v27 }
 0x664   :  { %v3308_v55 = vpop.f32.mrf.mxu3 }
 0x665   :  { %v4624_v25 = vpack.c.b16 %v4623_v4, %v4622_v13  ;;  %v6155_v13 = vld [vmem:[%s8131_s5 + $0x230] sm:$0xff] }
 0x666   :  { %3861 = vmatpush.bf16.msrb.mxu3 %v6125_v17  ;;  %v6156_v17 = vld [vmem:[%s8131_s5 + $0x238] sm:$0xff] }
 0x667   :  { %5984 = vmatmul.msk.bf16.vlgmr.msra.gmra.mxu0 %vm3293_vm4, %v4624_v25  ;;  %v6154_v25 = vld [vmem:[%s8131_s5 + $0x228] sm:$0xff] }
 0x669   :  { %5609 = vmatmul.msk.bf16.vlgmr.msra.gmra.mxu3 %vm3293_vm4, %v7595_v53  ;;  %v6136_v53 = vld [vmem:[%s8131_s5 + $0x198] sm:$0xff] }
 0x66a   :  { %3915 = vmatpush.bf16.msra.mxu3 %v6132_v22  ;;  %v6153_v22 = vld [vmem:[%s8131_s5 + $0x220] sm:$0xff] }
 0x66c   :  { %v3352_v43 = vpop.f32.mrf.mxu3 }
 0x66d   :  { %v3353_v57 = vadd.f32 %v3352_v43, %v3306_v45  ;;  %v6151_v45 = vld [vmem:[%s8131_s5 + $0x210] sm:$0xff] }
 0x66e   :  { %3916 = vmatpush.bf16.msra.mxu3 %v6131_v20 }
 0x672   :  { %3917 = vmatpush.bf16.msra.mxu3 %v6130_v54 }
 0x674   :  { %v3354_v37 = vpop.f32.mrf.mxu3 }
 0x675   :  { %v3355_v24 = vadd.f32 %v3354_v37, %v3308_v55  ;;  %v6158_v37 = vld [vmem:[%s8131_s5 + $0x248] sm:$0xff] }
 0x676   :  { %3918 = vmatpush.bf16.msra.mxu3 %v6129_v29 }
 0x679   :  { %5634 = vmatmul.msk.bf16.vlgmr.msrb.gmra.mxu3 %vm3293_vm4, %v7611_v30  ;;  %v6140_v30 = vld [vmem:[%s8131_s5 + $0x1b8] sm:$0xff] }
 0x67a   :  { %3972 = vmatpush.bf16.msrb.mxu3 %v6136_v53 }
 0x67c   :  { %v3407_v52 = vpop.f32.mrf.mxu3 }
 0x67d   :  { %v3412_v41 = vadd.f32 %v3407_v52, %v3353_v57  ;;  %v6159_v57 = vld [vmem:[%s8131_s5 + $0x250] sm:$0xff] }
 0x67e   :  { %3973 = vmatpush.bf16.msrb.mxu3 %v6135_v9  ;;  %v6163_v52 = vld [vmem:[%s8131_s5 + $0x270] sm:$0xff] }
 0x682   :  { %3974 = vmatpush.bf16.msrb.mxu3 %v6134_v12 }
 0x684   :  { %v3409_v60 = vpop.f32.mrf.mxu3 }
 0x685   :  { %v3413_v44 = vadd.f32 %v3409_v60, %v3355_v24  ;;  %v6157_v24 = vld [vmem:[%s8131_s5 + $0x240] sm:$0xff] }
 0x686   :  { %3975 = vmatpush.bf16.msrb.mxu3 %v6133_v42  ;;  %v6162_v42 = vld [vmem:[%s8131_s5 + $0x268] sm:$0xff]  ;;  %v6161_v60 = vld [vmem:[%s8131_s5 + $0x260] sm:$0xff] }
 0x689   :  { %5659 = vmatmul.msk.bf16.vlgmr.msra.gmra.mxu3 %vm3293_vm4, %v7629_v1  ;;  %v6137_v1 = vld [vmem:[%s8131_s5 + $0x1a0] sm:$0xff] }
 0x68a   :  { %4029 = vmatpush.bf16.msra.mxu3 %v6140_v30 }
 0x68c   :  { %v3464_v32 = vpop.f32.mrf.mxu3 }
 0x68d   :  { %v3469_v38 = vadd.f32 %v3464_v32, %v3412_v41  ;;  %v6167_v32 = vld [vmem:[%s8131_s5 + $0x290] sm:$0xff] }
 0x68e   :  { %4030 = vmatpush.bf16.msra.mxu3 %v6139_v16  ;;  %v6168_v16 = vld [vmem:[%s8131_s5 + $0x298] sm:$0xff] }
 0x692   :  { %4031 = vmatpush.bf16.msra.mxu3 %v6138_v15  ;;  %v6166_v15 = vld [vmem:[%s8131_s5 + $0x288] sm:$0xff] }
 0x694   :  { %v3466_v36 = vpop.f32.mrf.mxu3 }
 0x695   :  { %v3470_v34 = vadd.f32 %v3466_v36, %v3413_v44 }
 0x696   :  { %4032 = vmatpush.bf16.msra.mxu3 %v6137_v1  ;;  %v6165_v1 = vld [vmem:[%s8131_s5 + $0x280] sm:$0xff] }
 0x699   :  { %5684 = vmatmul.msk.bf16.vlgmr.msrb.gmra.mxu3 %vm3293_vm4, %v7647_v23  ;;  %v6148_v23 = vld [vmem:[%s8131_s5 + $0x1f8] sm:$0xff] }
 0x69a   :  { %4086 = vmatpush.bf16.msrb.mxu3 %v6144_v61  ;;  %v6171_v61 = vld [vmem:[%s8131_s5 + $0x2b0] sm:$0xff] }
 0x69c   :  { %v3521_v19 = vpop.f32.mrf.mxu3 }
 0x69d   :  { %v3526_v49 = vadd.f32 %v3521_v19, %v3469_v38 }
 0x69e   :  { %4087 = vmatpush.bf16.msrb.mxu3 %v6143_v35 }
 0x6a2   :  { %4088 = vmatpush.bf16.msrb.mxu3 %v6142_v5  ;;  %v6169_v5 = vld [vmem:[%s8131_s5 + $0x2a0] sm:$0xff] }
 0x6a4   :  { %v3523_v28 = vpop.f32.mrf.mxu3 }
 0x6a5   :  { %v3527_v48 = vadd.f32 %v3523_v28, %v3470_v34 }
 0x6a6   :  { %4089 = vmatpush.bf16.msrb.mxu3 %v6141_v26 }
 0x6a9   :  { %5709 = vmatmul.msk.bf16.vlgmr.msra.gmra.mxu3 %vm3293_vm4, %v7666_v47  ;;  %v6152_v47 = vld [vmem:[%s8131_s5 + $0x218] sm:$0xff] }
 0x6aa   :  { %4143 = vmatpush.bf16.msra.mxu3 %v6148_v23 }
 0x6ac   :  { %v3578_v11 = vpop.f32.mrf.mxu3 }
 0x6ad   :  { %v3583_v50 = vadd.f32 %v3578_v11, %v3526_v49  ;;  %v6170_v49 = vld [vmem:[%s8131_s5 + $0x2a8] sm:$0xff] }
 0x6ae   :  { %4144 = vmatpush.bf16.msra.mxu3 %v6147_v6  ;;  %v6174_v11 = vld [vmem:[%s8131_s5 + $0x2c8] sm:$0xff] }
 0x6b2   :  { %4145 = vmatpush.bf16.msra.mxu3 %v6146_v0 }
 0x6b4   :  { %v3580_v40 = vpop.f32.mrf.mxu3 }
 0x6b5   :  { %v3584_v18 = vadd.f32 %v3580_v40, %v3527_v48  ;;  %v6175_v48 = vld [vmem:[%s8131_s5 + $0x2d0] sm:$0xff] }
 0x6b6   :  { %4146 = vmatpush.bf16.msra.mxu3 %v6145_v56  ;;  %v6187_v40 = vld [vmem:[%s8133_s7 + $0x10] sm:$0xff] }
 0x6b9   :  { %5734 = vmatmul.msk.bf16.vlgmr.msrb.gmra.mxu3 %vm3293_vm4, %v7691_v31  ;;  %v6189_v31 = vld [vmem:[%s8133_s7 + $0x20] sm:$0xff] }
 0x6ba   :  { %4200 = vmatpush.bf16.msrb.mxu3 %v6152_v47  ;;  %4748 = vmatpush.bf16.msrb.mxu1 %v6189_v31 }
 0x6bc   :  { %v3635_v62 = vpop.f32.mrf.mxu3 }
 0x6bd   :  { %v3640_v58 = vadd.f32 %v3635_v62, %v3583_v50  ;;  %v6173_v50 = vld [vmem:[%s8131_s5 + $0x2c0] sm:$0xff]  ;;  %v6178_v62 = vld [vmem:[%s8131_s5 + $0x2e8] sm:$0xff] }
 0x6be   :  { %4201 = vmatpush.bf16.msrb.mxu3 %v6151_v45 }
 0x6c2   :  { %4202 = vmatpush.bf16.msrb.mxu3 %v6150_v39 }
 0x6c4   :  { %v3637_v51 = vpop.f32.mrf.mxu3 }
 0x6c5   :  { %v3641_v27 = vadd.f32 %v3637_v51, %v3584_v18  ;;  %v6179_v18 = vld [vmem:[%s8131_s5 + $0x2f0] sm:$0xff] }
 0x6c6   :  { %4203 = vmatpush.bf16.msrb.mxu3 %v6149_v8 }
 0x6c9   :  { %5759 = vmatmul.msk.bf16.vlgmr.msra.gmra.mxu3 %vm3293_vm4, %v7704_v63  ;;  %v6160_v63 = vld [vmem:[%s8131_s5 + $0x258] sm:$0xff] }
 0x6ca   :  { %4257 = vmatpush.bf16.msra.mxu3 %v6156_v17 }
 0x6cc   :  { %v3692_v4 = vpop.f32.mrf.mxu3 }
 0x6cd   :  { %v3697_v55 = vadd.f32 %v3692_v4, %v3640_v58 }
 0x6ce   :  { %4258 = vmatpush.bf16.msra.mxu3 %v6155_v13 }
 0x6d2   :  { %4259 = vmatpush.bf16.msra.mxu3 %v6154_v25  ;;  %v6186_v25 = vld [vmem:[%s8133_s7 + $0x8] sm:$0xff] }
 0x6d4   :  { %v3694_v20 = vpop.f32.mrf.mxu3 }
 0x6d5   :  { %v3698_v43 = vadd.f32 %v3694_v20, %v3641_v27 }
 0x6d6   :  { %4260 = vmatpush.bf16.msra.mxu3 %v6153_v22 }
 0x6d9   :  { %5784 = vmatmul.msk.bf16.vlgmr.msrb.gmra.mxu3 %vm3293_vm4, %v7725_v3  ;;  %v6164_v3 = vld [vmem:[%s8131_s5 + $0x278] sm:$0xff] }
 0x6da   :  { %4314 = vmatpush.bf16.msrb.mxu3 %v6160_v63 }
 0x6dc   :  { %v3749_v54 = vpop.f32.mrf.mxu3 }
 0x6dd   :  { %v3754_v29 = vadd.f32 %v3749_v54, %v3697_v55 }
 0x6de   :  { %4315 = vmatpush.bf16.msrb.mxu3 %v6159_v57 }
 0x6e2   :  { %4316 = vmatpush.bf16.msrb.mxu3 %v6158_v37 }
 0x6e4   :  { %v3751_v53 = vpop.f32.mrf.mxu3 }
 0x6e5   :  { %v3755_v9 = vadd.f32 %v3751_v53, %v3698_v43 }
 0x6e6   :  { %4317 = vmatpush.bf16.msrb.mxu3 %v6157_v24 }
 0x6e9   :  { %5809 = vmatmul.msk.bf16.vlgmr.msra.gmra.mxu3 %vm3293_vm4, %v7745_v21  ;;  %v6188_v21 = vld [vmem:[%s8133_s7 + $0x18] sm:$0xff] }
 0x6ea   :  { %4371 = vmatpush.bf16.msra.mxu3 %v6164_v3  ;;  %4749 = vmatpush.bf16.msrb.mxu1 %v6188_v21 }
 0x6ec   :  { %v3806_v41 = vpop.f32.mrf.mxu3 }
 0x6ed   :  { %v3811_v12 = vadd.f32 %v3806_v41, %v3754_v29 }
 0x6ee   :  { %4372 = vmatpush.bf16.msra.mxu3 %v6163_v52  ;;  %4750 = vmatpush.bf16.msrb.mxu1 %v6187_v40  ;;  %v6185_v52 = vld [vmem:[%s8133_s7] sm:$0xff] }
 0x6f2   :  { %4373 = vmatpush.bf16.msra.mxu3 %v6162_v42  ;;  %4751 = vmatpush.bf16.msrb.mxu1 %v6186_v25 }
 0x6f4   :  { %v3808_v44 = vpop.f32.mrf.mxu3 }
 0x6f5   :  { %v3812_v30 = vadd.f32 %v3808_v44, %v3755_v9 }
 0x6f6   :  { %4374 = vmatpush.bf16.msra.mxu3 %v6161_v60  ;;  %4752 = vmatpush.bf16.msrb.mxu1 %v6185_v52 }
 0x6f9   :  { %5834 = vmatmul.msk.bf16.vlgmr.msrb.gmra.mxu3 %vm3293_vm4, %v7770_v10  ;;  %v6172_v10 = vld [vmem:[%s8131_s5 + $0x2b8] sm:$0xff] }
 0x6fa   :  { %4428 = vmatpush.bf16.msrb.mxu3 %v6168_v16 }
 0x6fc   :  { %v3863_v38 = vpop.f32.mrf.mxu3 }
 0x6fd   :  { %v3868_v2 = vadd.f32 %v3863_v38, %v3811_v12  ;;  %v4661_v38 = vpop.f32.mrf.mxu0 }
 0x6fe   :  { %4429 = vmatpush.bf16.msrb.mxu3 %v6167_v32 }
 0x702   :  { %4430 = vmatpush.bf16.msrb.mxu3 %v6166_v15 }
 0x704   :  { %v3865_v36 = vpop.f32.mrf.mxu3 }
 0x705   :  { %v3869_v34 = vadd.f32 %v3865_v36, %v3812_v30 }
 0x706   :  { %4431 = vmatpush.bf16.msrb.mxu3 %v6165_v1 }
 0x709   :  { %5859 = vmatmul.msk.bf16.vlgmr.msra.gmra.mxu3 %vm3293_vm4, %v7790_v7  ;;  %v6176_v7 = vld [vmem:[%s8131_s5 + $0x2d8] sm:$0xff] }
 0x70a   :  { %4485 = vmatpush.bf16.msra.mxu3 %v6172_v10 }
 0x70c   :  { %v3920_v35 = vpop.f32.mrf.mxu3 }
 0x70d   :  { %v3925_v19 = vadd.f32 %v3920_v35, %v3868_v2 }
 0x70e   :  { %4486 = vmatpush.bf16.msra.mxu3 %v6171_v61 }
 0x712   :  { %4487 = vmatpush.bf16.msra.mxu3 %v6170_v49 }
 0x714   :  { %v3922_v26 = vpop.f32.mrf.mxu3 }
 0x715   :  { %v3926_v28 = vadd.f32 %v3922_v26, %v3869_v34  ;;  %v4663_v26 = vpop.f32.mrf.mxu0 }
 0x716   :  { %4488 = vmatpush.bf16.msra.mxu3 %v6169_v5 }
 0x719   :  { %5884 = vmatmul.msk.bf16.vlgmr.msrb.gmra.mxu3 %vm3293_vm4, %v7813_v59  ;;  %v6180_v59 = vld [vmem:[%s8131_s5 + $0x2f8] sm:$0xff] }
 0x71a   :  { %4542 = vmatpush.bf16.msrb.mxu3 %v6176_v7 }
 0x71c   :  { %v3977_v23 = vpop.f32.mrf.mxu3 }
 0x71d   :  { %v3982_v6 = vadd.f32 %v3977_v23, %v3925_v19  ;;  %v6198_v19 = vld [vmem:[%s8134_s6] ss:$0 sm:$0xff] }
 0x71e   :  { %4543 = vmatpush.bf16.msrb.mxu3 %v6175_v48 }
 0x722   :  { %4544 = vmatpush.bf16.msrb.mxu3 %v6174_v11 }
 0x724   :  { %v3979_v0 = vpop.f32.mrf.mxu3 }
 0x725   :  { %v3983_v56 = vadd.f32 %v3979_v0, %v3926_v28 }
 0x726   :  { %4545 = vmatpush.bf16.msrb.mxu3 %v6173_v50  ;;  %v6199_v50 = vld [vmem:[%s8135_s8] ss:$0 sm:$0xff] }
 0x729   :  { %5909 = vmatmul.msk.bf16.vlgmr.msra.gmra.mxu3 %vm3293_vm4, %v7833_v46  ;;  %v6177_v46 = vld [vmem:[%s8131_s5 + $0x2e0] sm:$0xff] }
 0x72a   :  { %4599 = vmatpush.bf16.msra.mxu3 %v6180_v59 }
 0x72c   :  { %v4034_v47 = vpop.f32.mrf.mxu3 }
 0x72d   :  { %v4039_v45 = vadd.f32 %v4034_v47, %v3982_v6 }
 0x72e   :  { %4600 = vmatpush.bf16.msra.mxu3 %v6179_v18 }
 0x732   :  { %4601 = vmatpush.bf16.msra.mxu3 %v6178_v62 }
 0x734   :  { %v4036_v58 = vpop.f32.mrf.mxu3 }
 0x735   :  { %v4040_v39 = vadd.f32 %v4036_v58, %v3983_v56 }
 0x736   :  { %4602 = vmatpush.bf16.msra.mxu3 %v6177_v46 }
 0x739   :  { %5934 = vmatmul.msk.bf16.vlgmr.msrb.gmra.mxu3 %vm3293_vm4, %v7862_v14 }
 0x73c   :  { %v4091_v8 = vpop.f32.mrf.mxu3 }
 0x73d   :  { %v4096_v51 = vadd.f32 %v4091_v8, %v4039_v45 }
 0x744   :  { %v4093_v27 = vpop.f32.mrf.mxu3 }
 0x745   :  { %v4097_v31 = vadd.f32 %v4093_v27, %v4040_v39 }
 0x749   :  { %5959 = vmatmul.msk.bf16.vlgmr.msra.gmra.mxu3 %vm3293_vm4, %v7882_v33 }
 0x74c   :  { %v4148_v17 = vpop.f32.mrf.mxu3 }
 0x74d   :  { %v4153_v13 = vadd.f32 %v4148_v17, %v4096_v51 }
 0x754   :  { %v4150_v4 = vpop.f32.mrf.mxu3 }
 0x755   :  { %v4154_v55 = vadd.f32 %v4150_v4, %v4097_v31 }
 0x75c   :  { %v4205_v22 = vpop.f32.mrf.mxu3 }
 0x75d   :  { %v4210_v20 = vadd.f32 %v4205_v22, %v4153_v13 }
 0x764   :  { %v4207_v43 = vpop.f32.mrf.mxu3 }
 0x765   :  { %v4211_v14 = vadd.f32 %v4207_v43, %v4154_v55 }
 0x76c   :  { %v4262_v63 = vpop.f32.mrf.mxu3 }
 0x76d   :  { %v4267_v57 = vadd.f32 %v4262_v63, %v4210_v20 }
 0x774   :  { %v4264_v54 = vpop.f32.mrf.mxu3 }
 0x775   :  { %v4268_v29 = vadd.f32 %v4264_v54, %v4211_v14 }
 0x77c   :  { %v4319_v37 = vpop.f32.mrf.mxu3 }
 0x77d   :  { %v4324_v24 = vadd.f32 %v4319_v37, %v4267_v57 }
 0x784   :  { %v4321_v33 = vpop.f32.mrf.mxu3 }
 0x785   :  { %v4325_v53 = vadd.f32 %v4321_v33, %v4268_v29 }
 0x78c   :  { %v4376_v9 = vpop.f32.mrf.mxu3 }
 0x78d   :  { %v4381_v3 = vadd.f32 %v4376_v9, %v4324_v24 }
 0x794   :  { %v4378_v41 = vpop.f32.mrf.mxu3 }
 0x795   :  { %v4382_v15 = vadd.f32 %v4378_v41, %v4325_v53 }
 0x79c   :  { %v4433_v12 = vpop.f32.mrf.mxu3 }
 0x79d   :  { %v4438_v16 = vadd.f32 %v4433_v12, %v4381_v3 }
 0x7a4   :  { %v4435_v42 = vpop.f32.mrf.mxu3 }
 0x7a5   :  { %v4439_v36 = vadd.f32 %v4435_v42, %v4382_v15 }
 0x7ac   :  { %v4490_v60 = vpop.f32.mrf.mxu3 }
 0x7ad   :  { %v4495_v32 = vadd.f32 %v4490_v60, %v4438_v16 }
 0x7b4   :  { %v4492_v44 = vpop.f32.mrf.mxu3 }
 0x7b5   :  { %v4496_v10 = vadd.f32 %v4492_v44, %v4439_v36 }
 0x7bc   :  { %v4547_v30 = vpop.f32.mrf.mxu3 }
 0x7bd   :  { %v4552_v1 = vadd.f32 %v4547_v30, %v4495_v32 }
 0x7c4   :  { %v4549_v21 = vpop.f32.mrf.mxu3 }
 0x7c5   :  { %v4553_v61 = vadd.f32 %v4549_v21, %v4496_v10 }
 0x7cc   :  { %v4604_v2 = vpop.f32.mrf.mxu3 }
 0x7cd   :  { %v4609_v34 = vadd.f32 %v4604_v2, %v4552_v1 }
 0x7cf   :  { %v4666_v35 = vadd.f32 %v4661_v38, %v4609_v34 }
 0x7d1   :  { %v4672_v28 = vadd.f32 %v6198_v19, %v4666_v35 }
 0x7d3   :  { %v4674_v23 = vmax.f32 %v4672_v28, 0.0 }
 0x7d4   :  { %v4606_v49 = vpop.f32.mrf.mxu3 }
 0x7d5   :  { %v4610_v5 = vadd.f32 %v4606_v49, %v4553_v61 }
 0x7d7   :  { %v4667_v7 = vadd.f32 %v4663_v26, %v4610_v5 }
 0x7d9   :  { %v4673_v48 = vadd.f32 %v6198_v19, %v4667_v7 }
 0x7db   :  { %v4675_v6 = vmax.f32 %v4673_v48, 0.0 }
 0x7dd   :  { %v4676_v11 = vpack.c.bf16 %v4675_v6, %v4674_v23 }
 0x7df   :  { %4753 = vmatmul.bf16.vlgmr.msrb.gmra.mxu1 %v4676_v11 }
 0x85c   :  { %v4754_v0 = vpop.f32.mrf.mxu1 }
 0x85d   :  { %v4755_v56 = vadd.f32 %v6199_v50, %v4754_v0 }
 0x85f   :  { %v4760_v59 = vsel %vm4759_vm5, %v4755_v56, -inf }
 0x860   :  { %4761 = vmax.xlane.f32.xlu0 %v4760_v59 }
 0x864   :  { %v4756_v40 = vpop.f32.mrf.mxu1 }
 0x865   :  { %v4757_v18 = vadd.f32 %v6199_v50, %v4756_v40 }
 0x867   :  { %v4763_v47 = vsel %vm4759_vm5, %v4757_v18, -inf }
 0x868   :  { %4764 = vmax.xlane.f32.xlu0 %v4763_v47 }
 0x8d3   :  { %v4762_v45 = vpop.xlane.xlu0 %4761 }
 0x8d4   :  { %v4766_v62 = vsub.f32 %v4755_v56, %v4762_v45 }
 0x8d6   :  { %v4768_v46 = vmul.f32 1.442695, %v4766_v62 }
 0x8d8   :  { %6200 = vpow2.f32 %v4768_v46 }
 0x8db   :  { %v4765_v58 = vpop.xlane.xlu0 %4764 }
 0x8dc   :  { %v4767_v39 = vsub.f32 %v4757_v18, %v4765_v58 }
 0x8de   :  { %v6201_v8 = vpop.eup %6200  ;;  %v4770_v51 = vmul.f32 1.442695, %v4767_v39 }
 0x8df   :  { %v4772_v27 = vsel %vm4759_vm5, %v6201_v8, 0.0 }
 0x8e0   :  { %6202 = vpow2.f32 %v4770_v51  ;;  %4773 = vadd.xlane.f32.xlu1 %v4772_v27 }
 0x8e6   :  { %v6203_v31 = vpop.eup %6202 }
 0x8e7   :  { %v4775_v17 = vsel %vm4759_vm5, %v6203_v31, 0.0 }
 0x8e8   :  { %4776 = vadd.xlane.f32.xlu1 %v4775_v17 }
 0x953   :  { %v4774_v13 = vpop.xlane.xlu1 %4773 }
 0x954   :  { %6204 = vlog2.f32 %v4774_v13 }
 0x95a   :  { %v6205_v4 = vpop.eup %6204 }
 0x95b   :  { %v4779_v55 = vmul.f32 0.6931472, %v6205_v4  ;;  %v4777_v25 = vpop.xlane.xlu1 %4776 }
 0x95c   :  { %6206 = vlog2.f32 %v4777_v25 }
 0x95d   :  { %v4782_v22 = vsub.f32 %v4766_v62, %v4779_v55 }
 0x95f   :  { %4784 = vst.msk [vmem:[%s8136_s9] sm:$0xff] %vm4759_vm5, %v4782_v22 }
 0x962   :  { %v6207_v20 = vpop.eup %6206 }
 0x963   :  { %v4781_v43 = vmul.f32 0.6931472, %v6207_v20 }
 0x965   :  { %v4783_v14 = vsub.f32 %v4767_v39, %v4781_v43 }
 0x967   :  { %4785 = vst.msk [vmem:[%s8136_s9 + $0x8] sm:$0xff] %vm4759_vm5, %v4783_v14 }

</bundles_post_ra>
